<compile_context>
chip_gen: v6e
topology: v6e:2x2x1
jax: 0.10.0
libtpu: 0.0.40
codegen_flags: <defaults>
</compile_context>

<pallas_src>
import jax
import jax.numpy as jnp
from jax.experimental import pallas as pl
from jax.experimental.pallas import tpu as pltpu

# ---------------- model dims (from cfg in the reference module) --------------
HISTORY_FRAMES = 10
NUM_IN_CHANNELS = 3 + (HISTORY_FRAMES + 1) * 2          # 25
BACKBONE_OUT = 1792                                     # efficientnet-b4 feature dim
HIDDEN = 4096                                           # head Linear out_features
NUM_TARGETS = 2 * 50                                    # 2 * future_num_frames = 100

KDIM = NUM_IN_CHANNELS * 3 * 3                          # 225 (im2col K)
KDIM_PAD = 256                                          # pad to 2 x 128 lanes
NT_PAD = 128                                            # pad targets to lane-dense 128


def _vmem_limit_bytes():
    """Per-generation scoped-VMEM limit (~3/4 of physical), 48 MiB fallback."""
    try:
        info = pltpu.get_tpu_info()
        cap = getattr(info, "vmem_capacity_bytes", None)
        if cap:
            return int(cap) * 3 // 4
    except Exception:
        pass
    return 48 * 1024 * 1024


_VMEM_LIMIT = _vmem_limit_bytes()


def _round_up(x, m):
    return (x + m - 1) // m * m


def _stem_tiling(hw, *, cap=1024, n_split=2):
    """Pick (n_split, row_tile, padded_rows_per_split) for the stem grid."""
    if hw < 32:                       # too small to bother splitting
        n_split = 1
    hw_sub = -(-hw // n_split)                       # ceil
    tm = min(cap, _round_up(hw_sub, 16))             # multiple of 16 (bf16 sublanes)
    hw_sub_pad = _round_up(hw_sub, tm)
    return n_split, tm, hw_sub_pad


# ---------------- kernel 1: stem conv (GEMM + swish) fused with global pool --
def stem_conv_pool(patches, w_stem, *, tm, tc=256):
    """patches: (n_split, B, HWs, K) bf16 (zero-padded rows), w_stem: (K, Cout) bf16.

    Returns partial pooled SUMS of shape (n_split, B, Cout) f32 (not yet divided
    by HW); the wrapper sums over n_split and divides by the true HW.
    """
    n_split, b, hw_sub, k = patches.shape
    kk, cout = w_stem.shape
    assert kk == k and cout % tc == 0 and hw_sub % tm == 0
    n_rt = hw_sub // tm
    n_ct = cout // tc

    def kernel(p_ref, w_ref, pooled_ref):
        r = pl.program_id(1)

        @pl.when(r == 0)
        def _():
            pooled_ref[...] = jnp.zeros_like(pooled_ref)

        parts = []
        for j in range(n_ct):                             # static unroll over Cout tiles
            w_j = w_ref[:, j * tc:(j + 1) * tc]           # (k, tc) bf16, static slice
            rows = []
            for bi in range(b):                           # static unroll over batch
                # GEMM on the MXU in bf16, accumulate f32.
                f = jnp.dot(p_ref[0, bi], w_j,
                            preferred_element_type=jnp.float32)       # (tm, tc)
                # swish: sigmoid in bf16 (EUP), multiply + pool-sum in f32.
                s = jax.nn.sigmoid(f.astype(jnp.bfloat16)).astype(jnp.float32)
                f = f * s
                rows.append(jnp.sum(f, axis=0, keepdims=True))         # (1, tc)
            parts.append(jnp.concatenate(rows, axis=0))                # (b, tc)
        # Dense resident-block accumulation (zero-padded rows contribute 0).
        pooled_ref[0] += jnp.concatenate(parts, axis=1)                # (b, cout)

    return pl.pallas_call(
        kernel,
        out_shape=jax.ShapeDtypeStruct((n_split, b, cout), jnp.float32),
        grid_spec=pltpu.PrefetchScalarGridSpec(
            num_scalar_prefetch=0,
            grid=(n_split, n_rt),
            in_specs=[
                pl.BlockSpec((1, b, tm, k), lambda s, r: (s, 0, r, 0)),
                # Full weight resident in VMEM (constant index map -> 1 DMA).
                pl.BlockSpec((k, cout), lambda s, r: (0, 0)),
            ],
            # One resident partial-pool block per split; written back once.
            out_specs=pl.BlockSpec((1, b, cout), lambda s, r: (s, 0, 0)),
        ),
        compiler_params=pltpu.CompilerParams(
            # split axis is independent (uses both v7x TCs); row axis accumulates.
            dimension_semantics=("parallel", "arbitrary"),
            vmem_limit_bytes=_VMEM_LIMIT,
        ),
    )(patches, w_stem)


# ---------------- kernel 2: fused head (single 1792 -> 128 GEMV) --------------
def head_logit(pooled, w_head, b_head):
    """pooled: (B, 1792) f32; w_head: (1792, 128) bf16; b_head: (1, 128) f32."""
    bsz, c = pooled.shape
    ntp = w_head.shape[1]
    assert w_head.shape[0] == c and b_head.shape == (1, ntp)

    def kernel(p_ref, w_ref, b_ref, o_ref):
        # Dropout(0.2) is identity at inference; both Linears folded into one.
        p = p_ref[...].astype(jnp.bfloat16)
        o_ref[...] = (jnp.dot(p, w_ref[...], preferred_element_type=jnp.float32)
                      + b_ref[...])

    return pl.pallas_call(
        kernel,
        out_shape=jax.ShapeDtypeStruct((bsz, ntp), jnp.float32),
        in_specs=[pl.BlockSpec(memory_space=pltpu.MemorySpace.VMEM)] * 3,
        out_specs=pl.BlockSpec(memory_space=pltpu.MemorySpace.VMEM),
        compiler_params=pltpu.CompilerParams(vmem_limit_bytes=_VMEM_LIMIT),
    )(pooled, w_head, b_head)


# ---------------- full forward ------------------------------------------------
def lyft_model_forward(x, params):
    """x: (B, 25, H, W) NCHW float32 -> (B, 100)."""
    b = x.shape[0]
    # im2col (glue): 3x3, stride 2, SAME padding -> (B, C*9, Ho, Wo)
    # NOTE: the flattened K ordering here must match the row ordering of
    # w_stem; with random init (this stand-in) any consistent ordering works.
    patches = jax.lax.conv_general_dilated_patches(
        x, filter_shape=(3, 3), window_strides=(2, 2), padding="SAME")
    _, k, ho, wo = patches.shape
    hw = ho * wo
    patches = jnp.transpose(patches, (0, 2, 3, 1)).reshape(b, hw, k)

    k_pad = params["w_stem"].shape[0]
    n_split, tm, hw_sub_pad = _stem_tiling(hw)
    pad_rows = n_split * hw_sub_pad - hw
    # Pad K (225 -> 256) and rows (zero rows contribute 0 to the pool sum);
    # cast activations to bf16 for the MXU.
    patches = jnp.pad(
        patches, ((0, 0), (0, pad_rows), (0, k_pad - k))).astype(jnp.bfloat16)
    # (B, n_split*HWs, K) -> (n_split, B, HWs, K) so each grid block is a clean
    # 2-D (tm, K) slab per batch element inside the kernel.
    patches = patches.reshape(b, n_split, hw_sub_pad, k_pad).transpose(1, 0, 2, 3)

    # backbone stand-in + adaptive_avg_pool2d(1).squeeze(), fused
    # (the (B, HW, 1792) feature map never touches HBM).
    partial = stem_conv_pool(patches, params["w_stem"], tm=tm)   # (n_split, B, 1792)
    pooled = jnp.sum(partial, axis=0) * (1.0 / float(hw))        # exact mean, (B, 1792)

    # head (Dropout + Linear 1792->4096) + logit (Linear 4096->100), fused GEMV
    out = head_logit(pooled, params["w_head"], params["b_head"])  # (B, 128)
    return out[:, :NUM_TARGETS]                                   # (B, 100)


def init_params(key):
    k1, k2, k3, k4, k5 = jax.random.split(key, 5)
    w_stem = jax.random.normal(k1, (KDIM, BACKBONE_OUT), jnp.float32) * 0.02
    w_stem = jnp.pad(w_stem, ((0, KDIM_PAD - KDIM), (0, 0))).astype(jnp.bfloat16)

    # Head / logit parameters as in the PyTorch module ...
    w1 = jax.random.normal(k2, (BACKBONE_OUT, HIDDEN), jnp.float32) * 0.02
    b1 = jax.random.normal(k3, (HIDDEN,), jnp.float32) * 0.01
    w2 = jax.random.normal(k4, (HIDDEN, NUM_TARGETS), jnp.float32) * 0.02
    b2 = jax.random.normal(k5, (NUM_TARGETS,), jnp.float32) * 0.01

    # ... fused offline (exact: Dropout is identity at inference, no activation
    # between head and logit): y = (x@w1 + b1)@w2 + b2 = x@(w1@w2) + (b1@w2 + b2)
    w_head = w1 @ w2                                     # (1792, 100) f32
    b_head = b1 @ w2 + b2                                # (100,)
    w_head = jnp.pad(w_head, ((0, 0), (0, NT_PAD - NUM_TARGETS))).astype(jnp.bfloat16)
    b_head = jnp.pad(b_head, (0, NT_PAD - NUM_TARGETS)).reshape(1, NT_PAD)

    return {"w_stem": w_stem, "w_head": w_head, "b_head": b_head}


if __name__ == "__main__":
    key = jax.random.PRNGKey(0)
    kx, kp = jax.random.split(key)

    B, H, W = 2, 16, 16
    x = jax.random.normal(kx, (B, NUM_IN_CHANNELS, H, W), jnp.float32)
    params = init_params(kp)

    out = jax.jit(lyft_model_forward)(x, params)
    out = jax.block_until_ready(out)
    assert out.shape == (B, NUM_TARGETS), out.shape
    assert bool(jnp.all(jnp.isfinite(out)))
    print("KERNEL_OK")
</pallas_src>

<mosaic_0001>
module attributes {stable_mosaic.version = 11 : i64} {
  func.func @kernel(%arg0: i32, %arg1: i32, %arg2: memref<1x2x32x256xbf16, #tpu.memory_space<vmem>>, %arg3: memref<256x1792xbf16, #tpu.memory_space<vmem>>, %arg4: memref<1x2x1792xf32, #tpu.memory_space<vmem>>) attributes {dimension_semantics = [#tpu.dimension_semantics<parallel>, #tpu.dimension_semantics<arbitrary>], iteration_bounds = array<i64: 2, 1>, scalar_prefetch = 0 : i64, scratch_operands = 0 : i64, tpu.core_type = #tpu.core_type<tc>, window_params = [{transform_indices = @transform_0, window_bounds = array<i64: 1, 2, 32, 256>}, {pipeline_mode = #tpu.pipeline_mode<synchronous>, transform_indices = @transform_1, window_bounds = array<i64: 256, 1792>}, {transform_indices = @transform_2, window_bounds = array<i64: 1, 2, 1792>}]} {
    %c0_i32 = arith.constant 0 : i32
    %0 = arith.cmpi eq, %arg1, %c0_i32 : i32
    %1 = arith.extui %0 : i1 to i32
    %c0_i32_0 = arith.constant 0 : i32
    %2 = arith.cmpi ne, %1, %c0_i32_0 : i32
    scf.if %2 {
      %cst_110 = arith.constant 0.000000e+00 : f32
      %206 = vector.broadcast %cst_110 : f32 to vector<1x2x1792xf32>
      %c0_111 = arith.constant 0 : index
      %c0_112 = arith.constant 0 : index
      %c0_113 = arith.constant 0 : index
      %207 = vector.load %arg4[%c0_111, %c0_112, %c0_113] : memref<1x2x1792xf32, #tpu.memory_space<vmem>>, vector<1x2x1792xf32>
      tpu.vector_store %arg4[%c0_111, %c0_112, %c0_113], %206 {strides = array<i32>} : memref<1x2x1792xf32, #tpu.memory_space<vmem>>, vector<1x2x1792xf32>,
    } else {
    }
    %c0 = arith.constant 0 : index
    %c0_1 = arith.constant 0 : index
    %3 = vector.load %arg3[%c0, %c0_1] : memref<256x1792xbf16, #tpu.memory_space<vmem>>, vector<256x256xbf16>
    %c0_2 = arith.constant 0 : index
    %c0_3 = arith.constant 0 : index
    %c0_4 = arith.constant 0 : index
    %c0_5 = arith.constant 0 : index
    %4 = vector.load %arg2[%c0_2, %c0_3, %c0_4, %c0_5] : memref<1x2x32x256xbf16, #tpu.memory_space<vmem>>, vector<1x1x32x256xbf16>
    %5 = vector.shape_cast %4 : vector<1x1x32x256xbf16> to vector<32x256xbf16>
    %cst = arith.constant dense<0.000000e+00> : vector<32x256xf32>
    %6 = tpu.matmul %5, %3, %cst {dimension_numbers = #tpu.dot_dimension_numbers<[1], [0], [0], [1], [0, 0, 1, 1], [], []>} : vector<32x256xbf16>, vector<256x256xbf16>, vector<32x256xf32> -> vector<32x256xf32>
    %7 = arith.truncf %6 : vector<32x256xf32> to vector<32x256xbf16>
    %8 = arith.negf %7 : vector<32x256xbf16>
    %9 = math.exp %8 : vector<32x256xbf16>
    %cst_6 = arith.constant 1.000000e+00 : bf16
    %10 = vector.broadcast %cst_6 : bf16 to vector<32x256xbf16>
    %11 = arith.addf %10, %9 : vector<32x256xbf16>
    %12 = arith.divf %10, %11 : vector<32x256xbf16>
    %13 = arith.extf %12 : vector<32x256xbf16> to vector<32x256xf32>
    %14 = arith.mulf %6, %13 : vector<32x256xf32>
    %cst_7 = arith.constant dense<0.000000e+00> : vector<256xf32>
    %15 = vector.multi_reduction <add>, %14, %cst_7 [0] : vector<32x256xf32> to vector<256xf32>
    %16 = vector.shape_cast %15 : vector<256xf32> to vector<1x256xf32>
    %c0_8 = arith.constant 0 : index
    %c1 = arith.constant 1 : index
    %c0_9 = arith.constant 0 : index
    %c0_10 = arith.constant 0 : index
    %17 = vector.load %arg2[%c0_8, %c1, %c0_9, %c0_10] : memref<1x2x32x256xbf16, #tpu.memory_space<vmem>>, vector<1x1x32x256xbf16>
    %18 = vector.shape_cast %17 : vector<1x1x32x256xbf16> to vector<32x256xbf16>
    %cst_11 = arith.constant dense<0.000000e+00> : vector<32x256xf32>
    %19 = tpu.matmul %18, %3, %cst_11 {dimension_numbers = #tpu.dot_dimension_numbers<[1], [0], [0], [1], [0, 0, 1, 1], [], []>} : vector<32x256xbf16>, vector<256x256xbf16>, vector<32x256xf32> -> vector<32x256xf32>
    %20 = arith.truncf %19 : vector<32x256xf32> to vector<32x256xbf16>
    %21 = arith.negf %20 : vector<32x256xbf16>
    %22 = math.exp %21 : vector<32x256xbf16>
    %cst_12 = arith.constant 1.000000e+00 : bf16
    %23 = vector.broadcast %cst_12 : bf16 to vector<32x256xbf16>
    %24 = arith.addf %23, %22 : vector<32x256xbf16>
    %25 = arith.divf %23, %24 : vector<32x256xbf16>
    %26 = arith.extf %25 : vector<32x256xbf16> to vector<32x256xf32>
    %27 = arith.mulf %19, %26 : vector<32x256xf32>
    %cst_13 = arith.constant dense<0.000000e+00> : vector<256xf32>
    %28 = vector.multi_reduction <add>, %27, %cst_13 [0] : vector<32x256xf32> to vector<256xf32>
    %29 = vector.shape_cast %28 : vector<256xf32> to vector<1x256xf32>
    %30 = tpu.concatenate %16, %29 in 0 : vector<1x256xf32>, vector<1x256xf32> -> vector<2x256xf32>
    %c0_14 = arith.constant 0 : index
    %c256 = arith.constant 256 : index
    %31 = vector.load %arg3[%c0_14, %c256] : memref<256x1792xbf16, #tpu.memory_space<vmem>>, vector<256x256xbf16>
    %c0_15 = arith.constant 0 : index
    %c0_16 = arith.constant 0 : index
    %c0_17 = arith.constant 0 : index
    %c0_18 = arith.constant 0 : index
    %32 = vector.load %arg2[%c0_15, %c0_16, %c0_17, %c0_18] : memref<1x2x32x256xbf16, #tpu.memory_space<vmem>>, vector<1x1x32x256xbf16>
    %33 = vector.shape_cast %32 : vector<1x1x32x256xbf16> to vector<32x256xbf16>
    %cst_19 = arith.constant dense<0.000000e+00> : vector<32x256xf32>
    %34 = tpu.matmul %33, %31, %cst_19 {dimension_numbers = #tpu.dot_dimension_numbers<[1], [0], [0], [1], [0, 0, 1, 1], [], []>} : vector<32x256xbf16>, vector<256x256xbf16>, vector<32x256xf32> -> vector<32x256xf32>
    %35 = arith.truncf %34 : vector<32x256xf32> to vector<32x256xbf16>
    %36 = arith.negf %35 : vector<32x256xbf16>
    %37 = math.exp %36 : vector<32x256xbf16>
    %cst_20 = arith.constant 1.000000e+00 : bf16
    %38 = vector.broadcast %cst_20 : bf16 to vector<32x256xbf16>
    %39 = arith.addf %38, %37 : vector<32x256xbf16>
    %40 = arith.divf %38, %39 : vector<32x256xbf16>
    %41 = arith.extf %40 : vector<32x256xbf16> to vector<32x256xf32>
    %42 = arith.mulf %34, %41 : vector<32x256xf32>
    %cst_21 = arith.constant dense<0.000000e+00> : vector<256xf32>
    %43 = vector.multi_reduction <add>, %42, %cst_21 [0] : vector<32x256xf32> to vector<256xf32>
    %44 = vector.shape_cast %43 : vector<256xf32> to vector<1x256xf32>
    %c0_22 = arith.constant 0 : index
    %c1_23 = arith.constant 1 : index
    %c0_24 = arith.constant 0 : index
    %c0_25 = arith.constant 0 : index
    %45 = vector.load %arg2[%c0_22, %c1_23, %c0_24, %c0_25] : memref<1x2x32x256xbf16, #tpu.memory_space<vmem>>, vector<1x1x32x256xbf16>
    %46 = vector.shape_cast %45 : vector<1x1x32x256xbf16> to vector<32x256xbf16>
    %cst_26 = arith.constant dense<0.000000e+00> : vector<32x256xf32>
    %47 = tpu.matmul %46, %31, %cst_26 {dimension_numbers = #tpu.dot_dimension_numbers<[1], [0], [0], [1], [0, 0, 1, 1], [], []>} : vector<32x256xbf16>, vector<256x256xbf16>, vector<32x256xf32> -> vector<32x256xf32>
    %48 = arith.truncf %47 : vector<32x256xf32> to vector<32x256xbf16>
    %49 = arith.negf %48 : vector<32x256xbf16>
    %50 = math.exp %49 : vector<32x256xbf16>
    %cst_27 = arith.constant 1.000000e+00 : bf16
    %51 = vector.broadcast %cst_27 : bf16 to vector<32x256xbf16>
    %52 = arith.addf %51, %50 : vector<32x256xbf16>
    %53 = arith.divf %51, %52 : vector<32x256xbf16>
    %54 = arith.extf %53 : vector<32x256xbf16> to vector<32x256xf32>
    %55 = arith.mulf %47, %54 : vector<32x256xf32>
    %cst_28 = arith.constant dense<0.000000e+00> : vector<256xf32>
    %56 = vector.multi_reduction <add>, %55, %cst_28 [0] : vector<32x256xf32> to vector<256xf32>
    %57 = vector.shape_cast %56 : vector<256xf32> to vector<1x256xf32>
    %58 = tpu.concatenate %44, %57 in 0 : vector<1x256xf32>, vector<1x256xf32> -> vector<2x256xf32>
    %c0_29 = arith.constant 0 : index
    %c512 = arith.constant 512 : index
    %59 = vector.load %arg3[%c0_29, %c512] : memref<256x1792xbf16, #tpu.memory_space<vmem>>, vector<256x256xbf16>
    %c0_30 = arith.constant 0 : index
    %c0_31 = arith.constant 0 : index
    %c0_32 = arith.constant 0 : index
    %c0_33 = arith.constant 0 : index
    %60 = vector.load %arg2[%c0_30, %c0_31, %c0_32, %c0_33] : memref<1x2x32x256xbf16, #tpu.memory_space<vmem>>, vector<1x1x32x256xbf16>
    %61 = vector.shape_cast %60 : vector<1x1x32x256xbf16> to vector<32x256xbf16>
    %cst_34 = arith.constant dense<0.000000e+00> : vector<32x256xf32>
    %62 = tpu.matmul %61, %59, %cst_34 {dimension_numbers = #tpu.dot_dimension_numbers<[1], [0], [0], [1], [0, 0, 1, 1], [], []>} : vector<32x256xbf16>, vector<256x256xbf16>, vector<32x256xf32> -> vector<32x256xf32>
    %63 = arith.truncf %62 : vector<32x256xf32> to vector<32x256xbf16>
    %64 = arith.negf %63 : vector<32x256xbf16>
    %65 = math.exp %64 : vector<32x256xbf16>
    %cst_35 = arith.constant 1.000000e+00 : bf16
    %66 = vector.broadcast %cst_35 : bf16 to vector<32x256xbf16>
    %67 = arith.addf %66, %65 : vector<32x256xbf16>
    %68 = arith.divf %66, %67 : vector<32x256xbf16>
    %69 = arith.extf %68 : vector<32x256xbf16> to vector<32x256xf32>
    %70 = arith.mulf %62, %69 : vector<32x256xf32>
    %cst_36 = arith.constant dense<0.000000e+00> : vector<256xf32>
    %71 = vector.multi_reduction <add>, %70, %cst_36 [0] : vector<32x256xf32> to vector<256xf32>
    %72 = vector.shape_cast %71 : vector<256xf32> to vector<1x256xf32>
    %c0_37 = arith.constant 0 : index
    %c1_38 = arith.constant 1 : index
    %c0_39 = arith.constant 0 : index
    %c0_40 = arith.constant 0 : index
    %73 = vector.load %arg2[%c0_37, %c1_38, %c0_39, %c0_40] : memref<1x2x32x256xbf16, #tpu.memory_space<vmem>>, vector<1x1x32x256xbf16>
    %74 = vector.shape_cast %73 : vector<1x1x32x256xbf16> to vector<32x256xbf16>
    %cst_41 = arith.constant dense<0.000000e+00> : vector<32x256xf32>
    %75 = tpu.matmul %74, %59, %cst_41 {dimension_numbers = #tpu.dot_dimension_numbers<[1], [0], [0], [1], [0, 0, 1, 1], [], []>} : vector<32x256xbf16>, vector<256x256xbf16>, vector<32x256xf32> -> vector<32x256xf32>
    %76 = arith.truncf %75 : vector<32x256xf32> to vector<32x256xbf16>
    %77 = arith.negf %76 : vector<32x256xbf16>
    %78 = math.exp %77 : vector<32x256xbf16>
    %cst_42 = arith.constant 1.000000e+00 : bf16
    %79 = vector.broadcast %cst_42 : bf16 to vector<32x256xbf16>
    %80 = arith.addf %79, %78 : vector<32x256xbf16>
    %81 = arith.divf %79, %80 : vector<32x256xbf16>
    %82 = arith.extf %81 : vector<32x256xbf16> to vector<32x256xf32>
    %83 = arith.mulf %75, %82 : vector<32x256xf32>
    %cst_43 = arith.constant dense<0.000000e+00> : vector<256xf32>
    %84 = vector.multi_reduction <add>, %83, %cst_43 [0] : vector<32x256xf32> to vector<256xf32>
    %85 = vector.shape_cast %84 : vector<256xf32> to vector<1x256xf32>
    %86 = tpu.concatenate %72, %85 in 0 : vector<1x256xf32>, vector<1x256xf32> -> vector<2x256xf32>
    %c0_44 = arith.constant 0 : index
    %c768 = arith.constant 768 : index
    %87 = vector.load %arg3[%c0_44, %c768] : memref<256x1792xbf16, #tpu.memory_space<vmem>>, vector<256x256xbf16>
    %c0_45 = arith.constant 0 : index
    %c0_46 = arith.constant 0 : index
    %c0_47 = arith.constant 0 : index
    %c0_48 = arith.constant 0 : index
    %88 = vector.load %arg2[%c0_45, %c0_46, %c0_47, %c0_48] : memref<1x2x32x256xbf16, #tpu.memory_space<vmem>>, vector<1x1x32x256xbf16>
    %89 = vector.shape_cast %88 : vector<1x1x32x256xbf16> to vector<32x256xbf16>
    %cst_49 = arith.constant dense<0.000000e+00> : vector<32x256xf32>
    %90 = tpu.matmul %89, %87, %cst_49 {dimension_numbers = #tpu.dot_dimension_numbers<[1], [0], [0], [1], [0, 0, 1, 1], [], []>} : vector<32x256xbf16>, vector<256x256xbf16>, vector<32x256xf32> -> vector<32x256xf32>
    %91 = arith.truncf %90 : vector<32x256xf32> to vector<32x256xbf16>
    %92 = arith.negf %91 : vector<32x256xbf16>
    %93 = math.exp %92 : vector<32x256xbf16>
    %cst_50 = arith.constant 1.000000e+00 : bf16
    %94 = vector.broadcast %cst_50 : bf16 to vector<32x256xbf16>
    %95 = arith.addf %94, %93 : vector<32x256xbf16>
    %96 = arith.divf %94, %95 : vector<32x256xbf16>
    %97 = arith.extf %96 : vector<32x256xbf16> to vector<32x256xf32>
    %98 = arith.mulf %90, %97 : vector<32x256xf32>
    %cst_51 = arith.constant dense<0.000000e+00> : vector<256xf32>
    %99 = vector.multi_reduction <add>, %98, %cst_51 [0] : vector<32x256xf32> to vector<256xf32>
    %100 = vector.shape_cast %99 : vector<256xf32> to vector<1x256xf32>
    %c0_52 = arith.constant 0 : index
    %c1_53 = arith.constant 1 : index
    %c0_54 = arith.constant 0 : index
    %c0_55 = arith.constant 0 : index
    %101 = vector.load %arg2[%c0_52, %c1_53, %c0_54, %c0_55] : memref<1x2x32x256xbf16, #tpu.memory_space<vmem>>, vector<1x1x32x256xbf16>
    %102 = vector.shape_cast %101 : vector<1x1x32x256xbf16> to vector<32x256xbf16>
    %cst_56 = arith.constant dense<0.000000e+00> : vector<32x256xf32>
    %103 = tpu.matmul %102, %87, %cst_56 {dimension_numbers = #tpu.dot_dimension_numbers<[1], [0], [0], [1], [0, 0, 1, 1], [], []>} : vector<32x256xbf16>, vector<256x256xbf16>, vector<32x256xf32> -> vector<32x256xf32>
    %104 = arith.truncf %103 : vector<32x256xf32> to vector<32x256xbf16>
    %105 = arith.negf %104 : vector<32x256xbf16>
    %106 = math.exp %105 : vector<32x256xbf16>
    %cst_57 = arith.constant 1.000000e+00 : bf16
    %107 = vector.broadcast %cst_57 : bf16 to vector<32x256xbf16>
    %108 = arith.addf %107, %106 : vector<32x256xbf16>
    %109 = arith.divf %107, %108 : vector<32x256xbf16>
    %110 = arith.extf %109 : vector<32x256xbf16> to vector<32x256xf32>
    %111 = arith.mulf %103, %110 : vector<32x256xf32>
    %cst_58 = arith.constant dense<0.000000e+00> : vector<256xf32>
    %112 = vector.multi_reduction <add>, %111, %cst_58 [0] : vector<32x256xf32> to vector<256xf32>
    %113 = vector.shape_cast %112 : vector<256xf32> to vector<1x256xf32>
    %114 = tpu.concatenate %100, %113 in 0 : vector<1x256xf32>, vector<1x256xf32> -> vector<2x256xf32>
    %c0_59 = arith.constant 0 : index
    %c1024 = arith.constant 1024 : index
    %115 = vector.load %arg3[%c0_59, %c1024] : memref<256x1792xbf16, #tpu.memory_space<vmem>>, vector<256x256xbf16>
    %c0_60 = arith.constant 0 : index
    %c0_61 = arith.constant 0 : index
    %c0_62 = arith.constant 0 : index
    %c0_63 = arith.constant 0 : index
    %116 = vector.load %arg2[%c0_60, %c0_61, %c0_62, %c0_63] : memref<1x2x32x256xbf16, #tpu.memory_space<vmem>>, vector<1x1x32x256xbf16>
    %117 = vector.shape_cast %116 : vector<1x1x32x256xbf16> to vector<32x256xbf16>
    %cst_64 = arith.constant dense<0.000000e+00> : vector<32x256xf32>
    %118 = tpu.matmul %117, %115, %cst_64 {dimension_numbers = #tpu.dot_dimension_numbers<[1], [0], [0], [1], [0, 0, 1, 1], [], []>} : vector<32x256xbf16>, vector<256x256xbf16>, vector<32x256xf32> -> vector<32x256xf32>
    %119 = arith.truncf %118 : vector<32x256xf32> to vector<32x256xbf16>
    %120 = arith.negf %119 : vector<32x256xbf16>
    %121 = math.exp %120 : vector<32x256xbf16>
    %cst_65 = arith.constant 1.000000e+00 : bf16
    %122 = vector.broadcast %cst_65 : bf16 to vector<32x256xbf16>
    %123 = arith.addf %122, %121 : vector<32x256xbf16>
    %124 = arith.divf %122, %123 : vector<32x256xbf16>
    %125 = arith.extf %124 : vector<32x256xbf16> to vector<32x256xf32>
    %126 = arith.mulf %118, %125 : vector<32x256xf32>
    %cst_66 = arith.constant dense<0.000000e+00> : vector<256xf32>
    %127 = vector.multi_reduction <add>, %126, %cst_66 [0] : vector<32x256xf32> to vector<256xf32>
    %128 = vector.shape_cast %127 : vector<256xf32> to vector<1x256xf32>
    %c0_67 = arith.constant 0 : index
    %c1_68 = arith.constant 1 : index
    %c0_69 = arith.constant 0 : index
    %c0_70 = arith.constant 0 : index
    %129 = vector.load %arg2[%c0_67, %c1_68, %c0_69, %c0_70] : memref<1x2x32x256xbf16, #tpu.memory_space<vmem>>, vector<1x1x32x256xbf16>
    %130 = vector.shape_cast %129 : vector<1x1x32x256xbf16> to vector<32x256xbf16>
    %cst_71 = arith.constant dense<0.000000e+00> : vector<32x256xf32>
    %131 = tpu.matmul %130, %115, %cst_71 {dimension_numbers = #tpu.dot_dimension_numbers<[1], [0], [0], [1], [0, 0, 1, 1], [], []>} : vector<32x256xbf16>, vector<256x256xbf16>, vector<32x256xf32> -> vector<32x256xf32>
    %132 = arith.truncf %131 : vector<32x256xf32> to vector<32x256xbf16>
    %133 = arith.negf %132 : vector<32x256xbf16>
    %134 = math.exp %133 : vector<32x256xbf16>
    %cst_72 = arith.constant 1.000000e+00 : bf16
    %135 = vector.broadcast %cst_72 : bf16 to vector<32x256xbf16>
    %136 = arith.addf %135, %134 : vector<32x256xbf16>
    %137 = arith.divf %135, %136 : vector<32x256xbf16>
    %138 = arith.extf %137 : vector<32x256xbf16> to vector<32x256xf32>
    %139 = arith.mulf %131, %138 : vector<32x256xf32>
    %cst_73 = arith.constant dense<0.000000e+00> : vector<256xf32>
    %140 = vector.multi_reduction <add>, %139, %cst_73 [0] : vector<32x256xf32> to vector<256xf32>
    %141 = vector.shape_cast %140 : vector<256xf32> to vector<1x256xf32>
    %142 = tpu.concatenate %128, %141 in 0 : vector<1x256xf32>, vector<1x256xf32> -> vector<2x256xf32>
    %c0_74 = arith.constant 0 : index
    %c1280 = arith.constant 1280 : index
    %143 = vector.load %arg3[%c0_74, %c1280] : memref<256x1792xbf16, #tpu.memory_space<vmem>>, vector<256x256xbf16>
    %c0_75 = arith.constant 0 : index
    %c0_76 = arith.constant 0 : index
    %c0_77 = arith.constant 0 : index
    %c0_78 = arith.constant 0 : index
    %144 = vector.load %arg2[%c0_75, %c0_76, %c0_77, %c0_78] : memref<1x2x32x256xbf16, #tpu.memory_space<vmem>>, vector<1x1x32x256xbf16>
    %145 = vector.shape_cast %144 : vector<1x1x32x256xbf16> to vector<32x256xbf16>
    %cst_79 = arith.constant dense<0.000000e+00> : vector<32x256xf32>
    %146 = tpu.matmul %145, %143, %cst_79 {dimension_numbers = #tpu.dot_dimension_numbers<[1], [0], [0], [1], [0, 0, 1, 1], [], []>} : vector<32x256xbf16>, vector<256x256xbf16>, vector<32x256xf32> -> vector<32x256xf32>
    %147 = arith.truncf %146 : vector<32x256xf32> to vector<32x256xbf16>
    %148 = arith.negf %147 : vector<32x256xbf16>
    %149 = math.exp %148 : vector<32x256xbf16>
    %cst_80 = arith.constant 1.000000e+00 : bf16
    %150 = vector.broadcast %cst_80 : bf16 to vector<32x256xbf16>
    %151 = arith.addf %150, %149 : vector<32x256xbf16>
    %152 = arith.divf %150, %151 : vector<32x256xbf16>
    %153 = arith.extf %152 : vector<32x256xbf16> to vector<32x256xf32>
    %154 = arith.mulf %146, %153 : vector<32x256xf32>
    %cst_81 = arith.constant dense<0.000000e+00> : vector<256xf32>
    %155 = vector.multi_reduction <add>, %154, %cst_81 [0] : vector<32x256xf32> to vector<256xf32>
    %156 = vector.shape_cast %155 : vector<256xf32> to vector<1x256xf32>
    %c0_82 = arith.constant 0 : index
    %c1_83 = arith.constant 1 : index
    %c0_84 = arith.constant 0 : index
    %c0_85 = arith.constant 0 : index
    %157 = vector.load %arg2[%c0_82, %c1_83, %c0_84, %c0_85] : memref<1x2x32x256xbf16, #tpu.memory_space<vmem>>, vector<1x1x32x256xbf16>
    %158 = vector.shape_cast %157 : vector<1x1x32x256xbf16> to vector<32x256xbf16>
    %cst_86 = arith.constant dense<0.000000e+00> : vector<32x256xf32>
    %159 = tpu.matmul %158, %143, %cst_86 {dimension_numbers = #tpu.dot_dimension_numbers<[1], [0], [0], [1], [0, 0, 1, 1], [], []>} : vector<32x256xbf16>, vector<256x256xbf16>, vector<32x256xf32> -> vector<32x256xf32>
    %160 = arith.truncf %159 : vector<32x256xf32> to vector<32x256xbf16>
    %161 = arith.negf %160 : vector<32x256xbf16>
    %162 = math.exp %161 : vector<32x256xbf16>
    %cst_87 = arith.constant 1.000000e+00 : bf16
    %163 = vector.broadcast %cst_87 : bf16 to vector<32x256xbf16>
    %164 = arith.addf %163, %162 : vector<32x256xbf16>
    %165 = arith.divf %163, %164 : vector<32x256xbf16>
    %166 = arith.extf %165 : vector<32x256xbf16> to vector<32x256xf32>
    %167 = arith.mulf %159, %166 : vector<32x256xf32>
    %cst_88 = arith.constant dense<0.000000e+00> : vector<256xf32>
    %168 = vector.multi_reduction <add>, %167, %cst_88 [0] : vector<32x256xf32> to vector<256xf32>
    %169 = vector.shape_cast %168 : vector<256xf32> to vector<1x256xf32>
    %170 = tpu.concatenate %156, %169 in 0 : vector<1x256xf32>, vector<1x256xf32> -> vector<2x256xf32>
    %c0_89 = arith.constant 0 : index
    %c1536 = arith.constant 1536 : index
    %171 = vector.load %arg3[%c0_89, %c1536] : memref<256x1792xbf16, #tpu.memory_space<vmem>>, vector<256x256xbf16>
    %c0_90 = arith.constant 0 : index
    %c0_91 = arith.constant 0 : index
    %c0_92 = arith.constant 0 : index
    %c0_93 = arith.constant 0 : index
    %172 = vector.load %arg2[%c0_90, %c0_91, %c0_92, %c0_93] : memref<1x2x32x256xbf16, #tpu.memory_space<vmem>>, vector<1x1x32x256xbf16>
    %173 = vector.shape_cast %172 : vector<1x1x32x256xbf16> to vector<32x256xbf16>
    %cst_94 = arith.constant dense<0.000000e+00> : vector<32x256xf32>
    %174 = tpu.matmul %173, %171, %cst_94 {dimension_numbers = #tpu.dot_dimension_numbers<[1], [0], [0], [1], [0, 0, 1, 1], [], []>} : vector<32x256xbf16>, vector<256x256xbf16>, vector<32x256xf32> -> vector<32x256xf32>
    %175 = arith.truncf %174 : vector<32x256xf32> to vector<32x256xbf16>
    %176 = arith.negf %175 : vector<32x256xbf16>
    %177 = math.exp %176 : vector<32x256xbf16>
    %cst_95 = arith.constant 1.000000e+00 : bf16
    %178 = vector.broadcast %cst_95 : bf16 to vector<32x256xbf16>
    %179 = arith.addf %178, %177 : vector<32x256xbf16>
    %180 = arith.divf %178, %179 : vector<32x256xbf16>
    %181 = arith.extf %180 : vector<32x256xbf16> to vector<32x256xf32>
    %182 = arith.mulf %174, %181 : vector<32x256xf32>
    %cst_96 = arith.constant dense<0.000000e+00> : vector<256xf32>
    %183 = vector.multi_reduction <add>, %182, %cst_96 [0] : vector<32x256xf32> to vector<256xf32>
    %184 = vector.shape_cast %183 : vector<256xf32> to vector<1x256xf32>
    %c0_97 = arith.constant 0 : index
    %c1_98 = arith.constant 1 : index
    %c0_99 = arith.constant 0 : index
    %c0_100 = arith.constant 0 : index
    %185 = vector.load %arg2[%c0_97, %c1_98, %c0_99, %c0_100] : memref<1x2x32x256xbf16, #tpu.memory_space<vmem>>, vector<1x1x32x256xbf16>
    %186 = vector.shape_cast %185 : vector<1x1x32x256xbf16> to vector<32x256xbf16>
    %cst_101 = arith.constant dense<0.000000e+00> : vector<32x256xf32>
    %187 = tpu.matmul %186, %171, %cst_101 {dimension_numbers = #tpu.dot_dimension_numbers<[1], [0], [0], [1], [0, 0, 1, 1], [], []>} : vector<32x256xbf16>, vector<256x256xbf16>, vector<32x256xf32> -> vector<32x256xf32>
    %188 = arith.truncf %187 : vector<32x256xf32> to vector<32x256xbf16>
    %189 = arith.negf %188 : vector<32x256xbf16>
    %190 = math.exp %189 : vector<32x256xbf16>
    %cst_102 = arith.constant 1.000000e+00 : bf16
    %191 = vector.broadcast %cst_102 : bf16 to vector<32x256xbf16>
    %192 = arith.addf %191, %190 : vector<32x256xbf16>
    %193 = arith.divf %191, %192 : vector<32x256xbf16>
    %194 = arith.extf %193 : vector<32x256xbf16> to vector<32x256xf32>
    %195 = arith.mulf %187, %194 : vector<32x256xf32>
    %cst_103 = arith.constant dense<0.000000e+00> : vector<256xf32>
    %196 = vector.multi_reduction <add>, %195, %cst_103 [0] : vector<32x256xf32> to vector<256xf32>
    %197 = vector.shape_cast %196 : vector<256xf32> to vector<1x256xf32>
    %198 = tpu.concatenate %184, %197 in 0 : vector<1x256xf32>, vector<1x256xf32> -> vector<2x256xf32>
    %c0_104 = arith.constant 0 : index
    %c0_105 = arith.constant 0 : index
    %c0_106 = arith.constant 0 : index
    %199 = vector.load %arg4[%c0_104, %c0_105, %c0_106] : memref<1x2x1792xf32, #tpu.memory_space<vmem>>, vector<1x2x1792xf32>
    %200 = vector.shape_cast %199 : vector<1x2x1792xf32> to vector<2x1792xf32>
    %201 = tpu.concatenate %30, %58, %86, %114, %142, %170, %198 in 1 : vector<2x256xf32>, vector<2x256xf32>, vector<2x256xf32>, vector<2x256xf32>, vector<2x256xf32>, vector<2x256xf32>, vector<2x256xf32> -> vector<2x1792xf32>
    %202 = arith.addf %200, %201 : vector<2x1792xf32>
    %c0_107 = arith.constant 0 : index
    %c0_108 = arith.constant 0 : index
    %c0_109 = arith.constant 0 : index
    %203 = vector.load %arg4[%c0_107, %c0_108, %c0_109] : memref<1x2x1792xf32, #tpu.memory_space<vmem>>, vector<1x2x1792xf32>
    %204 = vector.shape_cast %203 : vector<1x2x1792xf32> to vector<2x1792xf32>
    %205 = vector.shape_cast %202 : vector<2x1792xf32> to vector<1x2x1792xf32>
    tpu.vector_store %arg4[%c0_107, %c0_108, %c0_109], %205 {strides = array<i32>} : memref<1x2x1792xf32, #tpu.memory_space<vmem>>, vector<1x2x1792xf32>,
    return
  }
  func.func @transform_0(%arg0: i32, %arg1: i32) -> (i32, i32, i32, i32) {
    %c0_i32 = arith.constant 0 : i32
    %c0_i32_0 = arith.constant 0 : i32
    %c0_i32_1 = arith.constant 0 : i32
    return %arg0, %c0_i32, %arg1, %c0_i32_0 : i32, i32, i32, i32
  }
  func.func @transform_1(%arg0: i32, %arg1: i32) -> (i32, i32) {
    %c0_i32 = arith.constant 0 : i32
    %c0_i32_0 = arith.constant 0 : i32
    %c0_i32_1 = arith.constant 0 : i32
    return %c0_i32, %c0_i32_0 : i32, i32
  }
  func.func @transform_2(%arg0: i32, %arg1: i32) -> (i32, i32, i32) {
    %c0_i32 = arith.constant 0 : i32
    %c0_i32_0 = arith.constant 0 : i32
    %c0_i32_1 = arith.constant 0 : i32
    return %arg0, %c0_i32, %c0_i32_0 : i32, i32, i32
  }
}

module attributes {stable_mosaic.version = 11 : i64} {
  func.func @kernel(%arg0: memref<2x1792xf32, #tpu.memory_space<vmem>>, %arg1: memref<1792x128xbf16, #tpu.memory_space<vmem>>, %arg2: memref<1x128xf32, #tpu.memory_space<vmem>>, %arg3: memref<2x128xf32, #tpu.memory_space<vmem>>) attributes {dimension_semantics = [], scalar_prefetch = 0 : i64, scratch_operands = 0 : i64, tpu.core_type = #tpu.core_type<tc>} {
    %c0 = arith.constant 0 : index
    %c0_0 = arith.constant 0 : index
    %0 = vector.load %arg0[%c0, %c0_0] : memref<2x1792xf32, #tpu.memory_space<vmem>>, vector<2x1792xf32>
    %1 = arith.truncf %0 : vector<2x1792xf32> to vector<2x1792xbf16>
    %c0_1 = arith.constant 0 : index
    %c0_2 = arith.constant 0 : index
    %2 = vector.load %arg1[%c0_1, %c0_2] : memref<1792x128xbf16, #tpu.memory_space<vmem>>, vector<1792x128xbf16>
    %cst = arith.constant dense<0.000000e+00> : vector<2x128xf32>
    %3 = tpu.matmul %1, %2, %cst {dimension_numbers = #tpu.dot_dimension_numbers<[1], [0], [0], [1], [0, 0, 1, 1], [], []>} : vector<2x1792xbf16>, vector<1792x128xbf16>, vector<2x128xf32> -> vector<2x128xf32>
    %c0_3 = arith.constant 0 : index
    %c0_4 = arith.constant 0 : index
    %4 = vector.load %arg2[%c0_3, %c0_4] : memref<1x128xf32, #tpu.memory_space<vmem>>, vector<1x128xf32>
    %5 = vector.broadcast %4 : vector<1x128xf32> to vector<2x128xf32>
    %6 = arith.addf %3, %5 : vector<2x128xf32>
    %c0_5 = arith.constant 0 : index
    %c0_6 = arith.constant 0 : index
    %7 = vector.load %arg3[%c0_5, %c0_6] : memref<2x128xf32, #tpu.memory_space<vmem>>, vector<2x128xf32>
    tpu.vector_store %arg3[%c0_5, %c0_6], %6 {strides = array<i32>} : memref<2x128xf32, #tpu.memory_space<vmem>>, vector<2x128xf32>,
    return
  }
}

</mosaic_0001>

<bundles_post_ra>
// kernel: lyft_model_forward.3
= control target key start
LH: loop header
LB: loop body
LE: loop exit
PB: predicated region body
PF: predicated region fallthrough
CT: control target
= control target key end

     0   :  { %v28_v27 = vlaneseq  ;;  %v1716_v35 = vmov 1983009808   ;;  %s2100_s0 = inlined_call_operand.vmem [shape: f32[2,1792], index: 0, kind: input, shape index: {}]   ;;  %s2101_s1 = inlined_call_operand.vmem [shape: bf16[1792,128], index: 1, kind: input, shape index: {}]   ;;  %s2102_s2 = inlined_call_operand.vmem [shape: f32[1,128], index: 2, kind: input, shape index: {}]   ;;  %s2103_s3 = inlined_call_operand.hbm [shape: f32[2,128], index: 3, kind: output, shape index: {}]  }
   0x1   :  { %v1579_v0 = vld [vmem:[%s2101_s1 + $0x78] sm:$0xff]   ;;  %v1583_v4 = vld [vmem:[%s2101_s1 + $0x70] sm:$0xff]   ;;  %v1587_v8 = vld [vmem:[%s2101_s1 + $0x68] sm:$0xff]   ;;  %v26_v36 = vunpack.c.l.s4 %v1716_v35 }
   0x2   :  { %v1580_v1 = vld [vmem:[%s2101_s1 + $0x38] sm:$0xff]   ;;  %1423 = vmatprep.subr.bf16.mxu0 %v1579_v0  ;;  %v1584_v5 = vld [vmem:[%s2101_s1 + $0x30] sm:$0xff]   ;;  %v1588_v9 = vld [vmem:[%s2101_s1 + $0x28] sm:$0xff]   ;;  %v29_v32 = vshrl.u32 %v28_v27, 7 }
   0x3   :  { %v1581_v2 = vld [vmem:[%s2101_s1 + $0xf8] sm:$0xff]   ;;  %1424 = vmatpush3.bf16.msra.mxu0 %v1580_v1  ;;  %v1585_v6 = vld [vmem:[%s2101_s1 + $0xf0] sm:$0xff]   ;;  %v1589_v10 = vld [vmem:[%s2101_s1 + $0xe8] sm:$0xff]   ;;  %v27_v38 = vunpack.c.0.s8 %v26_v36 }
   0x4   :  { %v1582_v3 = vld [vmem:[%s2101_s1 + $0xb8] sm:$0xff]   ;;  %1445 = vmatprep.subr.bf16.mxu1 %v1581_v2  ;;  %1425 = vmatprep.subr.bf16.mxu0 %v1583_v4  ;;  %v1586_v7 = vld [vmem:[%s2101_s1 + $0xb0] sm:$0xff]   ;;  %v1590_v11 = vld [vmem:[%s2101_s1 + $0xa8] sm:$0xff]  }
   0x5   :  { %1446 = vmatpush3.bf16.msra.mxu1 %v1582_v3  ;;  %v1591_v12 = vld [vmem:[%s2101_s1 + $0x60] sm:$0xff]   ;;  %v1595_v16 = vld [vmem:[%s2101_s1 + $0x58] sm:$0xff]   ;;  %v1599_v20 = vld [vmem:[%s2101_s1 + $0x50] sm:$0xff]   ;;  %v1843_v41 = vsub.s32 %v27_v38, %v29_v32 }
   0x6   :  { %1447 = vmatprep.subr.bf16.mxu1 %v1585_v6  ;;  %v1592_v13 = vld [vmem:[%s2101_s1 + $0x20] sm:$0xff]   ;;  %v1596_v17 = vld [vmem:[%s2101_s1 + $0x18] sm:$0xff]   ;;  %v1600_v21 = vld [vmem:[%s2101_s1 + $0x10] sm:$0xff]  }
   0x7   :  { %1426 = vmatpush3.bf16.msra.mxu0 %v1584_v5  ;;  %v1593_v14 = vld [vmem:[%s2101_s1 + $0xe0] sm:$0xff]   ;;  %v1597_v18 = vld [vmem:[%s2101_s1 + $0xd8] sm:$0xff]   ;;  %v1601_v22 = vld [vmem:[%s2101_s1 + $0xd0] sm:$0xff]  }
   0x8   :  { %1427 = vmatprep.subr.bf16.mxu0 %v1587_v8  ;;  %v1594_v15 = vld [vmem:[%s2101_s1 + $0xa0] sm:$0xff]   ;;  %v1598_v19 = vld [vmem:[%s2101_s1 + $0x98] sm:$0xff]   ;;  %v1602_v23 = vld [vmem:[%s2101_s1 + $0x90] sm:$0xff]  }
   0x9   :  { %1448 = vmatpush3.bf16.msra.mxu1 %v1586_v7  ;;  %v1603_v24 = vld [vmem:[%s2101_s1 + $0x48] sm:$0xff]   ;;  %v1607_v29 = vld [vmem:[%s2101_s1 + $0x40] sm:$0xff]   ;;  %v1611_v37 = vld [vmem:[%s2101_s1 + $0x178] sm:$0xff]  }
   0xa   :  { %1449 = vmatprep.subr.bf16.mxu1 %v1589_v10  ;;  %v1604_v25 = vld [vmem:[%s2101_s1 + $0x8] sm:$0xff]   ;;  %v1608_v30 = vld [vmem:[%s2101_s1] sm:$0xff]   ;;  %v1614_v40 = vld [vmem:[%s2101_s1 + $0x1f8] sm:$0xff]  }
   0xb   :  { %1428 = vmatpush3.bf16.msra.mxu0 %v1588_v9  ;;  %v1605_v26 = vld [vmem:[%s2101_s1 + $0xc8] sm:$0xff]   ;;  %v1609_v31 = vld [vmem:[%s2101_s1 + $0xc0] sm:$0xff]   ;;  %v1613_v46 = vld [vmem:[%s2101_s1 + $0x138] sm:$0xff]  }
   0xc   :  { %1429 = vmatprep.subr.bf16.mxu0 %v1591_v12  ;;  %v1606_v28 = vld [vmem:[%s2101_s1 + $0x88] sm:$0xff]   ;;  %v16_v33 = vld [vmem:[%s2100_s0] sm:$0xff]  ;;  %v1615_v49 = vld [vmem:[%s2101_s1 + $0x1b8] sm:$0xff]  }
   0xd   :  { %1450 = vmatpush3.bf16.msra.mxu1 %v1590_v11  ;;  %v1610_v34 = vld [vmem:[%s2101_s1 + $0x80] sm:$0xff]   ;;  %v24_v39 = vcombine.high %v16_v33, %v16_v33  ;;  %v31_v42 = vrot.slane %v16_v33, %v1843_v41  ;;  %v1616_v52 = vld [vmem:[%s2101_s1 + $0x170] sm:$0xff]   ;;  %v1620_v56 = vld [vmem:[%s2101_s1 + $0x168] sm:$0xff]  }
   0xe   :  { %1451 = vmatprep.subr.bf16.mxu1 %v1593_v14  ;;  %v1618_v53 = vld [vmem:[%s2101_s1 + $0x1f0] sm:$0xff]   ;;  %v1622_v57 = vld [vmem:[%s2101_s1 + $0x1e8] sm:$0xff]   ;;  %v1624_v60 = vld [vmem:[%s2101_s1 + $0x160] sm:$0xff]  }
   0xf   :  { %1430 = vmatpush3.bf16.msra.mxu0 %v1592_v13  ;;  %v38_v43 = vrot.slane %v24_v39, %v1843_v41  ;;  %v39_v44 = vcombine.high %v31_v42, %v31_v42  ;;  %v97_v47 = vpack.c.bf16 %v31_v42, %v31_v42  ;;  %v1617_v54 = vld [vmem:[%s2101_s1 + $0x130] sm:$0xff]   ;;  %v1621_v58 = vld [vmem:[%s2101_s1 + $0x128] sm:$0xff]   ;;  %v1626_v61 = vld [vmem:[%s2101_s1 + $0x1e0] sm:$0xff]  }
  0x10   :  { %1431 = vmatprep.subr.bf16.mxu0 %v1595_v16  ;;  %v1619_v55 = vld [vmem:[%s2101_s1 + $0x1b0] sm:$0xff]   ;;  %v1623_v59 = vld [vmem:[%s2101_s1 + $0x1a8] sm:$0xff]   ;;  %v1625_v62 = vld [vmem:[%s2101_s1 + $0x120] sm:$0xff]  }
  0x11   :  { %1452 = vmatpush3.bf16.msra.mxu1 %v1594_v15  ;;  %v40_v45 = vcombine.high %v38_v43, %v38_v43  ;;  %v99_v48 = vpack.c.bf16 %v38_v43, %v38_v43  ;;  %v98_v50 = vpack.c.bf16 %v39_v44, %v39_v44  ;;  %v1627_v63 = vld [vmem:[%s2101_s1 + $0x1a0] sm:$0xff]   ;;  %v1628_v0 = vld [vmem:[%s2101_s1 + $0x158] sm:$0xff]   ;;  %v1632_v4 = vld [vmem:[%s2101_s1 + $0x150] sm:$0xff]  }
  0x12   :  { %1453 = vmatprep.subr.bf16.mxu1 %v1597_v18  ;;  %v1630_v1 = vld [vmem:[%s2101_s1 + $0x1d8] sm:$0xff]   ;;  %v1634_v5 = vld [vmem:[%s2101_s1 + $0x1d0] sm:$0xff]   ;;  %v1636_v8 = vld [vmem:[%s2101_s1 + $0x148] sm:$0xff]  }
  0x13   :  { %1432 = vmatpush3.bf16.msra.mxu0 %v1596_v17  ;;  %v100_v51 = vpack.c.bf16 %v40_v45, %v40_v45  ;;  %1046 = vmatprep.mubr.bf16.mxu0 %v98_v50  ;;  %v1629_v2 = vld [vmem:[%s2101_s1 + $0x118] sm:$0xff]   ;;  %v1633_v6 = vld [vmem:[%s2101_s1 + $0x110] sm:$0xff]   ;;  %v1638_v9 = vld [vmem:[%s2101_s1 + $0x1c8] sm:$0xff]  }
  0x14   :  { %1433 = vmatprep.subr.bf16.mxu0 %v1599_v20  ;;  %v1631_v3 = vld [vmem:[%s2101_s1 + $0x198] sm:$0xff]   ;;  %v1635_v7 = vld [vmem:[%s2101_s1 + $0x190] sm:$0xff]   ;;  %v17_v10 = vld [vmem:[%s2100_s0 + $0x8] sm:$0xff] }
  0x15   :  { %1454 = vmatpush3.bf16.msra.mxu1 %v1598_v19  ;;  %1086 = vmatprep.mubr.bf16.mxu1 %v100_v51  ;;  %v1637_v11 = vld [vmem:[%s2101_s1 + $0x108] sm:$0xff]   ;;  %v48_v12 = vrot.slane %v17_v10, %v1843_v41  ;;  %v41_v13 = vcombine.high %v17_v10, %v17_v10  ;;  %v1640_v15 = vld [vmem:[%s2101_s1 + $0x140] sm:$0xff]   ;;  %v1650_v32 = vld [vmem:[%s2101_s1 + $0x230] sm:$0xff]  }
  0x16   :  { %1455 = vmatprep.subr.bf16.mxu1 %v1601_v22  ;;  %v1639_v14 = vld [vmem:[%s2101_s1 + $0x188] sm:$0xff]   ;;  %v1642_v18 = vld [vmem:[%s2101_s1 + $0x1c0] sm:$0xff]   ;;  %v1652_v33 = vld [vmem:[%s2101_s1 + $0x2b0] sm:$0xff]  }
  0x17   :  { %1434 = vmatpush3.bf16.msra.mxu0 %v1600_v21  ;;  %v56_v16 = vcombine.high %v48_v12, %v48_v12  ;;  %v55_v17 = vrot.slane %v41_v13, %v1843_v41  ;;  %v1641_v19 = vld [vmem:[%s2101_s1 + $0x100] sm:$0xff]   ;;  %v101_v27 = vpack.c.bf16 %v48_v12, %v48_v12  ;;  %v1655_v35 = vld [vmem:[%s2101_s1 + $0x2e8] sm:$0xff]   ;;  %v1661_v43 = vld [vmem:[%s2101_s1 + $0x258] sm:$0xff]  }
  0x18   :  { %1435 = vmatprep.subr.bf16.mxu0 %v1603_v24  ;;  %v1643_v22 = vld [vmem:[%s2101_s1 + $0x180] sm:$0xff]   ;;  %v1654_v36 = vld [vmem:[%s2101_s1 + $0x228] sm:$0xff]   ;;  %v1663_v44 = vld [vmem:[%s2101_s1 + $0x2d8] sm:$0xff]  }
  0x19   :  { %1456 = vmatpush3.bf16.msra.mxu1 %v1602_v23  ;;  %v102_v20 = vpack.c.bf16 %v56_v16, %v56_v16  ;;  %v57_v21 = vcombine.high %v55_v17, %v55_v17  ;;  %v1644_v23 = vld [vmem:[%s2101_s1 + $0x278] sm:$0xff]   ;;  %v1657_v38 = vld [vmem:[%s2101_s1 + $0x260] sm:$0xff]   ;;  %v1668_v50 = vld [vmem:[%s2101_s1 + $0x290] sm:$0xff]  }
  0x1a   :  { %1457 = vmatprep.subr.bf16.mxu1 %v1605_v26  ;;  %v1646_v26 = vld [vmem:[%s2101_s1 + $0x238] sm:$0xff]   ;;  %v1659_v39 = vld [vmem:[%s2101_s1 + $0x2e0] sm:$0xff]   ;;  %v1669_v51 = vld [vmem:[%s2101_s1 + $0x248] sm:$0xff]  }
  0x1b   :  { %1436 = vmatpush3.bf16.msra.mxu0 %v1604_v25  ;;  %v104_v24 = vpack.c.bf16 %v57_v21, %v57_v21  ;;  %v1647_v25 = vld [vmem:[%s2101_s1 + $0x2f8] sm:$0xff]   ;;  %v1660_v42 = vld [vmem:[%s2101_s1 + $0x2a0] sm:$0xff]   ;;  %v1683_v10 = vld [vmem:[%s2101_s1 + $0x328] sm:$0xff]  }
  0x1c   :  { %1437 = vmatprep.subr.bf16.mxu0 %v1607_v29  ;;  %v1648_v29 = vld [vmem:[%s2101_s1 + $0x2b8] sm:$0xff]  }
  0x1d   :  { %1458 = vmatpush3.bf16.msra.mxu1 %v1606_v28  ;;  %v103_v28 = vpack.c.bf16 %v55_v17, %v55_v17  ;;  %v1662_v45 = vld [vmem:[%s2101_s1 + $0x218] sm:$0xff]  }
  0x1e   :  { %1459 = vmatprep.subr.bf16.mxu1 %v1609_v31  ;;  %v1651_v31 = vld [vmem:[%s2101_s1 + $0x2f0] sm:$0xff]  }
  0x1f   :  { %1438 = vmatpush3.bf16.msra.mxu0 %v1608_v30  ;;  %v1649_v30 = vld [vmem:[%s2101_s1 + $0x270] sm:$0xff]  }
  0x20   :  { %1467 = vmatprep.subr.bf16.mxu0 %v1611_v37  ;;  %v1656_v37 = vld [vmem:[%s2101_s1 + $0x2a8] sm:$0xff]  }
  0x21   :  { %1460 = vmatpush3.bf16.msra.mxu1 %v1610_v34  ;;  %v1653_v34 = vld [vmem:[%s2101_s1 + $0x268] sm:$0xff]  }
  0x22   :  { %1489 = vmatprep.subr.bf16.mxu1 %v1614_v40  ;;  %1047 = vmatmul.mubr.bf16.vlgmr.msra.gmra.mxu0 %v97_v47  ;;  %v1658_v40 = vld [vmem:[%s2101_s1 + $0x220] sm:$0xff]   ;;  %v1665_v47 = vld [vmem:[%s2101_s1 + $0x250] sm:$0xff]  }
  0x23   :  { %1468 = vmatpush3.bf16.msra.mxu0 %v1613_v46  ;;  %1126 = vmatprep.mubr.bf16.mxu0 %v102_v20  ;;  %v1664_v46 = vld [vmem:[%s2101_s1 + $0x298] sm:$0xff]  }
  0x24   :  { %1087 = vmatmul.mubr.bf16.vlgmr.msra.gmra.mxu1 %v99_v48  ;;  %1469 = vmatprep.subr.bf16.mxu0 %v1616_v52  ;;  %v1667_v48 = vld [vmem:[%s2101_s1 + $0x2d0] sm:$0xff]   ;;  %v1671_v52 = vld [vmem:[%s2101_s1 + $0x2c8] sm:$0xff]  }
  0x25   :  { %1490 = vmatpush3.bf16.msra.mxu1 %v1615_v49  ;;  %1166 = vmatprep.mubr.bf16.mxu1 %v104_v24  ;;  %v1666_v49 = vld [vmem:[%s2101_s1 + $0x210] sm:$0xff]  }
  0x26   :  { %1491 = vmatprep.subr.bf16.mxu1 %v1618_v53  ;;  %v18_v53 = vld [vmem:[%s2100_s0 + $0x10] sm:$0xff] }
  0x27   :  { %1470 = vmatpush3.bf16.msra.mxu0 %v1617_v54  ;;  %v1670_v54 = vld [vmem:[%s2101_s1 + $0x208] sm:$0xff]  }
  0x28   :  { %1471 = vmatprep.subr.bf16.mxu0 %v1620_v56  ;;  %v58_v56 = vcombine.high %v18_v53, %v18_v53 }
  0x29   :  { %1492 = vmatpush3.bf16.msra.mxu1 %v1619_v55  ;;  %v65_v55 = vrot.slane %v18_v53, %v1843_v41 }
  0x2a   :  { %1493 = vmatprep.subr.bf16.mxu1 %v1622_v57  ;;  %v1672_v57 = vld [vmem:[%s2101_s1 + $0x288] sm:$0xff]  }
  0x2b   :  { %1472 = vmatpush3.bf16.msra.mxu0 %v1621_v58  ;;  %v1673_v58 = vld [vmem:[%s2101_s1 + $0x240] sm:$0xff]  }
  0x2c   :  { %1473 = vmatprep.subr.bf16.mxu0 %v1624_v60  ;;  %v72_v60 = vrot.slane %v58_v56, %v1843_v41  ;;  %v1677_v41 = vld [vmem:[%s2101_s1 + $0x378] sm:$0xff]  }
  0x2d   :  { %1494 = vmatpush3.bf16.msra.mxu1 %v1623_v59  ;;  %v73_v59 = vcombine.high %v65_v55, %v65_v55 }
  0x2e   :  { %1495 = vmatprep.subr.bf16.mxu1 %v1626_v61  ;;  %v1675_v61 = vld [vmem:[%s2101_s1 + $0x2c0] sm:$0xff]  }
  0x2f   :  { %1474 = vmatpush3.bf16.msra.mxu0 %v1625_v62  ;;  %v106_v62 = vpack.c.bf16 %v73_v59, %v73_v59 }
  0x30   :  { %1475 = vmatprep.subr.bf16.mxu0 %v1628_v0  ;;  %v1674_v0 = vld [vmem:[%s2101_s1 + $0x200] sm:$0xff]  }
  0x31   :  { %1496 = vmatpush3.bf16.msra.mxu1 %v1627_v63  ;;  %v74_v63 = vcombine.high %v72_v60, %v72_v60 }
  0x32   :  { %1497 = vmatprep.subr.bf16.mxu1 %v1630_v1  ;;  %v1676_v1 = vld [vmem:[%s2101_s1 + $0x280] sm:$0xff]  }
  0x33   :  { %1476 = vmatpush3.bf16.msra.mxu0 %v1629_v2  ;;  %v108_v2 = vpack.c.bf16 %v74_v63, %v74_v63 }
  0x34   :  { %1477 = vmatprep.subr.bf16.mxu0 %v1632_v4  ;;  %v107_v4 = vpack.c.bf16 %v72_v60, %v72_v60 }
  0x35   :  { %1498 = vmatpush3.bf16.msra.mxu1 %v1631_v3  ;;  %v105_v3 = vpack.c.bf16 %v65_v55, %v65_v55 }
  0x36   :  { %1499 = vmatprep.subr.bf16.mxu1 %v1634_v5  ;;  %v1679_v5 = vld [vmem:[%s2101_s1 + $0x338] sm:$0xff]  }
  0x37   :  { %1478 = vmatpush3.bf16.msra.mxu0 %v1633_v6  ;;  %v1680_v6 = vld [vmem:[%s2101_s1 + $0x370] sm:$0xff]  }
  0x38   :  { %1479 = vmatprep.subr.bf16.mxu0 %v1636_v8  ;;  %v1682_v8 = vld [vmem:[%s2101_s1 + $0x368] sm:$0xff]  }
  0x39   :  { %1500 = vmatpush3.bf16.msra.mxu1 %v1635_v7  ;;  %v1681_v7 = vld [vmem:[%s2101_s1 + $0x330] sm:$0xff]  }
  0x3a   :  { %1501 = vmatprep.subr.bf16.mxu1 %v1638_v9  ;;  %v1309_v9 = vld.sshfl [vmem:[%s2100_s0 + $0x18] sm:$0x33 pattern:$0x76325410] }
  0x3b   :  { %1480 = vmatpush3.bf16.msra.mxu0 %v1637_v11  ;;  %v82_v11 = vcombine.high %v1309_v9, %v1309_v9 }
  0x3c   :  { %1481 = vmatprep.subr.bf16.mxu0 %v1640_v15 }
  0x3d   :  { %1502 = vmatpush3.bf16.msra.mxu1 %v1639_v14 }
  0x3e   :  { %1503 = vmatprep.subr.bf16.mxu1 %v1642_v18 }
  0x3f   :  { %1482 = vmatpush3.bf16.msra.mxu0 %v1641_v19 }
  0x40   :  { %1511 = vmatprep.subr.bf16.mxu0 %v1644_v23 }
  0x41   :  { %1504 = vmatpush3.bf16.msra.mxu1 %v1643_v22 }
  0x42   :  { %1533 = vmatprep.subr.bf16.mxu1 %v1647_v25  ;;  %1127 = vmatmul.mubr.bf16.vlgmr.msra.gmra.mxu0 %v101_v27 }
  0x43   :  { %1512 = vmatpush3.bf16.msra.mxu0 %v1646_v26  ;;  %1206 = vmatprep.mubr.bf16.mxu0 %v106_v62 }
  0x44   :  { %1167 = vmatmul.mubr.bf16.vlgmr.msra.gmra.mxu1 %v103_v28  ;;  %1513 = vmatprep.subr.bf16.mxu0 %v1649_v30 }
  0x45   :  { %1534 = vmatpush3.bf16.msra.mxu1 %v1648_v29  ;;  %1246 = vmatprep.mubr.bf16.mxu1 %v108_v2 }
  0x46   :  { %1535 = vmatprep.subr.bf16.mxu1 %v1651_v31 }
  0x47   :  { %1514 = vmatpush3.bf16.msra.mxu0 %v1650_v32 }
  0x48   :  { %1515 = vmatprep.subr.bf16.mxu0 %v1653_v34 }
  0x49   :  { %1536 = vmatpush3.bf16.msra.mxu1 %v1652_v33 }
  0x4a   :  { %1537 = vmatprep.subr.bf16.mxu1 %v1655_v35 }
  0x4b   :  { %1516 = vmatpush3.bf16.msra.mxu0 %v1654_v36 }
  0x4c   :  { %1517 = vmatprep.subr.bf16.mxu0 %v1657_v38 }
  0x4d   :  { %1538 = vmatpush3.bf16.msra.mxu1 %v1656_v37 }
  0x4e   :  { %1539 = vmatprep.subr.bf16.mxu1 %v1659_v39 }
  0x4f   :  { %1518 = vmatpush3.bf16.msra.mxu0 %v1658_v40 }
  0x50   :  { %1519 = vmatprep.subr.bf16.mxu0 %v1661_v43 }
  0x51   :  { %1540 = vmatpush3.bf16.msra.mxu1 %v1660_v42 }
  0x52   :  { %1541 = vmatprep.subr.bf16.mxu1 %v1663_v44 }
  0x53   :  { %1520 = vmatpush3.bf16.msra.mxu0 %v1662_v45 }
  0x54   :  { %1521 = vmatprep.subr.bf16.mxu0 %v1665_v47 }
  0x55   :  { %1542 = vmatpush3.bf16.msra.mxu1 %v1664_v46 }
  0x56   :  { %1543 = vmatprep.subr.bf16.mxu1 %v1667_v48 }
  0x57   :  { %1522 = vmatpush3.bf16.msra.mxu0 %v1666_v49 }
  0x58   :  { %1523 = vmatprep.subr.bf16.mxu0 %v1669_v51 }
  0x59   :  { %1544 = vmatpush3.bf16.msra.mxu1 %v1668_v50 }
  0x5a   :  { %1545 = vmatprep.subr.bf16.mxu1 %v1671_v52 }
  0x5b   :  { %1524 = vmatpush3.bf16.msra.mxu0 %v1670_v54 }
  0x5c   :  { %1525 = vmatprep.subr.bf16.mxu0 %v1673_v58 }
  0x5d   :  { %1546 = vmatpush3.bf16.msra.mxu1 %v1672_v57 }
  0x5e   :  { %1547 = vmatprep.subr.bf16.mxu1 %v1675_v61 }
  0x5f   :  { %1526 = vmatpush3.bf16.msra.mxu0 %v1674_v0 }
  0x60   :  { %1555 = vmatprep.subr.bf16.mxu0 %v1677_v41 }
  0x61   :  { %1548 = vmatpush3.bf16.msra.mxu1 %v1676_v1 }
  0x62   :  { %1207 = vmatmul.mubr.bf16.vlgmr.msra.gmra.mxu0 %v105_v3 }
  0x63   :  { %1556 = vmatpush3.bf16.msra.mxu0 %v1679_v5 }
  0x64   :  { %1247 = vmatmul.mubr.bf16.vlgmr.msra.gmra.mxu1 %v107_v4  ;;  %1557 = vmatprep.subr.bf16.mxu0 %v1680_v6 }
  0x67   :  { %1558 = vmatpush3.bf16.msra.mxu0 %v1681_v7 }
  0x68   :  { %8 = vsyncpa [#allocation3], 0  ;;  %1559 = vmatprep.subr.bf16.mxu0 %v1682_v8  ;;  %v1684_v12 = vld [vmem:[%s2101_s1 + $0x360] sm:$0xff]   ;;  %v110_v13 = vpack.c.bf16 %v82_v11, %v82_v11  ;;  %v1686_v15 = vld [vmem:[%s2101_s1 + $0x358] sm:$0xff]   ;;  %v109_v23 = vpack.c.bf16 %v1309_v9, %v1309_v9 }
  0x69   :  { %v1685_v14 = vld [vmem:[%s2101_s1 + $0x320] sm:$0xff]   ;;  %v1687_v16 = vld [vmem:[%s2101_s1 + $0x318] sm:$0xff]   ;;  %v1688_v17 = vld [vmem:[%s2101_s1 + $0x350] sm:$0xff]  }
  0x6a   :  { %1286 = vmatprep.mubr.bf16.mxu0 %v110_v13  ;;  %v1689_v18 = vld [vmem:[%s2101_s1 + $0x310] sm:$0xff]   ;;  %v1690_v19 = vld [vmem:[%s2101_s1 + $0x348] sm:$0xff]   ;;  %v1692_v21 = vld [vmem:[%s2101_s1 + $0x340] sm:$0xff]  }
  0x6b   :  { %1560 = vmatpush3.bf16.msra.mxu0 %v1683_v10  ;;  %v1691_v20 = vld [vmem:[%s2101_s1 + $0x308] sm:$0xff]   ;;  %v1693_v22 = vld [vmem:[%s2101_s1 + $0x300] sm:$0xff]   ;;  %s1717_s1 = smov [#allocation2]  }
  0x6c   :  { %1561 = vmatprep.subr.bf16.mxu0 %v1684_v12  ;;  %v1310_v26 = vld [vmem:[%s2102_s2] ss:$0 sm:$0xff]  ;;  %s1301_s2 = sshll.u32 %s1717_s1, 4  ;;  %s1302_s2 = int_to_ptr.vmem [resolvable:$true] %s1301_s2 }
  0x6d   :  { %s1694_s29 = scalar_lea.vmem %s1302_s2, 32  ;;  %p1699_p1 = scmp.lt.s32.totalorder %s1302_s2, %s1302_s2 }
  0x6e   :  { %p1695_p0 = scmp.ne.s32.totalorder %s1302_s2, %s1694_s29  ;;  %p1700_p2 = scmp.lt.s32.totalorder %s1694_s29, %s1694_s29 }
  0x6f   :  { %1562 = vmatpush3.bf16.msra.mxu0 %v1685_v14 }
  0x70   :  { %1563 = vmatprep.subr.bf16.mxu0 %v1686_v15  ;;  %p1701_p3 = por %p1700_p2, %p1699_p1 }
  0x72   :  { %p1702_p4 = pnand %p1701_p3, %p1695_p0 }
  0x73   :  { %1564 = vmatpush3.bf16.msra.mxu0 %v1687_v16 }
  0x74   :  { %1565 = vmatprep.subr.bf16.mxu0 %v1688_v17 }
  0x77   :  { %1566 = vmatpush3.bf16.msra.mxu0 %v1689_v18 }
  0x78   :  { %1567 = vmatprep.subr.bf16.mxu0 %v1690_v19 }
  0x7b   :  { %1568 = vmatpush3.bf16.msra.mxu0 %v1691_v20 }
  0x7c   :  { %1569 = vmatprep.subr.bf16.mxu0 %v1692_v21 }
  0x7f   :  { %1570 = vmatpush3.bf16.msra.mxu0 %v1693_v22 }
  0x82   :  { %1287 = vmatmul.mubr.bf16.vlgmr.msra.gmra.mxu0 %v109_v23 }
  0xe2   :  { %v1439_v24 = vpop.f32.mrf.mxu0 }
  0xe4   :  { %v1461_v25 = vpop.f32.mrf.mxu1  ;;  %v1440_v27 = vpop.f32.mrf.mxu0 }
  0xe5   :  { %v1441_v29 = vadd.f32 %v1440_v27, %v1439_v24 }
  0xe6   :  { %v1462_v28 = vpop.f32.mrf.mxu1  ;;  %v1442_v31 = vpop.f32.mrf.mxu0 }
  0xe7   :  { %v1463_v30 = vadd.f32 %v1462_v28, %v1461_v25  ;;  %v1049_v33 = vadd.f32 %v1441_v29, %v1310_v26 }
  0xe8   :  { %v1464_v32 = vpop.f32.mrf.mxu1  ;;  %v1443_v34 = vpop.f32.mrf.mxu0 }
  0xe9   :  { %v1089_v36 = vadd.f32 %v1463_v30, %v1049_v33 }
  0xea   :  { %v1465_v35 = vpop.f32.mrf.mxu1 }
 0x102   :  { %v1483_v37 = vpop.f32.mrf.mxu0 }
 0x104   :  { %v1505_v38 = vpop.f32.mrf.mxu1  ;;  %v1484_v39 = vpop.f32.mrf.mxu0 }
 0x105   :  { %v1485_v54 = vadd.f32 %v1484_v39, %v1483_v37 }
 0x106   :  { %v1506_v40 = vpop.f32.mrf.mxu1  ;;  %v1486_v42 = vpop.f32.mrf.mxu0 }
 0x107   :  { %v1129_v55 = vadd.f32 %v1485_v54, %v1089_v36  ;;  %v1507_v56 = vadd.f32 %v1506_v40, %v1505_v38 }
 0x108   :  { %v1508_v43 = vpop.f32.mrf.mxu1  ;;  %v1487_v44 = vpop.f32.mrf.mxu0 }
 0x109   :  { %v1169_v58 = vadd.f32 %v1507_v56, %v1129_v55 }
 0x10a   :  { %v1509_v45 = vpop.f32.mrf.mxu1 }
 0x122   :  { %v1527_v46 = vpop.f32.mrf.mxu0 }
 0x124   :  { %v1549_v47 = vpop.f32.mrf.mxu1  ;;  %v1528_v48 = vpop.f32.mrf.mxu0 }
 0x125   :  { %v1529_v57 = vadd.f32 %v1528_v48, %v1527_v46 }
 0x126   :  { %v1550_v49 = vpop.f32.mrf.mxu1  ;;  %v1530_v50 = vpop.f32.mrf.mxu0 }
 0x127   :  { %v1209_v59 = vadd.f32 %v1529_v57, %v1169_v58  ;;  %v1551_v60 = vadd.f32 %v1550_v49, %v1549_v47 }
 0x128   :  { %v1552_v51 = vpop.f32.mrf.mxu1  ;;  %v1531_v52 = vpop.f32.mrf.mxu0 }
 0x129   :  { %v1249_v63 = vadd.f32 %v1551_v60, %v1209_v59 }
 0x12a   :  { %v1553_v53 = vpop.f32.mrf.mxu1 }
 0x142   :  { %v1571_v61 = vpop.f32.mrf.mxu0 }
 0x144   :  { %v1572_v62 = vpop.f32.mrf.mxu0 }
 0x145   :  { %v1573_v0 = vadd.f32 %v1572_v62, %v1571_v61 }
 0x146   :  { %v1574_v1 = vpop.f32.mrf.mxu0 }
 0x147   :  { %v1289_v2 = vadd.f32 %v1573_v0, %v1249_v63 }
 0x148   :  { %v1575_v41 = vpop.f32.mrf.mxu0 }
 0x149   :  { %1294 = vst [vmem:[#allocation2] sm:$0x3] %v1289_v2 }
 0x14a   :  { %1705 = shalt.err (!%p1702_p4)
}
 0x14b   :  { %1304 = dma.vmem_to_hbm [thread:$0]  %s1302_s2, 32, %s2103_s3, [#allocation3]  }
 0x14c   :  { %1714 = dma.done.wait [#allocation3], 32  }
 0x14d   :  { %1715 = vsyncadd [#allocation3], 4294967264 }
 0x14e   :  { %1308 = vsyncpa [#allocation3], 1 }

// kernel: lyft_model_forward.2
= control target key start
LH: loop header
LB: loop body
LE: loop exit
PB: predicated region body
PF: predicated region fallthrough
CT: control target
= control target key end

     0   :  { %s4374_s9 = smov 0   ;;  %s4376_s10 = smov 0   ;;  %s5699_s0 = inlined_call_operand.vmem [shape: bf16[2,2,32,256], index: 0, kind: input, shape index: {}]   ;;  %s5700_s1 = inlined_call_operand.vmem [shape: bf16[256,1792], index: 1, kind: input, shape index: {}]   ;;  %s5701_s2 = inlined_call_operand.vmem [shape: f32[2,2,1792], index: 2, kind: output, shape index: {}]  }
   0x1   :  { %s4378_s11 = smov 0  }
   0x2 LB: > { %s24_s12 = sadd.s32 1, %s4351_s10  ;;  %p3423_p0 = scmp.ge.s32.totalorder %s4355_s11, 1  ;;  %s4355_s11 = sphi %s4378_s11, %s12_s11   ;;  %s4351_s10 = sphi %s4376_s10, %s5703_s10   ;;  %s4347_s9 = sphi %s4374_s9, %s5702_s9  }
   0x3   : > { %p26_p1 = scmp.ge.s32.totalorder %s24_s12, 2  ;;  %p132_p2 = scmp.lt.s32.totalorder %s4355_s11, 3 }
   0x5   : > { %s5705_s12 = smov (%p26_p1, %s24_s12), 0  ;;  %p133_p3 = pnand %p3423_p0, %p132_p2 }
   0x6   : > { %p160_p4 = scmp.lt.s32.totalorder (!%p133_p3), %s4347_s9, 1 }
   0x7   : > { %136 = sbr.rel (%p133_p3) target bundleno = 735 (0x2df), region = 28 }
   0xc   : > { %v3749_v0 = vld [vmem:[%s5700_s1 + $0x314] ss:$56 sps:$4 sm:$0xff]   ;;  %v3751_v1 = vld [vmem:[%s5700_s1 + $0x310] ss:$56 sps:$4 sm:$0xff]   ;;  %v3752_v2 = vld [vmem:[%s5700_s1 + $0x2a4] ss:$56 sps:$4 sm:$0xff]  }
   0xd   : > { %400 = vmatprep.subr.bf16.mxu0 %v3749_v0  ;;  %544 = vmatprep.subr.bf16.mxu1 %v3749_v0  ;;  %v3754_v3 = vld [vmem:[%s5700_s1 + $0x2a0] ss:$56 sps:$4 sm:$0xff]   ;;  %v3755_v4 = vld [vmem:[%s5700_s1 + $0x234] ss:$56 sps:$4 sm:$0xff]   ;;  %v3757_v5 = vld [vmem:[%s5700_s1 + $0x230] ss:$56 sps:$4 sm:$0xff]  }
   0xe   : > { %401 = vmatpush1.bf16.msra.mxu0 %v3751_v1  ;;  %545 = vmatpush1.bf16.msra.mxu1 %v3751_v1  ;;  %v3758_v6 = vld [vmem:[%s5700_s1 + $0x1c4] ss:$56 sps:$4 sm:$0xff]   ;;  %v3760_v7 = vld [vmem:[%s5700_s1 + $0x1c0] ss:$56 sps:$4 sm:$0xff]   ;;  %v3761_v8 = vld [vmem:[%s5700_s1 + $0x154] ss:$56 sps:$4 sm:$0xff]  }
   0xf   : > { %402 = vmatprep.subr.bf16.mxu0 %v3752_v2  ;;  %546 = vmatprep.subr.bf16.mxu1 %v3752_v2  ;;  %s5707_s9 = smov (!%p160_p4, %s4347_s9), 1  ;;  %v3763_v9 = vld [vmem:[%s5700_s1 + $0x150] ss:$56 sps:$4 sm:$0xff]   ;;  %v3764_v10 = vld [vmem:[%s5700_s1 + $0xe4] ss:$56 sps:$4 sm:$0xff]   ;;  %vm663_vm0 = vcmask 1040384  }
  0x10   : > { %s3721_s7 = sshll.u32 %s5707_s9, 6  ;;  %v3766_v11 = vld [vmem:[%s5700_s1 + $0xe0] ss:$56 sps:$4 sm:$0xff]   ;;  %v3767_v12 = vld [vmem:[%s5700_s1 + $0x74] ss:$56 sps:$4 sm:$0xff]   ;;  %s3722_s29 = smul.u32 28, %s5707_s9 }
  0x11   : > { %s4438_s16 = scalar_lea.vmem %s5699_s0, %s3721_s7  ;;  %v3769_v14 = vld [vmem:[%s5700_s1 + $0x70] ss:$56 sps:$4 sm:$0xff]   ;;  %v3770_v16 = vld [vmem:[%s5700_s1 + $0x4] ss:$56 sps:$4 sm:$0xff]   ;;  %v3772_v17 = vld [vmem:[%s5700_s1] ss:$56 sps:$4 sm:$0xff]  }
  0x12   : > { %403 = vmatpush1.bf16.msra.mxu0 %v3754_v3  ;;  %547 = vmatpush1.bf16.msra.mxu1 %v3754_v3  ;;  %v4444_v13 = vld [vmem:[%s4438_s16 + $0x4] ss:$8 sps:$4 sm:$0xff]   ;;  %v3775_v19 = vld [vmem:[%s5700_s1 + $0x690] ss:$56 sps:$4 sm:$0xff]   ;;  %v3778_v21 = vld [vmem:[%s5700_s1 + $0x620] ss:$56 sps:$4 sm:$0xff]   ;;  %s4891_s7 = scalar_lea.vmem %s5701_s2, %s3722_s29 }
  0x13   : > { %404 = vmatprep.subr.bf16.mxu0 %v3755_v4  ;;  %548 = vmatprep.subr.bf16.mxu1 %v3755_v4  ;;  %v4450_v15 = vld [vmem:[%s4438_s16 + $0x24] ss:$8 sps:$4 sm:$0xff]   ;;  %v3781_v23 = vld [vmem:[%s5700_s1 + $0x5b0] ss:$56 sps:$4 sm:$0xff]   ;;  %v3784_v25 = vld [vmem:[%s5700_s1 + $0x540] ss:$56 sps:$4 sm:$0xff]  }
  0x14   : > { %432 = vmatprep.mubr.bf16.mxu0 %v4444_v13  ;;  %576 = vmatprep.mubr.bf16.mxu1 %v4450_v15  ;;  %v3773_v18 = vld [vmem:[%s5700_s1 + $0x694] ss:$56 sps:$4 sm:$0xff]   ;;  %v3776_v20 = vld [vmem:[%s5700_s1 + $0x624] ss:$56 sps:$4 sm:$0xff]   ;;  %v3787_v27 = vld [vmem:[%s5700_s1 + $0x4d0] ss:$56 sps:$4 sm:$0xff]  }
  0x15   : > { %v3779_v22 = vld [vmem:[%s5700_s1 + $0x5b4] ss:$56 sps:$4 sm:$0xff]   ;;  %v3782_v24 = vld [vmem:[%s5700_s1 + $0x544] ss:$56 sps:$4 sm:$0xff]   ;;  %v3790_v29 = vld [vmem:[%s5700_s1 + $0x460] ss:$56 sps:$4 sm:$0xff]  }
  0x16   : > { %405 = vmatpush1.bf16.msra.mxu0 %v3757_v5  ;;  %549 = vmatpush1.bf16.msra.mxu1 %v3757_v5  ;;  %v3785_v26 = vld [vmem:[%s5700_s1 + $0x4d4] ss:$56 sps:$4 sm:$0xff]   ;;  %v3788_v28 = vld [vmem:[%s5700_s1 + $0x464] ss:$56 sps:$4 sm:$0xff]   ;;  %v3793_v31 = vld [vmem:[%s5700_s1 + $0x3f0] ss:$56 sps:$4 sm:$0xff]  }
  0x17   : > { %406 = vmatprep.subr.bf16.mxu0 %v3758_v6  ;;  %550 = vmatprep.subr.bf16.mxu1 %v3758_v6  ;;  %v3791_v30 = vld [vmem:[%s5700_s1 + $0x3f4] ss:$56 sps:$4 sm:$0xff]   ;;  %v3794_v32 = vld [vmem:[%s5700_s1 + $0x384] ss:$56 sps:$4 sm:$0xff]   ;;  %v3796_v33 = vld [vmem:[%s5700_s1 + $0x380] ss:$56 sps:$4 sm:$0xff]  }
  0x18   : > { %v3805_v34 = vld [vmem:[%s5700_s1 + $0x31c] ss:$56 sps:$4 sm:$0xff]   ;;  %v4512_v35 = vld [vmem:[%s4438_s16] ss:$8 sps:$4 sm:$0xff]   ;;  %v3803_v37 = vld [vmem:[%s5700_s1 + $0x318] ss:$56 sps:$4 sm:$0xff]  }
  0x19   : > { %v4515_v36 = vld [vmem:[%s4438_s16 + $0x20] ss:$8 sps:$4 sm:$0xff]   ;;  %v3808_v38 = vld [vmem:[%s5700_s1 + $0x2ac] ss:$56 sps:$4 sm:$0xff]   ;;  %v4524_v39 = vld [vmem:[%s4438_s16 + $0x14] ss:$8 sps:$4 sm:$0xff]  }
  0x1a   : > { %407 = vmatpush1.bf16.msra.mxu0 %v3760_v7  ;;  %551 = vmatpush1.bf16.msra.mxu1 %v3760_v7  ;;  %v4527_v40 = vld [vmem:[%s4438_s16 + $0x34] ss:$8 sps:$4 sm:$0xff]   ;;  %v3806_v41 = vld [vmem:[%s5700_s1 + $0x2a8] ss:$56 sps:$4 sm:$0xff]   ;;  %v4540_v43 = vld [vmem:[%s4438_s16 + $0x10] ss:$8 sps:$4 sm:$0xff]  }
  0x1b   : > { %408 = vmatprep.subr.bf16.mxu0 %v3761_v8  ;;  %552 = vmatprep.subr.bf16.mxu1 %v3761_v8  ;;  %v3817_v42 = vld [vmem:[%s5700_s1 + $0x23c] ss:$56 sps:$4 sm:$0xff]   ;;  %v4543_v44 = vld [vmem:[%s4438_s16 + $0x30] ss:$8 sps:$4 sm:$0xff]   ;;  %v3820_v46 = vld [vmem:[%s5700_s1 + $0x1cc] ss:$56 sps:$4 sm:$0xff]  }
  0x1c   : > { %v3815_v45 = vld [vmem:[%s5700_s1 + $0x238] ss:$56 sps:$4 sm:$0xff]   ;;  %v3818_v47 = vld [vmem:[%s5700_s1 + $0x1c8] ss:$56 sps:$4 sm:$0xff]   ;;  %v3823_v48 = vld [vmem:[%s5700_s1 + $0x15c] ss:$56 sps:$4 sm:$0xff]  }
  0x1d   : > { %v3821_v49 = vld [vmem:[%s5700_s1 + $0x158] ss:$56 sps:$4 sm:$0xff]   ;;  %v3826_v50 = vld [vmem:[%s5700_s1 + $0xec] ss:$56 sps:$4 sm:$0xff]   ;;  %v3824_v51 = vld [vmem:[%s5700_s1 + $0xe8] ss:$56 sps:$4 sm:$0xff]  }
  0x1e   : > { %409 = vmatpush1.bf16.msra.mxu0 %v3763_v9  ;;  %553 = vmatpush1.bf16.msra.mxu1 %v3763_v9  ;;  %v3829_v52 = vld [vmem:[%s5700_s1 + $0x7c] ss:$56 sps:$4 sm:$0xff]   ;;  %v3827_v53 = vld [vmem:[%s5700_s1 + $0x78] ss:$56 sps:$4 sm:$0xff]   ;;  %v3832_v54 = vld [vmem:[%s5700_s1 + $0xc] ss:$56 sps:$4 sm:$0xff]  }
  0x1f   : > { %410 = vmatprep.subr.bf16.mxu0 %v3764_v10  ;;  %554 = vmatprep.subr.bf16.mxu1 %v3764_v10  ;;  %v3830_v55 = vld [vmem:[%s5700_s1 + $0x8] ss:$56 sps:$4 sm:$0xff]   ;;  %v3835_v56 = vld [vmem:[%s5700_s1 + $0x69c] ss:$56 sps:$4 sm:$0xff]   ;;  %v3833_v57 = vld [vmem:[%s5700_s1 + $0x698] ss:$56 sps:$4 sm:$0xff]  }
  0x20   : > { %v3838_v58 = vld [vmem:[%s5700_s1 + $0x62c] ss:$56 sps:$4 sm:$0xff]   ;;  %v3836_v59 = vld [vmem:[%s5700_s1 + $0x628] ss:$56 sps:$4 sm:$0xff]   ;;  %v3841_v60 = vld [vmem:[%s5700_s1 + $0x5bc] ss:$56 sps:$4 sm:$0xff]  }
  0x21   : > { %v3839_v61 = vld [vmem:[%s5700_s1 + $0x5b8] ss:$56 sps:$4 sm:$0xff]   ;;  %v3844_v62 = vld [vmem:[%s5700_s1 + $0x54c] ss:$56 sps:$4 sm:$0xff]   ;;  %v3842_v63 = vld [vmem:[%s5700_s1 + $0x548] ss:$56 sps:$4 sm:$0xff]  }
  0x22   : > { %411 = vmatpush1.bf16.msra.mxu0 %v3766_v11  ;;  %555 = vmatpush1.bf16.msra.mxu1 %v3766_v11  ;;  %v3847_v0 = vld [vmem:[%s5700_s1 + $0x4dc] ss:$56 sps:$4 sm:$0xff]   ;;  %v3845_v1 = vld [vmem:[%s5700_s1 + $0x4d8] ss:$56 sps:$4 sm:$0xff]   ;;  %v3850_v2 = vld [vmem:[%s5700_s1 + $0x46c] ss:$56 sps:$4 sm:$0xff]  }
  0x23   : > { %412 = vmatprep.subr.bf16.mxu0 %v3767_v12  ;;  %556 = vmatprep.subr.bf16.mxu1 %v3767_v12  ;;  %v3848_v3 = vld [vmem:[%s5700_s1 + $0x468] ss:$56 sps:$4 sm:$0xff]   ;;  %v3853_v4 = vld [vmem:[%s5700_s1 + $0x3fc] ss:$56 sps:$4 sm:$0xff]   ;;  %v3851_v5 = vld [vmem:[%s5700_s1 + $0x3f8] ss:$56 sps:$4 sm:$0xff]  }
  0x24   : > { %v3856_v6 = vld [vmem:[%s5700_s1 + $0x38c] ss:$56 sps:$4 sm:$0xff]   ;;  %v3854_v7 = vld [vmem:[%s5700_s1 + $0x388] ss:$56 sps:$4 sm:$0xff]  }
  0x25   : > { %v3859_v8 = vld [vmem:[%s5700_s1 + $0x324] ss:$56 sps:$4 sm:$0xff]   ;;  %v3857_v9 = vld [vmem:[%s5700_s1 + $0x320] ss:$56 sps:$4 sm:$0xff]   ;;  %v3862_v10 = vld [vmem:[%s5700_s1 + $0x2b4] ss:$56 sps:$4 sm:$0xff]  }
  0x26   : > { %413 = vmatpush1.bf16.msra.mxu0 %v3769_v14  ;;  %557 = vmatpush1.bf16.msra.mxu1 %v3769_v14  ;;  %v3860_v11 = vld [vmem:[%s5700_s1 + $0x2b0] ss:$56 sps:$4 sm:$0xff]   ;;  %v3865_v12 = vld [vmem:[%s5700_s1 + $0x244] ss:$56 sps:$4 sm:$0xff]   ;;  %v3863_v14 = vld [vmem:[%s5700_s1 + $0x240] ss:$56 sps:$4 sm:$0xff]  }
  0x27   : > { %414 = vmatprep.subr.bf16.mxu0 %v3770_v16  ;;  %558 = vmatprep.subr.bf16.mxu1 %v3770_v16  ;;  %v3868_v16 = vld [vmem:[%s5700_s1 + $0x1d4] ss:$56 sps:$4 sm:$0xff]  }
  0x2a   : > { %415 = vmatpush1.bf16.msra.mxu0 %v3772_v17  ;;  %559 = vmatpush1.bf16.msra.mxu1 %v3772_v17  ;;  %v3866_v17 = vld [vmem:[%s5700_s1 + $0x1d0] ss:$56 sps:$4 sm:$0xff]  }
  0x2b   : > { %416 = vmatprep.subr.bf16.mxu0 %v3773_v18  ;;  %560 = vmatprep.subr.bf16.mxu1 %v3773_v18  ;;  %v3871_v18 = vld [vmem:[%s5700_s1 + $0x164] ss:$56 sps:$4 sm:$0xff]  }
  0x2e   : > { %417 = vmatpush2.bf16.msra.mxu0 %v3775_v19  ;;  %561 = vmatpush2.bf16.msra.mxu1 %v3775_v19  ;;  %v3869_v19 = vld [vmem:[%s5700_s1 + $0x160] ss:$56 sps:$4 sm:$0xff]  }
  0x2f   : > { %418 = vmatprep.subr.bf16.mxu0 %v3776_v20  ;;  %562 = vmatprep.subr.bf16.mxu1 %v3776_v20  ;;  %v3874_v20 = vld [vmem:[%s5700_s1 + $0xf4] ss:$56 sps:$4 sm:$0xff]  }
  0x32   : > { %419 = vmatpush2.bf16.msra.mxu0 %v3778_v21  ;;  %563 = vmatpush2.bf16.msra.mxu1 %v3778_v21  ;;  %v3872_v21 = vld [vmem:[%s5700_s1 + $0xf0] ss:$56 sps:$4 sm:$0xff]  }
  0x33   : > { %420 = vmatprep.subr.bf16.mxu0 %v3779_v22  ;;  %564 = vmatprep.subr.bf16.mxu1 %v3779_v22  ;;  %v3877_v22 = vld [vmem:[%s5700_s1 + $0x84] ss:$56 sps:$4 sm:$0xff]  }
  0x36   : > { %421 = vmatpush2.bf16.msra.mxu0 %v3781_v23  ;;  %565 = vmatpush2.bf16.msra.mxu1 %v3781_v23  ;;  %v3875_v23 = vld [vmem:[%s5700_s1 + $0x80] ss:$56 sps:$4 sm:$0xff]  }
  0x37   : > { %422 = vmatprep.subr.bf16.mxu0 %v3782_v24  ;;  %566 = vmatprep.subr.bf16.mxu1 %v3782_v24  ;;  %v3880_v24 = vld [vmem:[%s5700_s1 + $0x14] ss:$56 sps:$4 sm:$0xff]  }
  0x3a   : > { %423 = vmatpush2.bf16.msra.mxu0 %v3784_v25  ;;  %567 = vmatpush2.bf16.msra.mxu1 %v3784_v25  ;;  %v3878_v25 = vld [vmem:[%s5700_s1 + $0x10] ss:$56 sps:$4 sm:$0xff]  }
  0x3b   : > { %424 = vmatprep.subr.bf16.mxu0 %v3785_v26  ;;  %568 = vmatprep.subr.bf16.mxu1 %v3785_v26  ;;  %v3883_v26 = vld [vmem:[%s5700_s1 + $0x6a4] ss:$56 sps:$4 sm:$0xff]  }
  0x3e   : > { %425 = vmatpush2.bf16.msra.mxu0 %v3787_v27  ;;  %569 = vmatpush2.bf16.msra.mxu1 %v3787_v27  ;;  %v3881_v27 = vld [vmem:[%s5700_s1 + $0x6a0] ss:$56 sps:$4 sm:$0xff]  }
  0x3f   : > { %426 = vmatprep.subr.bf16.mxu0 %v3788_v28  ;;  %570 = vmatprep.subr.bf16.mxu1 %v3788_v28  ;;  %v3886_v28 = vld [vmem:[%s5700_s1 + $0x634] ss:$56 sps:$4 sm:$0xff]  }
  0x42   : > { %427 = vmatpush2.bf16.msra.mxu0 %v3790_v29  ;;  %571 = vmatpush2.bf16.msra.mxu1 %v3790_v29  ;;  %v3884_v29 = vld [vmem:[%s5700_s1 + $0x630] ss:$56 sps:$4 sm:$0xff]  }
  0x43   : > { %428 = vmatprep.subr.bf16.mxu0 %v3791_v30  ;;  %572 = vmatprep.subr.bf16.mxu1 %v3791_v30  ;;  %v3889_v30 = vld [vmem:[%s5700_s1 + $0x5c4] ss:$56 sps:$4 sm:$0xff]  }
  0x46   : > { %429 = vmatpush2.bf16.msra.mxu0 %v3793_v31  ;;  %573 = vmatpush2.bf16.msra.mxu1 %v3793_v31  ;;  %v3887_v31 = vld [vmem:[%s5700_s1 + $0x5c0] ss:$56 sps:$4 sm:$0xff]  }
  0x47   : > { %430 = vmatprep.subr.bf16.mxu0 %v3794_v32  ;;  %574 = vmatprep.subr.bf16.mxu1 %v3794_v32  ;;  %v3892_v32 = vld [vmem:[%s5700_s1 + $0x554] ss:$56 sps:$4 sm:$0xff]  }
  0x4a   : > { %431 = vmatpush2.bf16.msra.mxu0 %v3796_v33  ;;  %575 = vmatpush2.bf16.msra.mxu1 %v3796_v33  ;;  %v3890_v33 = vld [vmem:[%s5700_s1 + $0x550] ss:$56 sps:$4 sm:$0xff]  }
  0x4b   : > { %858 = vmatprep.subr.bf16.mxu0 %v3805_v34  ;;  %977 = vmatprep.subr.bf16.mxu1 %v3805_v34  ;;  %v3895_v34 = vld [vmem:[%s5700_s1 + $0x4e4] ss:$56 sps:$4 sm:$0xff]  }
  0x4d   : > { %433 = vmatmul.mubr.bf16.vlgmr.msra.gmra.mxu0 %v4512_v35  ;;  %577 = vmatmul.mubr.bf16.vlgmr.msra.gmra.mxu1 %v4515_v36 }
  0x4e   : > { %859 = vmatpush1.bf16.msra.mxu0 %v3803_v37  ;;  %978 = vmatpush1.bf16.msra.mxu1 %v3803_v37  ;;  %v3893_v37 = vld [vmem:[%s5700_s1 + $0x4e0] ss:$56 sps:$4 sm:$0xff]  }
  0x4f   : > { %860 = vmatprep.subr.bf16.mxu0 %v3808_v38  ;;  %979 = vmatprep.subr.bf16.mxu1 %v3808_v38  ;;  %v3898_v38 = vld [vmem:[%s5700_s1 + $0x474] ss:$56 sps:$4 sm:$0xff]  }
  0x50   : > { %442 = vmatprep.mubr.bf16.mxu0 %v4524_v39  ;;  %586 = vmatprep.mubr.bf16.mxu1 %v4527_v40 }
  0x52   : > { %861 = vmatpush1.bf16.msra.mxu0 %v3806_v41  ;;  %980 = vmatpush1.bf16.msra.mxu1 %v3806_v41  ;;  %v3896_v41 = vld [vmem:[%s5700_s1 + $0x470] ss:$56 sps:$4 sm:$0xff]  }
  0x53   : > { %862 = vmatprep.subr.bf16.mxu0 %v3817_v42  ;;  %981 = vmatprep.subr.bf16.mxu1 %v3817_v42  ;;  %v3901_v42 = vld [vmem:[%s5700_s1 + $0x404] ss:$56 sps:$4 sm:$0xff]  }
  0x55   : > { %443 = vmatmul.mubr.bf16.gmra.mxu0 %v4540_v43  ;;  %587 = vmatmul.mubr.bf16.gmra.mxu1 %v4543_v44 }
  0x56   : > { %863 = vmatpush1.bf16.msra.mxu0 %v3815_v45  ;;  %982 = vmatpush1.bf16.msra.mxu1 %v3815_v45  ;;  %v3899_v45 = vld [vmem:[%s5700_s1 + $0x400] ss:$56 sps:$4 sm:$0xff]  }
  0x57   : > { %864 = vmatprep.subr.bf16.mxu0 %v3820_v46  ;;  %983 = vmatprep.subr.bf16.mxu1 %v3820_v46  ;;  %v3904_v46 = vld [vmem:[%s5700_s1 + $0x394] ss:$56 sps:$4 sm:$0xff]  }
  0x58   : > { %890 = vmatprep.mubr.bf16.mxu0 %v4444_v13  ;;  %1009 = vmatprep.mubr.bf16.mxu1 %v4450_v15 }
  0x5a   : > { %865 = vmatpush1.bf16.msra.mxu0 %v3818_v47  ;;  %984 = vmatpush1.bf16.msra.mxu1 %v3818_v47  ;;  %v3902_v47 = vld [vmem:[%s5700_s1 + $0x390] ss:$56 sps:$4 sm:$0xff]  }
  0x5b   : > { %866 = vmatprep.subr.bf16.mxu0 %v3823_v48  ;;  %985 = vmatprep.subr.bf16.mxu1 %v3823_v48  ;;  %v3907_v48 = vld [vmem:[%s5700_s1 + $0x32c] ss:$56 sps:$4 sm:$0xff]  }
  0x5e   : > { %867 = vmatpush1.bf16.msra.mxu0 %v3821_v49  ;;  %986 = vmatpush1.bf16.msra.mxu1 %v3821_v49  ;;  %v3905_v49 = vld [vmem:[%s5700_s1 + $0x328] ss:$56 sps:$4 sm:$0xff]  }
  0x5f   : > { %868 = vmatprep.subr.bf16.mxu0 %v3826_v50  ;;  %987 = vmatprep.subr.bf16.mxu1 %v3826_v50  ;;  %v3910_v50 = vld [vmem:[%s5700_s1 + $0x2bc] ss:$56 sps:$4 sm:$0xff]  }
  0x62   : > { %869 = vmatpush1.bf16.msra.mxu0 %v3824_v51  ;;  %988 = vmatpush1.bf16.msra.mxu1 %v3824_v51  ;;  %v3908_v51 = vld [vmem:[%s5700_s1 + $0x2b8] ss:$56 sps:$4 sm:$0xff]  }
  0x63   : > { %870 = vmatprep.subr.bf16.mxu0 %v3829_v52  ;;  %989 = vmatprep.subr.bf16.mxu1 %v3829_v52  ;;  %v3913_v52 = vld [vmem:[%s5700_s1 + $0x24c] ss:$56 sps:$4 sm:$0xff]  }
  0x66   : > { %871 = vmatpush1.bf16.msra.mxu0 %v3827_v53  ;;  %990 = vmatpush1.bf16.msra.mxu1 %v3827_v53  ;;  %v3911_v53 = vld [vmem:[%s5700_s1 + $0x248] ss:$56 sps:$4 sm:$0xff]  }
  0x67   : > { %872 = vmatprep.subr.bf16.mxu0 %v3832_v54  ;;  %991 = vmatprep.subr.bf16.mxu1 %v3832_v54  ;;  %v3916_v54 = vld [vmem:[%s5700_s1 + $0x1dc] ss:$56 sps:$4 sm:$0xff]  }
  0x6a   : > { %873 = vmatpush1.bf16.msra.mxu0 %v3830_v55  ;;  %992 = vmatpush1.bf16.msra.mxu1 %v3830_v55  ;;  %v3914_v55 = vld [vmem:[%s5700_s1 + $0x1d8] ss:$56 sps:$4 sm:$0xff]  }
  0x6b   : > { %874 = vmatprep.subr.bf16.mxu0 %v3835_v56  ;;  %993 = vmatprep.subr.bf16.mxu1 %v3835_v56  ;;  %v3919_v56 = vld [vmem:[%s5700_s1 + $0x16c] ss:$56 sps:$4 sm:$0xff]  }
  0x6e   : > { %875 = vmatpush2.bf16.msra.mxu0 %v3833_v57  ;;  %994 = vmatpush2.bf16.msra.mxu1 %v3833_v57  ;;  %v3917_v57 = vld [vmem:[%s5700_s1 + $0x168] ss:$56 sps:$4 sm:$0xff]  }
  0x6f   : > { %876 = vmatprep.subr.bf16.mxu0 %v3838_v58  ;;  %995 = vmatprep.subr.bf16.mxu1 %v3838_v58  ;;  %v3922_v58 = vld [vmem:[%s5700_s1 + $0xfc] ss:$56 sps:$4 sm:$0xff]  }
  0x72   : > { %877 = vmatpush2.bf16.msra.mxu0 %v3836_v59  ;;  %996 = vmatpush2.bf16.msra.mxu1 %v3836_v59  ;;  %v3923_v59 = vld [vmem:[%s5700_s1 + $0x88] ss:$56 sps:$4 sm:$0xff]  }
  0x73   : > { %878 = vmatprep.subr.bf16.mxu0 %v3841_v60  ;;  %997 = vmatprep.subr.bf16.mxu1 %v3841_v60  ;;  %v3928_v60 = vld [vmem:[%s5700_s1 + $0x1c] ss:$56 sps:$4 sm:$0xff]  }
  0x76   : > { %879 = vmatpush2.bf16.msra.mxu0 %v3839_v61  ;;  %998 = vmatpush2.bf16.msra.mxu1 %v3839_v61  ;;  %v3926_v61 = vld [vmem:[%s5700_s1 + $0x18] ss:$56 sps:$4 sm:$0xff]  }
  0x77   : > { %880 = vmatprep.subr.bf16.mxu0 %v3844_v62  ;;  %999 = vmatprep.subr.bf16.mxu1 %v3844_v62  ;;  %v3931_v62 = vld [vmem:[%s5700_s1 + $0x6ac] ss:$56 sps:$4 sm:$0xff]  }
  0x7a   : > { %881 = vmatpush2.bf16.msra.mxu0 %v3842_v63  ;;  %1000 = vmatpush2.bf16.msra.mxu1 %v3842_v63  ;;  %v3929_v63 = vld [vmem:[%s5700_s1 + $0x6a8] ss:$56 sps:$4 sm:$0xff]  }
  0x7b   : > { %882 = vmatprep.subr.bf16.mxu0 %v3847_v0  ;;  %1001 = vmatprep.subr.bf16.mxu1 %v3847_v0  ;;  %v3934_v0 = vld [vmem:[%s5700_s1 + $0x63c] ss:$56 sps:$4 sm:$0xff]  }
  0x7e   : > { %883 = vmatpush2.bf16.msra.mxu0 %v3845_v1  ;;  %1002 = vmatpush2.bf16.msra.mxu1 %v3845_v1  ;;  %v3932_v1 = vld [vmem:[%s5700_s1 + $0x638] ss:$56 sps:$4 sm:$0xff]  }
  0x7f   : > { %884 = vmatprep.subr.bf16.mxu0 %v3850_v2  ;;  %1003 = vmatprep.subr.bf16.mxu1 %v3850_v2  ;;  %v3937_v2 = vld [vmem:[%s5700_s1 + $0x5cc] ss:$56 sps:$4 sm:$0xff]  }
  0x82   : > { %885 = vmatpush2.bf16.msra.mxu0 %v3848_v3  ;;  %1004 = vmatpush2.bf16.msra.mxu1 %v3848_v3  ;;  %v3935_v3 = vld [vmem:[%s5700_s1 + $0x5c8] ss:$56 sps:$4 sm:$0xff]  }
  0x83   : > { %886 = vmatprep.subr.bf16.mxu0 %v3853_v4  ;;  %1005 = vmatprep.subr.bf16.mxu1 %v3853_v4  ;;  %v3940_v4 = vld [vmem:[%s5700_s1 + $0x55c] ss:$56 sps:$4 sm:$0xff]  }
  0x86   : > { %887 = vmatpush2.bf16.msra.mxu0 %v3851_v5  ;;  %1006 = vmatpush2.bf16.msra.mxu1 %v3851_v5  ;;  %v3938_v5 = vld [vmem:[%s5700_s1 + $0x558] ss:$56 sps:$4 sm:$0xff]  }
  0x87   : > { %888 = vmatprep.subr.bf16.mxu0 %v3856_v6  ;;  %1007 = vmatprep.subr.bf16.mxu1 %v3856_v6  ;;  %v3943_v6 = vld [vmem:[%s5700_s1 + $0x4ec] ss:$56 sps:$4 sm:$0xff]  }
  0x8a   : > { %889 = vmatpush2.bf16.msra.mxu0 %v3854_v7  ;;  %1008 = vmatpush2.bf16.msra.mxu1 %v3854_v7  ;;  %v3941_v7 = vld [vmem:[%s5700_s1 + $0x4e8] ss:$56 sps:$4 sm:$0xff]  }
  0x8b   : > { %1290 = vmatprep.subr.bf16.mxu0 %v3859_v8  ;;  %1409 = vmatprep.subr.bf16.mxu1 %v3859_v8  ;;  %v3946_v8 = vld [vmem:[%s5700_s1 + $0x47c] ss:$56 sps:$4 sm:$0xff]  }
  0x8d   : > { %891 = vmatmul.mubr.bf16.vlgmr.msra.gmra.mxu0 %v4512_v35  ;;  %1010 = vmatmul.mubr.bf16.vlgmr.msra.gmra.mxu1 %v4515_v36 }
  0x8e   : > { %1291 = vmatpush1.bf16.msra.mxu0 %v3857_v9  ;;  %1410 = vmatpush1.bf16.msra.mxu1 %v3857_v9  ;;  %v3944_v9 = vld [vmem:[%s5700_s1 + $0x478] ss:$56 sps:$4 sm:$0xff]  }
  0x8f   : > { %1292 = vmatprep.subr.bf16.mxu0 %v3862_v10  ;;  %1411 = vmatprep.subr.bf16.mxu1 %v3862_v10  ;;  %v3949_v10 = vld [vmem:[%s5700_s1 + $0x40c] ss:$56 sps:$4 sm:$0xff]  }
  0x90   : > { %900 = vmatprep.mubr.bf16.mxu0 %v4524_v39  ;;  %1019 = vmatprep.mubr.bf16.mxu1 %v4527_v40 }
  0x92   : > { %1293 = vmatpush1.bf16.msra.mxu0 %v3860_v11  ;;  %1412 = vmatpush1.bf16.msra.mxu1 %v3860_v11  ;;  %v3947_v11 = vld [vmem:[%s5700_s1 + $0x408] ss:$56 sps:$4 sm:$0xff]  }
  0x93   : > { %1294 = vmatprep.subr.bf16.mxu0 %v3865_v12  ;;  %1413 = vmatprep.subr.bf16.mxu1 %v3865_v12  ;;  %v3952_v12 = vld [vmem:[%s5700_s1 + $0x39c] ss:$56 sps:$4 sm:$0xff]  }
  0x95   : > { %901 = vmatmul.mubr.bf16.gmra.mxu0 %v4540_v43  ;;  %1020 = vmatmul.mubr.bf16.gmra.mxu1 %v4543_v44 }
  0x96   : > { %1295 = vmatpush1.bf16.msra.mxu0 %v3863_v14  ;;  %1414 = vmatpush1.bf16.msra.mxu1 %v3863_v14  ;;  %v3950_v14 = vld [vmem:[%s5700_s1 + $0x398] ss:$56 sps:$4 sm:$0xff]  }
  0x97   : > { %1296 = vmatprep.subr.bf16.mxu0 %v3868_v16  ;;  %1415 = vmatprep.subr.bf16.mxu1 %v3868_v16  ;;  %v3955_v16 = vld [vmem:[%s5700_s1 + $0x334] ss:$56 sps:$4 sm:$0xff]  }
  0x98   : > { %1322 = vmatprep.mubr.bf16.mxu0 %v4444_v13  ;;  %1441 = vmatprep.mubr.bf16.mxu1 %v4450_v15 }
  0x9a   : > { %1297 = vmatpush1.bf16.msra.mxu0 %v3866_v17  ;;  %1416 = vmatpush1.bf16.msra.mxu1 %v3866_v17  ;;  %v3953_v17 = vld [vmem:[%s5700_s1 + $0x330] ss:$56 sps:$4 sm:$0xff]  }
  0x9b   : > { %1298 = vmatprep.subr.bf16.mxu0 %v3871_v18  ;;  %1417 = vmatprep.subr.bf16.mxu1 %v3871_v18  ;;  %v3958_v18 = vld [vmem:[%s5700_s1 + $0x2c4] ss:$56 sps:$4 sm:$0xff]  }
  0x9e   : > { %1299 = vmatpush1.bf16.msra.mxu0 %v3869_v19  ;;  %1418 = vmatpush1.bf16.msra.mxu1 %v3869_v19 }
  0x9f   : > { %1300 = vmatprep.subr.bf16.mxu0 %v3874_v20  ;;  %1419 = vmatprep.subr.bf16.mxu1 %v3874_v20 }
  0xa2   : > { %1301 = vmatpush1.bf16.msra.mxu0 %v3872_v21  ;;  %1420 = vmatpush1.bf16.msra.mxu1 %v3872_v21  ;;  %v3956_v21 = vld [vmem:[%s5700_s1 + $0x2c0] ss:$56 sps:$4 sm:$0xff]  }
  0xa3   : > { %1302 = vmatprep.subr.bf16.mxu0 %v3877_v22  ;;  %1421 = vmatprep.subr.bf16.mxu1 %v3877_v22 }
  0xa6   : > { %1303 = vmatpush1.bf16.msra.mxu0 %v3875_v23  ;;  %1422 = vmatpush1.bf16.msra.mxu1 %v3875_v23 }
  0xa7   : > { %1304 = vmatprep.subr.bf16.mxu0 %v3880_v24  ;;  %1423 = vmatprep.subr.bf16.mxu1 %v3880_v24  ;;  %v3961_v24 = vld [vmem:[%s5700_s1 + $0x254] ss:$56 sps:$4 sm:$0xff]  }
  0xaa   : > { %1305 = vmatpush1.bf16.msra.mxu0 %v3878_v25  ;;  %1424 = vmatpush1.bf16.msra.mxu1 %v3878_v25 }
  0xab   : > { %1306 = vmatprep.subr.bf16.mxu0 %v3883_v26  ;;  %1425 = vmatprep.subr.bf16.mxu1 %v3883_v26 }
  0xae   : > { %1307 = vmatpush2.bf16.msra.mxu0 %v3881_v27  ;;  %1426 = vmatpush2.bf16.msra.mxu1 %v3881_v27  ;;  %v3959_v27 = vld [vmem:[%s5700_s1 + $0x250] ss:$56 sps:$4 sm:$0xff]  }
  0xaf   : > { %1308 = vmatprep.subr.bf16.mxu0 %v3886_v28  ;;  %1427 = vmatprep.subr.bf16.mxu1 %v3886_v28  ;;  %v3964_v28 = vld [vmem:[%s5700_s1 + $0x1e4] ss:$56 sps:$4 sm:$0xff]  }
  0xb2   : > { %1309 = vmatpush2.bf16.msra.mxu0 %v3884_v29  ;;  %1428 = vmatpush2.bf16.msra.mxu1 %v3884_v29 }
  0xb3   : > { %1310 = vmatprep.subr.bf16.mxu0 %v3889_v30  ;;  %1429 = vmatprep.subr.bf16.mxu1 %v3889_v30 }
  0xb6   : > { %1311 = vmatpush2.bf16.msra.mxu0 %v3887_v31  ;;  %1430 = vmatpush2.bf16.msra.mxu1 %v3887_v31 }
  0xb7   : > { %1312 = vmatprep.subr.bf16.mxu0 %v3892_v32  ;;  %1431 = vmatprep.subr.bf16.mxu1 %v3892_v32 }
  0xba   : > { %1313 = vmatpush2.bf16.msra.mxu0 %v3890_v33  ;;  %1432 = vmatpush2.bf16.msra.mxu1 %v3890_v33 }
  0xbb   : > { %1314 = vmatprep.subr.bf16.mxu0 %v3895_v34  ;;  %1433 = vmatprep.subr.bf16.mxu1 %v3895_v34 }
  0xbe   : > { %1315 = vmatpush2.bf16.msra.mxu0 %v3893_v37  ;;  %1434 = vmatpush2.bf16.msra.mxu1 %v3893_v37 }
  0xbf   : > { %1316 = vmatprep.subr.bf16.mxu0 %v3898_v38  ;;  %1435 = vmatprep.subr.bf16.mxu1 %v3898_v38 }
  0xc2   : > { %1317 = vmatpush2.bf16.msra.mxu0 %v3896_v41  ;;  %1436 = vmatpush2.bf16.msra.mxu1 %v3896_v41  ;;  %v3962_v41 = vld [vmem:[%s5700_s1 + $0x1e0] ss:$56 sps:$4 sm:$0xff]  }
  0xc3   : > { %1318 = vmatprep.subr.bf16.mxu0 %v3901_v42  ;;  %1437 = vmatprep.subr.bf16.mxu1 %v3901_v42  ;;  %v4357_v42 = vmov 0.0  }
  0xc4   : > { %183 = vst [vmem:[%s4891_s7 + $0x18] sm:$0xf] %v4357_v42  ;;  %v3991_v42 = vld [vmem:[%s5700_s1 + $0x4f4] ss:$56 sps:$4 sm:$0xff]  }
  0xc6   : > { %1319 = vmatpush2.bf16.msra.mxu0 %v3899_v45  ;;  %1438 = vmatpush2.bf16.msra.mxu1 %v3899_v45 }
  0xc7   : > { %1320 = vmatprep.subr.bf16.mxu0 %v3904_v46  ;;  %1439 = vmatprep.subr.bf16.mxu1 %v3904_v46 }
  0xca   : > { %1321 = vmatpush2.bf16.msra.mxu0 %v3902_v47  ;;  %1440 = vmatpush2.bf16.msra.mxu1 %v3902_v47  ;;  %v4915_v47 = vld [vmem:[%s4438_s16 + $0x24] ss:$8 sps:$4 sm:$0xff]  }
  0xcb   : > { %1722 = vmatprep.subr.bf16.mxu0 %v3907_v48  ;;  %1841 = vmatprep.subr.bf16.mxu1 %v3907_v48 }
  0xcd   : > { %1323 = vmatmul.mubr.bf16.vlgmr.msra.gmra.mxu0 %v4512_v35  ;;  %1442 = vmatmul.mubr.bf16.vlgmr.msra.gmra.mxu1 %v4515_v36 }
  0xce   : > { %1723 = vmatpush1.bf16.msra.mxu0 %v3905_v49  ;;  %1842 = vmatpush1.bf16.msra.mxu1 %v3905_v49 }
  0xcf   : > { %1724 = vmatprep.subr.bf16.mxu0 %v3910_v50  ;;  %1843 = vmatprep.subr.bf16.mxu1 %v3910_v50 }
  0xd0   : > { %1332 = vmatprep.mubr.bf16.mxu0 %v4524_v39  ;;  %1451 = vmatprep.mubr.bf16.mxu1 %v4527_v40 }
  0xd2   : > { %1725 = vmatpush1.bf16.msra.mxu0 %v3908_v51  ;;  %1844 = vmatpush1.bf16.msra.mxu1 %v3908_v51 }
  0xd3   : > { %1726 = vmatprep.subr.bf16.mxu0 %v3913_v52  ;;  %1845 = vmatprep.subr.bf16.mxu1 %v3913_v52  ;;  %v3965_v52 = vld [vmem:[%s5700_s1 + $0x170] ss:$56 sps:$4 sm:$0xff]  }
  0xd5   : > { %1333 = vmatmul.mubr.bf16.gmra.mxu0 %v4540_v43  ;;  %1452 = vmatmul.mubr.bf16.gmra.mxu1 %v4543_v44 }
  0xd6   : > { %1727 = vmatpush1.bf16.msra.mxu0 %v3911_v53  ;;  %1846 = vmatpush1.bf16.msra.mxu1 %v3911_v53 }
  0xd7   : > { %1728 = vmatprep.subr.bf16.mxu0 %v3916_v54  ;;  %1847 = vmatprep.subr.bf16.mxu1 %v3916_v54 }
  0xd8   : > { %1754 = vmatprep.mubr.bf16.mxu0 %v4444_v13  ;;  %1873 = vmatprep.mubr.bf16.mxu1 %v4450_v15  ;;  %v3920_v13 = vld [vmem:[%s5700_s1 + $0xf8] ss:$56 sps:$4 sm:$0xff]   ;;  %v3925_v15 = vld [vmem:[%s5700_s1 + $0x8c] ss:$56 sps:$4 sm:$0xff]  }
  0xda   : > { %1729 = vmatpush1.bf16.msra.mxu0 %v3914_v55  ;;  %1848 = vmatpush1.bf16.msra.mxu1 %v3914_v55  ;;  %v3970_v55 = vld [vmem:[%s5700_s1 + $0x104] ss:$56 sps:$4 sm:$0xff]  }
  0xdb   : > { %1730 = vmatprep.subr.bf16.mxu0 %v3919_v56  ;;  %1849 = vmatprep.subr.bf16.mxu1 %v3919_v56 }
  0xde   : > { %1731 = vmatpush1.bf16.msra.mxu0 %v3917_v57  ;;  %1850 = vmatpush1.bf16.msra.mxu1 %v3917_v57 }
  0xdf   : > { %1732 = vmatprep.subr.bf16.mxu0 %v3922_v58  ;;  %1851 = vmatprep.subr.bf16.mxu1 %v3922_v58 }
  0xe2   : > { %1733 = vmatpush1.bf16.msra.mxu0 %v3920_v13  ;;  %1852 = vmatpush1.bf16.msra.mxu1 %v3920_v13 }
  0xe3   : > { %1734 = vmatprep.subr.bf16.mxu0 %v3925_v15  ;;  %1853 = vmatprep.subr.bf16.mxu1 %v3925_v15 }
  0xe6   : > { %1735 = vmatpush1.bf16.msra.mxu0 %v3923_v59  ;;  %1854 = vmatpush1.bf16.msra.mxu1 %v3923_v59 }
  0xe7   : > { %1736 = vmatprep.subr.bf16.mxu0 %v3928_v60  ;;  %1855 = vmatprep.subr.bf16.mxu1 %v3928_v60  ;;  %v3968_v60 = vld [vmem:[%s5700_s1 + $0x100] ss:$56 sps:$4 sm:$0xff]  }
  0xea   : > { %1737 = vmatpush1.bf16.msra.mxu0 %v3926_v61  ;;  %1856 = vmatpush1.bf16.msra.mxu1 %v3926_v61  ;;  %v3973_v61 = vld [vmem:[%s5700_s1 + $0x94] ss:$56 sps:$4 sm:$0xff]  }
  0xeb   : > { %1738 = vmatprep.subr.bf16.mxu0 %v3931_v62  ;;  %1857 = vmatprep.subr.bf16.mxu1 %v3931_v62  ;;  %v3971_v62 = vld [vmem:[%s5700_s1 + $0x90] ss:$56 sps:$4 sm:$0xff]  }
  0xee   : > { %1739 = vmatpush2.bf16.msra.mxu0 %v3929_v63  ;;  %1858 = vmatpush2.bf16.msra.mxu1 %v3929_v63  ;;  %v3976_v63 = vld [vmem:[%s5700_s1 + $0x24] ss:$56 sps:$4 sm:$0xff]  }
  0xef   : > { %1740 = vmatprep.subr.bf16.mxu0 %v3934_v0  ;;  %1859 = vmatprep.subr.bf16.mxu1 %v3934_v0 }
  0xf2   : > { %1741 = vmatpush2.bf16.msra.mxu0 %v3932_v1  ;;  %1860 = vmatpush2.bf16.msra.mxu1 %v3932_v1 }
  0xf3   : > { %1742 = vmatprep.subr.bf16.mxu0 %v3937_v2  ;;  %1861 = vmatprep.subr.bf16.mxu1 %v3937_v2 }
  0xf6   : > { %1743 = vmatpush2.bf16.msra.mxu0 %v3935_v3  ;;  %1862 = vmatpush2.bf16.msra.mxu1 %v3935_v3 }
  0xf7   : > { %1744 = vmatprep.subr.bf16.mxu0 %v3940_v4  ;;  %1863 = vmatprep.subr.bf16.mxu1 %v3940_v4 }
  0xfa   : > { %1745 = vmatpush2.bf16.msra.mxu0 %v3938_v5  ;;  %1864 = vmatpush2.bf16.msra.mxu1 %v3938_v5  ;;  %v3974_v5 = vld [vmem:[%s5700_s1 + $0x20] ss:$56 sps:$4 sm:$0xff]  }
  0xfb   : > { %1746 = vmatprep.subr.bf16.mxu0 %v3943_v6  ;;  %1865 = vmatprep.subr.bf16.mxu1 %v3943_v6 }
  0xfe   : > { %1747 = vmatpush2.bf16.msra.mxu0 %v3941_v7  ;;  %1866 = vmatpush2.bf16.msra.mxu1 %v3941_v7 }
  0xff   : > { %1748 = vmatprep.subr.bf16.mxu0 %v3946_v8  ;;  %1867 = vmatprep.subr.bf16.mxu1 %v3946_v8  ;;  %v3979_v8 = vld [vmem:[%s5700_s1 + $0x6b4] ss:$56 sps:$4 sm:$0xff]  }
 0x102   : > { %1749 = vmatpush2.bf16.msra.mxu0 %v3944_v9  ;;  %1868 = vmatpush2.bf16.msra.mxu1 %v3944_v9 }
 0x103   : > { %1750 = vmatprep.subr.bf16.mxu0 %v3949_v10  ;;  %1869 = vmatprep.subr.bf16.mxu1 %v3949_v10  ;;  %v3977_v10 = vld [vmem:[%s5700_s1 + $0x6b0] ss:$56 sps:$4 sm:$0xff]  }
 0x106   : > { %1751 = vmatpush2.bf16.msra.mxu0 %v3947_v11  ;;  %1870 = vmatpush2.bf16.msra.mxu1 %v3947_v11  ;;  %v3982_v11 = vld [vmem:[%s5700_s1 + $0x644] ss:$56 sps:$4 sm:$0xff]  }
 0x107   : > { %1752 = vmatprep.subr.bf16.mxu0 %v3952_v12  ;;  %1871 = vmatprep.subr.bf16.mxu1 %v3952_v12 }
 0x10a   : > { %1753 = vmatpush2.bf16.msra.mxu0 %v3950_v14  ;;  %1872 = vmatpush2.bf16.msra.mxu1 %v3950_v14 }
 0x10b   : > { %2154 = vmatprep.subr.bf16.mxu0 %v3955_v16  ;;  %2273 = vmatprep.subr.bf16.mxu1 %v3955_v16 }
 0x10d   : > { %v4847_v19 = vpop.f32.mrf.mxu0  ;;  %v4849_v20 = vpop.f32.mrf.mxu1  ;;  %1755 = vmatmul.mubr.bf16.vlgmr.msra.gmra.mxu0 %v4512_v35  ;;  %1874 = vmatmul.mubr.bf16.vlgmr.msra.gmra.mxu1 %v4515_v36 }
 0x10e   : > { %2155 = vmatpush1.bf16.msra.mxu0 %v3953_v17  ;;  %2274 = vmatpush1.bf16.msra.mxu1 %v3953_v17 }
 0x10f   : > { %v4856_v22 = vpop.f32.mrf.mxu0  ;;  %v4858_v23 = vpop.f32.mrf.mxu1  ;;  %2156 = vmatprep.subr.bf16.mxu0 %v3958_v18  ;;  %2275 = vmatprep.subr.bf16.mxu1 %v3958_v18 }
 0x110   : > { %1764 = vmatprep.mubr.bf16.mxu0 %v4524_v39  ;;  %1883 = vmatprep.mubr.bf16.mxu1 %v4527_v40 }
 0x111   : > { %v4866_v35 = vpop.f32.mrf.mxu0  ;;  %v4868_v36 = vpop.f32.mrf.mxu1 }
 0x112   : > { %v453_v25 = vpack.c.bf16 %v4866_v35, %v4847_v19  ;;  %v597_v26 = vpack.c.bf16 %v4868_v36, %v4849_v20  ;;  %2157 = vmatpush1.bf16.msra.mxu0 %v3956_v21  ;;  %2276 = vmatpush1.bf16.msra.mxu1 %v3956_v21  ;;  %v3980_v21 = vld [vmem:[%s5700_s1 + $0x640] ss:$56 sps:$4 sm:$0xff]  }
 0x113   : > { %v4877_v39 = vpop.f32.mrf.mxu0  ;;  %v4879_v40 = vpop.f32.mrf.mxu1  ;;  %2158 = vmatprep.subr.bf16.mxu0 %v3961_v24  ;;  %2277 = vmatprep.subr.bf16.mxu1 %v3961_v24 }
 0x114   : > { %v3463_v29 = vmul.bf16 3216621497, %v453_v25  ;;  %v3475_v30 = vmul.bf16 3216621497, %v597_v26  ;;  %v454_v31 = vpack.c.bf16 %v4877_v39, %v4856_v22  ;;  %v598_v32 = vpack.c.bf16 %v4879_v40, %v4858_v23  ;;  %v3985_v26 = vld [vmem:[%s5700_s1 + $0x5d4] ss:$56 sps:$4 sm:$0xff]  }
 0x115   : > { %v4893_v33 = vpop.f32.mrf.mxu0  ;;  %v4895_v34 = vpop.f32.mrf.mxu1  ;;  %1765 = vmatmul.mubr.bf16.gmra.mxu0 %v4540_v43  ;;  %1884 = vmatmul.mubr.bf16.gmra.mxu1 %v4543_v44  ;;  %v3967_v43 = vld [vmem:[%s5700_s1 + $0x174] ss:$56 sps:$4 sm:$0xff]  }
 0x116   : > { %4097 = vpow.bf16 %v3463_v29  ;;  %v3464_v37 = vmul.bf16 3216621497, %v454_v31  ;;  %v3476_v38 = vmul.bf16 3216621497, %v598_v32  ;;  %2159 = vmatpush1.bf16.msra.mxu0 %v3959_v27  ;;  %2278 = vmatpush1.bf16.msra.mxu1 %v3959_v27  ;;  %v4911_v44 = vld [vmem:[%s4438_s16 + $0x4] ss:$8 sps:$4 sm:$0xff]  }
 0x117   : > { %4099 = vpow.bf16 %v3475_v30  ;;  %v4903_v45 = vpop.f32.mrf.mxu0  ;;  %v4905_v46 = vpop.f32.mrf.mxu1  ;;  %2160 = vmatprep.subr.bf16.mxu0 %v3964_v28  ;;  %2279 = vmatprep.subr.bf16.mxu1 %v3964_v28  ;;  %v3983_v28 = vld [vmem:[%s5700_s1 + $0x5d0] ss:$56 sps:$4 sm:$0xff]   ;;  %v3988_v29 = vld [vmem:[%s5700_s1 + $0x564] ss:$56 sps:$4 sm:$0xff]  }
 0x118   : > { %4101 = vpow.bf16 %v3464_v37  ;;  %2186 = vmatprep.mubr.bf16.mxu0 %v4911_v44  ;;  %2305 = vmatprep.mubr.bf16.mxu1 %v4915_v47  ;;  %v3986_v37 = vld [vmem:[%s5700_s1 + $0x560] ss:$56 sps:$4 sm:$0xff]  }
 0x119   : > { %4103 = vpow.bf16 %v3476_v38  ;;  %v4918_v48 = vpop.f32.mrf.mxu0  ;;  %v4920_v49 = vpop.f32.mrf.mxu1 }
 0x11a   : > { %v455_v50 = vpack.c.bf16 %v4918_v48, %v4893_v33  ;;  %v599_v51 = vpack.c.bf16 %v4920_v49, %v4895_v34  ;;  %2161 = vmatpush1.bf16.msra.mxu0 %v3962_v41  ;;  %2280 = vmatpush1.bf16.msra.mxu1 %v3962_v41 }
 0x11b   : > { %v4929_v53 = vpop.f32.mrf.mxu0  ;;  %v4931_v54 = vpop.f32.mrf.mxu1  ;;  %2162 = vmatprep.subr.bf16.mxu0 %v3967_v43  ;;  %2281 = vmatprep.subr.bf16.mxu1 %v3967_v43 }
 0x11c   : > { %v3465_v56 = vmul.bf16 3216621497, %v455_v50  ;;  %v3477_v57 = vmul.bf16 3216621497, %v599_v51  ;;  %v456_v58 = vpack.c.bf16 %v4929_v53, %v4903_v45  ;;  %v600_v13 = vpack.c.bf16 %v4931_v54, %v4905_v46 }
 0x11e   : > { %4105 = vpow.bf16 %v3465_v56  ;;  %v3466_v15 = vmul.bf16 3216621497, %v456_v58  ;;  %v3478_v59 = vmul.bf16 3216621497, %v600_v13  ;;  %2163 = vmatpush1.bf16.msra.mxu0 %v3965_v52  ;;  %2282 = vmatpush1.bf16.msra.mxu1 %v3965_v52 }
 0x11f   : > { %4107 = vpow.bf16 %v3477_v57  ;;  %2164 = vmatprep.subr.bf16.mxu0 %v3970_v55  ;;  %2283 = vmatprep.subr.bf16.mxu1 %v3970_v55 }
 0x120   : > { %4109 = vpow.bf16 %v3466_v15  ;;  %v3989_v15 = vld [vmem:[%s5700_s1 + $0x4f0] ss:$56 sps:$4 sm:$0xff]  }
 0x121   : > { %4111 = vpow.bf16 %v3478_v59 }
 0x122   : > { %2165 = vmatpush1.bf16.msra.mxu0 %v3968_v60  ;;  %2284 = vmatpush1.bf16.msra.mxu1 %v3968_v60 }
 0x123   : > { %2166 = vmatprep.subr.bf16.mxu0 %v3973_v61  ;;  %2285 = vmatprep.subr.bf16.mxu1 %v3973_v61 }
 0x124   : > { %v4098_v0 = vpop.eup %4097 }
 0x125   : > { %v4100_v1 = vpop.eup %4099  ;;  %v473_v2 = vadd.bf16 1065369472, %v4098_v0 }
 0x126   : > { %v4102_v3 = vpop.eup %4101  ;;  %v617_v4 = vadd.bf16 1065369472, %v4100_v1  ;;  %2167 = vmatpush1.bf16.msra.mxu0 %v3971_v62  ;;  %2286 = vmatpush1.bf16.msra.mxu1 %v3971_v62 }
 0x127   : > { %v4104_v6 = vpop.eup %4103  ;;  %4113 = vrcp.bf16 %v473_v2  ;;  %v474_v7 = vadd.bf16 1065369472, %v4102_v3  ;;  %2168 = vmatprep.subr.bf16.mxu0 %v3976_v63  ;;  %2287 = vmatprep.subr.bf16.mxu1 %v3976_v63 }
 0x128   : > { %4115 = vrcp.bf16 %v617_v4  ;;  %v618_v9 = vadd.bf16 1065369472, %v4104_v6 }
 0x129   : > { %4117 = vrcp.bf16 %v474_v7 }
 0x12a   : > { %4119 = vrcp.bf16 %v618_v9  ;;  %2169 = vmatpush1.bf16.msra.mxu0 %v3974_v5  ;;  %2288 = vmatpush1.bf16.msra.mxu1 %v3974_v5 }
 0x12b   : > { %2170 = vmatprep.subr.bf16.mxu0 %v3979_v8  ;;  %2289 = vmatprep.subr.bf16.mxu1 %v3979_v8  ;;  %v3997_v8 = vld [vmem:[%s5700_s1 + $0x414] ss:$56 sps:$4 sm:$0xff]  }
 0x12c   : > { %v4106_v12 = vpop.eup %4105 }
 0x12d   : > { %v4108_v14 = vpop.eup %4107  ;;  %v475_v16 = vadd.bf16 1065369472, %v4106_v12 }
 0x12e   : > { %v4110_v17 = vpop.eup %4109  ;;  %v619_v18 = vadd.bf16 1065369472, %v4108_v14  ;;  %2171 = vmatpush2.bf16.msra.mxu0 %v3977_v10  ;;  %2290 = vmatpush2.bf16.msra.mxu1 %v3977_v10 }
 0x12f   : > { %v4112_v24 = vpop.eup %4111  ;;  %4121 = vrcp.bf16 %v475_v16  ;;  %v476_v25 = vadd.bf16 1065369472, %v4110_v17  ;;  %2172 = vmatprep.subr.bf16.mxu0 %v3982_v11  ;;  %2291 = vmatprep.subr.bf16.mxu1 %v3982_v11 }
 0x130   : > { %4123 = vrcp.bf16 %v619_v18  ;;  %v620_v27 = vadd.bf16 1065369472, %v4112_v24 }
 0x131   : > { %4125 = vrcp.bf16 %v476_v25 }
 0x132   : > { %4127 = vrcp.bf16 %v620_v27  ;;  %2173 = vmatpush2.bf16.msra.mxu0 %v3980_v21  ;;  %2292 = vmatpush2.bf16.msra.mxu1 %v3980_v21 }
 0x133   : > { %2174 = vmatprep.subr.bf16.mxu0 %v3985_v26  ;;  %2293 = vmatprep.subr.bf16.mxu1 %v3985_v26 }
 0x135   : > { %v4114_v30 = vpop.eup %4113 }
 0x136   : > { %v4116_v31 = vpop.eup %4115  ;;  %v478_v32 = vmul.bf16 1065369472, %v4114_v30  ;;  %2175 = vmatpush2.bf16.msra.mxu0 %v3983_v28  ;;  %2294 = vmatpush2.bf16.msra.mxu1 %v3983_v28 }
 0x137   : > { %v4118_v38 = vpop.eup %4117  ;;  %v622_v41 = vmul.bf16 1065369472, %v4116_v31  ;;  %2176 = vmatprep.subr.bf16.mxu0 %v3988_v29  ;;  %2295 = vmatprep.subr.bf16.mxu1 %v3988_v29 }
 0x138   : > { %v4120_v43 = vpop.eup %4119  ;;  %v485_v50 = vunpack.c.l.bf16 %v478_v32  ;;  %v487_v51 = vunpack.c.h.bf16 %v478_v32  ;;  %v480_v52 = vmul.bf16 1065369472, %v4118_v38 }
 0x139   : > { %v629_v55 = vunpack.c.l.bf16 %v622_v41  ;;  %v631_v56 = vunpack.c.h.bf16 %v622_v41  ;;  %v624_v57 = vmul.bf16 1065369472, %v4120_v43 }
 0x13a   : > { %v493_v58 = vmul.f32 %v485_v50, %v4847_v19  ;;  %v495_v13 = vmul.f32 %v487_v51, %v4866_v35  ;;  %2177 = vmatpush2.bf16.msra.mxu0 %v3986_v37  ;;  %2296 = vmatpush2.bf16.msra.mxu1 %v3986_v37  ;;  %v486_v61 = vunpack.c.l.bf16 %v480_v52  ;;  %v488_v62 = vunpack.c.h.bf16 %v480_v52  ;;  %v3994_v19 = vld [vmem:[%s5700_s1 + $0x484] ss:$56 sps:$4 sm:$0xff]  }
 0x13b   : > { %v637_v59 = vmul.f32 %v629_v55, %v4849_v20  ;;  %v639_v60 = vmul.f32 %v631_v56, %v4868_v36  ;;  %2178 = vmatprep.subr.bf16.mxu0 %v3991_v42  ;;  %2297 = vmatprep.subr.bf16.mxu1 %v3991_v42  ;;  %v630_v35 = vunpack.c.l.bf16 %v624_v57  ;;  %v632_v2 = vunpack.c.h.bf16 %v624_v57  ;;  %v3992_v20 = vld [vmem:[%s5700_s1 + $0x480] ss:$56 sps:$4 sm:$0xff]  }
 0x13c   : > { %v501_v63 = vadd.f32 %v495_v13, %v493_v58  ;;  %v494_v5 = vmul.f32 %v486_v61, %v4856_v22  ;;  %v496_v6 = vmul.f32 %v488_v62, %v4877_v39  ;;  %v3998_v42 = vld [vmem:[%s5700_s1 + $0x3a0] ss:$56 sps:$4 sm:$0xff]   ;;  %v4006_v13 = vld [vmem:[%s5700_s1 + $0x2cc] ss:$56 sps:$4 sm:$0xff]  }
 0x13d   : > { %v4122_v0 = vpop.eup %4121  ;;  %v645_v1 = vadd.f32 %v639_v60, %v637_v59  ;;  %v638_v10 = vmul.f32 %v630_v35, %v4858_v23  ;;  %v640_v16 = vmul.f32 %v632_v2, %v4879_v40  ;;  %v3995_v23 = vld [vmem:[%s5700_s1 + $0x410] ss:$56 sps:$4 sm:$0xff]  }
 0x13e   : > { %v4124_v3 = vpop.eup %4123  ;;  %v482_v4 = vmul.bf16 1065369472, %v4122_v0  ;;  %2179 = vmatpush2.bf16.msra.mxu0 %v3989_v15  ;;  %2298 = vmatpush2.bf16.msra.mxu1 %v3989_v15  ;;  %v4001_v56 = vld [vmem:[%s5700_s1 + $0x338] ss:$56 sps:$4 sm:$0xff]   ;;  %v5037_v35 = vld [vmem:[%s4438_s16 + $0x20] ss:$8 sps:$4 sm:$0xff]  }
 0x13f   : > { %v4126_v36 = vpop.eup %4125  ;;  %v626_v7 = vmul.bf16 1065369472, %v4124_v3  ;;  %2180 = vmatprep.subr.bf16.mxu0 %v3994_v19  ;;  %2299 = vmatprep.subr.bf16.mxu1 %v3994_v19  ;;  %v654_v32 = vadd.f32 %v640_v16, %v638_v10  ;;  %v4004_v2 = vld [vmem:[%s5700_s1 + $0x2c8] ss:$56 sps:$4 sm:$0xff]  }
 0x140   : > { %v4128_v9 = vpop.eup %4127  ;;  %v489_v11 = vunpack.c.l.bf16 %v482_v4  ;;  %v491_v12 = vunpack.c.h.bf16 %v482_v4  ;;  %v484_v14 = vmul.bf16 1065369472, %v4126_v36 }
 0x141   : > { %v633_v17 = vunpack.c.l.bf16 %v626_v7  ;;  %v635_v18 = vunpack.c.h.bf16 %v626_v7  ;;  %v628_v22 = vmul.bf16 1065369472, %v4128_v9  ;;  %v5055_v9 = vld [vmem:[%s4438_s16 + $0x34] ss:$8 sps:$4 sm:$0xff]  }
 0x142   : > { %v497_v39 = vmul.f32 %v489_v11, %v4893_v33  ;;  %v499_v21 = vmul.f32 %v491_v12, %v4918_v48  ;;  %v490_v24 = vunpack.c.l.bf16 %v484_v14  ;;  %v492_v25 = vunpack.c.h.bf16 %v484_v14  ;;  %2181 = vmatpush2.bf16.msra.mxu0 %v3992_v20  ;;  %2300 = vmatpush2.bf16.msra.mxu1 %v3992_v20  ;;  %v4000_v33 = vld [vmem:[%s5700_s1 + $0x3a4] ss:$56 sps:$4 sm:$0xff]  }
 0x143   : > { %v641_v26 = vmul.f32 %v633_v17, %v4895_v34  ;;  %v643_v27 = vmul.f32 %v635_v18, %v4920_v49  ;;  %v634_v40 = vunpack.c.l.bf16 %v628_v22  ;;  %v636_v28 = vunpack.c.h.bf16 %v628_v22  ;;  %2182 = vmatprep.subr.bf16.mxu0 %v3997_v8  ;;  %2301 = vmatprep.subr.bf16.mxu1 %v3997_v8  ;;  %v5051_v8 = vld [vmem:[%s4438_s16 + $0x14] ss:$8 sps:$4 sm:$0xff]  }
 0x144   : > { %v510_v48 = vadd.f32 %v496_v6, %v494_v5  ;;  %v502_v29 = vadd.f32 %v501_v63, %v497_v39  ;;  %v498_v30 = vmul.f32 %v490_v24, %v4903_v45  ;;  %v500_v31 = vmul.f32 %v492_v25, %v4929_v53  ;;  %v4003_v45 = vld [vmem:[%s5700_s1 + $0x33c] ss:$56 sps:$4 sm:$0xff]   ;;  %v5033_v63 = vld [vmem:[%s4438_s16] ss:$8 sps:$4 sm:$0xff]   ;;  %v4007_v39 = vld [vmem:[%s5700_s1 + $0x258] ss:$56 sps:$4 sm:$0xff]  }
 0x145   : > { %v646_v37 = vadd.f32 %v645_v1, %v641_v26  ;;  %v642_v34 = vmul.f32 %v634_v40, %v4905_v46  ;;  %v644_v49 = vmul.f32 %v636_v28, %v4931_v54  ;;  %v4009_v5 = vld [vmem:[%s5700_s1 + $0x25c] ss:$56 sps:$4 sm:$0xff]   ;;  %v4012_v26 = vld [vmem:[%s5700_s1 + $0x1ec] ss:$56 sps:$4 sm:$0xff]  }
 0x146   : > { %v503_v38 = vadd.f32 %v502_v29, %v499_v21  ;;  %v511_v41 = vadd.f32 %v510_v48, %v498_v30  ;;  %2183 = vmatpush2.bf16.msra.mxu0 %v3995_v23  ;;  %2302 = vmatpush2.bf16.msra.mxu1 %v3995_v23 }
 0x147   : > { %v647_v43 = vadd.f32 %v646_v37, %v643_v27  ;;  %v655_v50 = vadd.f32 %v654_v32, %v642_v34  ;;  %2184 = vmatprep.subr.bf16.mxu0 %v4000_v33  ;;  %2303 = vmatprep.subr.bf16.mxu1 %v4000_v33  ;;  %v5088_v37 = vld [vmem:[%s4438_s16 + $0x10] ss:$8 sps:$4 sm:$0xff]  }
 0x148   : > { %v504_v53 = vrot.slane %v503_v38, 4  ;;  %v512_v46 = vadd.f32 %v511_v41, %v500_v31  ;;  %v5092_v34 = vld [vmem:[%s4438_s16 + $0x30] ss:$8 sps:$4 sm:$0xff]  }
 0x149   : > { %v648_v51 = vrot.slane %v647_v43, 4  ;;  %v656_v54 = vadd.f32 %v655_v50, %v644_v49 }
 0x14a   : > { %v505_v52 = vadd.f32 %v504_v53, %v503_v38  ;;  %v513_v55 = vrot.slane %v512_v46, 4  ;;  %2185 = vmatpush2.bf16.msra.mxu0 %v3998_v42  ;;  %2304 = vmatpush2.bf16.msra.mxu1 %v3998_v42  ;;  %v4010_v38 = vld [vmem:[%s5700_s1 + $0x1e8] ss:$56 sps:$4 sm:$0xff]  }
 0x14b   : > { %v649_v57 = vadd.f32 %v648_v51, %v647_v43  ;;  %v657_v58 = vrot.slane %v656_v54, 4  ;;  %2586 = vmatprep.subr.bf16.mxu0 %v4003_v45  ;;  %2705 = vmatprep.subr.bf16.mxu1 %v4003_v45  ;;  %v4015_v45 = vld [vmem:[%s5700_s1 + $0x17c] ss:$56 sps:$4 sm:$0xff]  }
 0x14c   : > { %v506_v15 = vrot.slane %v505_v52, 2  ;;  %v514_v59 = vadd.f32 %v513_v55, %v512_v46  ;;  %v4013_v55 = vld [vmem:[%s5700_s1 + $0x178] ss:$56 sps:$4 sm:$0xff]  }
 0x14d   : > { %v650_v60 = vrot.slane %v649_v57, 2  ;;  %v658_v61 = vadd.f32 %v657_v58, %v656_v54  ;;  %v5028_v62 = vpop.f32.mrf.mxu0  ;;  %v5030_v19 = vpop.f32.mrf.mxu1  ;;  %2187 = vmatmul.mubr.bf16.vlgmr.msra.gmra.mxu0 %v5033_v63  ;;  %2306 = vmatmul.mubr.bf16.vlgmr.msra.gmra.mxu1 %v5037_v35 }
 0x14e   : > { %v507_v0 = vadd.f32 %v506_v15, %v505_v52  ;;  %v515_v1 = vrot.slane %v514_v59, 2  ;;  %2587 = vmatpush1.bf16.msra.mxu0 %v4001_v56  ;;  %2706 = vmatpush1.bf16.msra.mxu1 %v4001_v56  ;;  %v4018_v56 = vld [vmem:[%s5700_s1 + $0x10c] ss:$56 sps:$4 sm:$0xff]  }
 0x14f   : > { %v651_v3 = vadd.f32 %v650_v60, %v649_v57  ;;  %v659_v4 = vrot.slane %v658_v61, 2  ;;  %v5043_v20 = vpop.f32.mrf.mxu0  ;;  %v5045_v36 = vpop.f32.mrf.mxu1  ;;  %2588 = vmatprep.subr.bf16.mxu0 %v4006_v13  ;;  %2707 = vmatprep.subr.bf16.mxu1 %v4006_v13 }
 0x150   : > { %v508_v6 = vrot.slane %v507_v0, 1  ;;  %v516_v7 = vadd.f32 %v515_v1, %v514_v59  ;;  %2196 = vmatprep.mubr.bf16.mxu0 %v5051_v8  ;;  %2315 = vmatprep.mubr.bf16.mxu1 %v5055_v9  ;;  %v4019_v1 = vld [vmem:[%s5700_s1 + $0x98] ss:$56 sps:$4 sm:$0xff]  }
 0x151   : > { %v652_v10 = vrot.slane %v651_v3, 1  ;;  %v660_v11 = vadd.f32 %v659_v4, %v658_v61  ;;  %v5058_v12 = vpop.f32.mrf.mxu0  ;;  %v5060_v14 = vpop.f32.mrf.mxu1  ;;  %v4016_v61 = vld [vmem:[%s5700_s1 + $0x108] ss:$56 sps:$4 sm:$0xff]  }
 0x152   : > { %v509_v16 = vadd.f32 %v508_v6, %v507_v0  ;;  %v517_v17 = vrot.slane %v516_v7, 1  ;;  %v911_v18 = vpack.c.bf16 %v5058_v12, %v5028_v62  ;;  %v1030_v22 = vpack.c.bf16 %v5060_v14, %v5030_v19  ;;  %2589 = vmatpush1.bf16.msra.mxu0 %v4004_v2  ;;  %2708 = vmatpush1.bf16.msra.mxu1 %v4004_v2  ;;  %v4021_v0 = vld [vmem:[%s5700_s1 + $0x9c] ss:$56 sps:$4 sm:$0xff]   ;;  %v4024_v2 = vld [vmem:[%s5700_s1 + $0x2c] ss:$56 sps:$4 sm:$0xff]  }
 0x153   : > { %v653_v21 = vadd.f32 %v652_v10, %v651_v3  ;;  %v661_v24 = vrot.slane %v660_v11, 1  ;;  %v5069_v25 = vpop.f32.mrf.mxu0  ;;  %v5071_v23 = vpop.f32.mrf.mxu1  ;;  %2590 = vmatprep.subr.bf16.mxu0 %v4009_v5  ;;  %2709 = vmatprep.subr.bf16.mxu1 %v4009_v5  ;;  %v4022_v10 = vld [vmem:[%s5700_s1 + $0x28] ss:$56 sps:$4 sm:$0xff]  }
 0x154   : > { %v518_v27 = vadd.f32 %v517_v17, %v516_v7  ;;  %v3511_v40 = vmul.bf16 3216621497, %v911_v18  ;;  %v3515_v28 = vmul.bf16 3216621497, %v1030_v22  ;;  %v912_v33 = vpack.c.bf16 %v5069_v25, %v5043_v20  ;;  %v4027_v17 = vld [vmem:[%s5700_s1 + $0x6bc] ss:$56 sps:$4 sm:$0xff]  }
 0x155   : > { %v5079_v48 = vsel %vm663_vm0, %v509_v16, %v653_v21  ;;  %v662_v29 = vadd.f32 %v661_v24, %v660_v11  ;;  %v1031_v30 = vpack.c.bf16 %v5071_v23, %v5045_v36  ;;  %v5083_v31 = vpop.f32.mrf.mxu0  ;;  %v5085_v32 = vpop.f32.mrf.mxu1  ;;  %2197 = vmatmul.mubr.bf16.gmra.mxu0 %v5088_v37  ;;  %2316 = vmatmul.mubr.bf16.gmra.mxu1 %v5092_v34  ;;  %v4025_v22 = vld [vmem:[%s5700_s1 + $0x6b8] ss:$56 sps:$4 sm:$0xff]  }
 0x156   : > { %4129 = vpow.bf16 %v3511_v40  ;;  %v3512_v49 = vmul.bf16 3216621497, %v912_v33  ;;  %2591 = vmatpush1.bf16.msra.mxu0 %v4007_v39  ;;  %2710 = vmatpush1.bf16.msra.mxu1 %v4007_v39  ;;  %v4030_v39 = vld [vmem:[%s5700_s1 + $0x64c] ss:$56 sps:$4 sm:$0xff]  }
 0x157   : > { %v5099_v41 = vsel %vm663_vm0, %v518_v27, %v662_v29  ;;  %4131 = vpow.bf16 %v3515_v28  ;;  %v3516_v42 = vmul.bf16 3216621497, %v1031_v30  ;;  %v5101_v43 = vpop.f32.mrf.mxu0  ;;  %v5103_v50 = vpop.f32.mrf.mxu1  ;;  %2592 = vmatprep.subr.bf16.mxu0 %v4012_v26  ;;  %2711 = vmatprep.subr.bf16.mxu1 %v4012_v26  ;;  %v4028_v28 = vld [vmem:[%s5700_s1 + $0x648] ss:$56 sps:$4 sm:$0xff]   ;;  %v4033_v30 = vld [vmem:[%s5700_s1 + $0x5dc] ss:$56 sps:$4 sm:$0xff]  }
 0x158   : > { %v3276_v53 = vcombine.low %v5079_v48, %v5099_v41  ;;  %4133 = vpow.bf16 %v3512_v49  ;;  %2618 = vmatprep.mubr.bf16.mxu0 %v4911_v44  ;;  %2737 = vmatprep.mubr.bf16.mxu1 %v4915_v47  ;;  %v4061_v48 = vld [vmem:[%s5700_s1 + $0x180] ss:$56 sps:$4 sm:$0xff]  }
 0x159   : > { %4135 = vpow.bf16 %v3516_v42  ;;  %v5112_v46 = vpop.f32.mrf.mxu0  ;;  %v5114_v51 = vpop.f32.mrf.mxu1  ;;  %v4036_v42 = vld [vmem:[%s5700_s1 + $0x56c] ss:$56 sps:$4 sm:$0xff]  }
 0x15a   : > { %v913_v54 = vpack.c.bf16 %v5112_v46, %v5083_v31  ;;  %v1032_v52 = vpack.c.bf16 %v5114_v51, %v5085_v32  ;;  %2593 = vmatpush1.bf16.msra.mxu0 %v4010_v38  ;;  %2712 = vmatpush1.bf16.msra.mxu1 %v4010_v38  ;;  %v4031_v38 = vld [vmem:[%s5700_s1 + $0x5d8] ss:$56 sps:$4 sm:$0xff]  }
 0x15b   : > { %v5123_v44 = vpop.f32.mrf.mxu0  ;;  %v5125_v47 = vpop.f32.mrf.mxu1  ;;  %2594 = vmatprep.subr.bf16.mxu0 %v4015_v45  ;;  %2713 = vmatprep.subr.bf16.mxu1 %v4015_v45 }
 0x15c   : > { %v3513_v57 = vmul.bf16 3216621497, %v913_v54  ;;  %v3517_v58 = vmul.bf16 3216621497, %v1032_v52  ;;  %v914_v13 = vpack.c.bf16 %v5123_v44, %v5101_v43  ;;  %v1033_v15 = vpack.c.bf16 %v5125_v47, %v5103_v50 }
 0x15e   : > { %4137 = vpow.bf16 %v3513_v57  ;;  %v3514_v59 = vmul.bf16 3216621497, %v914_v13  ;;  %v3518_v60 = vmul.bf16 3216621497, %v1033_v15  ;;  %2595 = vmatpush1.bf16.msra.mxu0 %v4013_v55  ;;  %2714 = vmatpush1.bf16.msra.mxu1 %v4013_v55  ;;  %v4034_v55 = vld [vmem:[%s5700_s1 + $0x568] ss:$56 sps:$4 sm:$0xff]  }
 0x15f   : > { %4139 = vpow.bf16 %v3517_v58  ;;  %2596 = vmatprep.subr.bf16.mxu0 %v4018_v56  ;;  %2715 = vmatprep.subr.bf16.mxu1 %v4018_v56  ;;  %v4039_v58 = vld [vmem:[%s5700_s1 + $0x4fc] ss:$56 sps:$4 sm:$0xff]  }
 0x160   : > { %4141 = vpow.bf16 %v3514_v59 }
 0x161   : > { %4143 = vpow.bf16 %v3518_v60 }
 0x162   : > { %2597 = vmatpush1.bf16.msra.mxu0 %v4016_v61  ;;  %2716 = vmatpush1.bf16.msra.mxu1 %v4016_v61 }
 0x163   : > { %2598 = vmatprep.subr.bf16.mxu0 %v4021_v0  ;;  %2717 = vmatprep.subr.bf16.mxu1 %v4021_v0 }
 0x164   : > { %v4130_v3 = vpop.eup %4129 }
 0x165   : > { %v4132_v4 = vpop.eup %4131  ;;  %v931_v5 = vadd.bf16 1065369472, %v4130_v3 }
 0x166   : > { %v4134_v6 = vpop.eup %4133  ;;  %v1050_v7 = vadd.bf16 1065369472, %v4132_v4  ;;  %2599 = vmatpush1.bf16.msra.mxu0 %v4019_v1  ;;  %2718 = vmatpush1.bf16.msra.mxu1 %v4019_v1  ;;  %v4037_v4 = vld [vmem:[%s5700_s1 + $0x4f8] ss:$56 sps:$4 sm:$0xff]  }
 0x167   : > { %v4136_v11 = vpop.eup %4135  ;;  %4145 = vrcp.bf16 %v931_v5  ;;  %v932_v16 = vadd.bf16 1065369472, %v4134_v6  ;;  %2600 = vmatprep.subr.bf16.mxu0 %v4024_v2  ;;  %2719 = vmatprep.subr.bf16.mxu1 %v4024_v2 }
 0x168   : > { %4147 = vrcp.bf16 %v1050_v7  ;;  %v1051_v18 = vadd.bf16 1065369472, %v4136_v11 }
 0x169   : > { %4149 = vrcp.bf16 %v932_v16 }
 0x16a   : > { %4151 = vrcp.bf16 %v1051_v18  ;;  %2601 = vmatpush1.bf16.msra.mxu0 %v4022_v10  ;;  %2720 = vmatpush1.bf16.msra.mxu1 %v4022_v10 }
 0x16b   : > { %2602 = vmatprep.subr.bf16.mxu0 %v4027_v17  ;;  %2721 = vmatprep.subr.bf16.mxu1 %v4027_v17 }
 0x16c   : > { %v4138_v21 = vpop.eup %4137 }
 0x16d   : > { %v4140_v24 = vpop.eup %4139  ;;  %v933_v26 = vadd.bf16 1065369472, %v4138_v21 }
 0x16e   : > { %v4142_v27 = vpop.eup %4141  ;;  %v1052_v40 = vadd.bf16 1065369472, %v4140_v24  ;;  %2603 = vmatpush2.bf16.msra.mxu0 %v4025_v22  ;;  %2722 = vmatpush2.bf16.msra.mxu1 %v4025_v22 }
 0x16f   : > { %v4144_v33 = vpop.eup %4143  ;;  %4153 = vrcp.bf16 %v933_v26  ;;  %v934_v29 = vadd.bf16 1065369472, %v4142_v27  ;;  %2604 = vmatprep.subr.bf16.mxu0 %v4030_v39  ;;  %2723 = vmatprep.subr.bf16.mxu1 %v4030_v39  ;;  %v4045_v27 = vld [vmem:[%s5700_s1 + $0x41c] ss:$56 sps:$4 sm:$0xff]  }
 0x170   : > { %4155 = vrcp.bf16 %v1052_v40  ;;  %v1053_v49 = vadd.bf16 1065369472, %v4144_v33 }
 0x171   : > { %4157 = vrcp.bf16 %v934_v29 }
 0x172   : > { %4159 = vrcp.bf16 %v1053_v49  ;;  %2605 = vmatpush2.bf16.msra.mxu0 %v4028_v28  ;;  %2724 = vmatpush2.bf16.msra.mxu1 %v4028_v28 }
 0x173   : > { %2606 = vmatprep.subr.bf16.mxu0 %v4033_v30  ;;  %2725 = vmatprep.subr.bf16.mxu1 %v4033_v30 }
 0x175   : > { %v4146_v45 = vpop.eup %4145 }
 0x176   : > { %v4148_v54 = vpop.eup %4147  ;;  %v936_v52 = vmul.bf16 1065369472, %v4146_v45  ;;  %2607 = vmatpush2.bf16.msra.mxu0 %v4031_v38  ;;  %2726 = vmatpush2.bf16.msra.mxu1 %v4031_v38 }
 0x177   : > { %v4150_v56 = vpop.eup %4149  ;;  %v1055_v57 = vmul.bf16 1065369472, %v4148_v54  ;;  %2608 = vmatprep.subr.bf16.mxu0 %v4036_v42  ;;  %2727 = vmatprep.subr.bf16.mxu1 %v4036_v42 }
 0x178   : > { %v4152_v13 = vpop.eup %4151  ;;  %v943_v15 = vunpack.c.l.bf16 %v936_v52  ;;  %v945_v59 = vunpack.c.h.bf16 %v936_v52  ;;  %v938_v60 = vmul.bf16 1065369472, %v4150_v56 }
 0x179   : > { %v1062_v61 = vunpack.c.l.bf16 %v1055_v57  ;;  %v1064_v0 = vunpack.c.h.bf16 %v1055_v57  ;;  %v1057_v1 = vmul.bf16 1065369472, %v4152_v13 }
 0x17a   : > { %v951_v2 = vmul.f32 %v943_v15, %v5028_v62  ;;  %v953_v3 = vmul.f32 %v945_v59, %v5058_v12  ;;  %2609 = vmatpush2.bf16.msra.mxu0 %v4034_v55  ;;  %2728 = vmatpush2.bf16.msra.mxu1 %v4034_v55  ;;  %v944_v7 = vunpack.c.l.bf16 %v938_v60  ;;  %v946_v10 = vunpack.c.h.bf16 %v938_v60  ;;  %v4042_v62 = vld [vmem:[%s5700_s1 + $0x48c] ss:$56 sps:$4 sm:$0xff]  }
 0x17b   : > { %v1070_v5 = vmul.f32 %v1062_v61, %v5030_v19  ;;  %v1072_v6 = vmul.f32 %v1064_v0, %v5060_v14  ;;  %2610 = vmatprep.subr.bf16.mxu0 %v4039_v58  ;;  %2729 = vmatprep.subr.bf16.mxu1 %v4039_v58  ;;  %v1063_v11 = vunpack.c.l.bf16 %v1057_v1  ;;  %v1065_v16 = vunpack.c.h.bf16 %v1057_v1  ;;  %v4040_v19 = vld [vmem:[%s5700_s1 + $0x488] ss:$56 sps:$4 sm:$0xff]  }
 0x17c   : > { %v959_v18 = vadd.f32 %v953_v3, %v951_v2  ;;  %v952_v21 = vmul.f32 %v944_v7, %v5043_v20  ;;  %v954_v24 = vmul.f32 %v946_v10, %v5069_v25  ;;  %v4046_v1 = vld [vmem:[%s5700_s1 + $0x3a8] ss:$56 sps:$4 sm:$0xff]  }
 0x17d   : > { %v4154_v12 = vpop.eup %4153  ;;  %v1078_v39 = vadd.f32 %v1072_v6, %v1070_v5  ;;  %v1071_v28 = vmul.f32 %v1063_v11, %v5045_v36  ;;  %v1073_v49 = vmul.f32 %v1065_v16, %v5071_v23  ;;  %v4043_v36 = vld [vmem:[%s5700_s1 + $0x418] ss:$56 sps:$4 sm:$0xff]   ;;  %v4054_v11 = vld [vmem:[%s5700_s1 + $0x2d4] ss:$56 sps:$4 sm:$0xff]  }
 0x17e   : > { %v4156_v17 = vpop.eup %4155  ;;  %v940_v22 = vmul.bf16 1065369472, %v4154_v12  ;;  %2611 = vmatpush2.bf16.msra.mxu0 %v4037_v4  ;;  %2730 = vmatpush2.bf16.msra.mxu1 %v4037_v4  ;;  %v4049_v7 = vld [vmem:[%s5700_s1 + $0x340] ss:$56 sps:$4 sm:$0xff]  }
 0x17f   : > { %v4158_v14 = vpop.eup %4157  ;;  %v1059_v26 = vmul.bf16 1065369472, %v4156_v17  ;;  %2612 = vmatprep.subr.bf16.mxu0 %v4042_v62  ;;  %2731 = vmatprep.subr.bf16.mxu1 %v4042_v62  ;;  %v1087_v59 = vadd.f32 %v1073_v49, %v1071_v28  ;;  %v4358_v17 = vmov 1983009808  }
 0x180   : > { %v4160_v40 = vpop.eup %4159  ;;  %v947_v33 = vunpack.c.l.bf16 %v940_v22  ;;  %v949_v29 = vunpack.c.h.bf16 %v940_v22  ;;  %v942_v30 = vmul.bf16 1065369472, %v4158_v14  ;;  %v3281_v22 = vlaneseq }
 0x181   : > { %v1066_v38 = vunpack.c.l.bf16 %v1059_v26  ;;  %v1068_v42 = vunpack.c.h.bf16 %v1059_v26  ;;  %v1061_v20 = vmul.bf16 1065369472, %v4160_v40 }
 0x182   : > { %v955_v25 = vmul.f32 %v947_v33, %v5083_v31  ;;  %v957_v45 = vmul.f32 %v949_v29, %v5112_v46  ;;  %v948_v54 = vunpack.c.l.bf16 %v942_v30  ;;  %v950_v52 = vunpack.c.h.bf16 %v942_v30  ;;  %2613 = vmatpush2.bf16.msra.mxu0 %v4040_v19  ;;  %2732 = vmatpush2.bf16.msra.mxu1 %v4040_v19  ;;  %v4048_v31 = vld [vmem:[%s5700_s1 + $0x3ac] ss:$56 sps:$4 sm:$0xff]  }
 0x183   : > { %v1074_v55 = vmul.f32 %v1066_v38, %v5085_v32  ;;  %v1076_v56 = vmul.f32 %v1068_v42, %v5114_v51  ;;  %v1067_v23 = vunpack.c.l.bf16 %v1061_v20  ;;  %v1069_v57 = vunpack.c.h.bf16 %v1061_v20  ;;  %2614 = vmatprep.subr.bf16.mxu0 %v4045_v27  ;;  %2733 = vmatprep.subr.bf16.mxu1 %v4045_v27  ;;  %v4052_v27 = vld [vmem:[%s5700_s1 + $0x2d0] ss:$56 sps:$4 sm:$0xff]  }
 0x184   : > { %v968_v46 = vadd.f32 %v954_v24, %v952_v21  ;;  %v960_v58 = vadd.f32 %v959_v18, %v955_v25  ;;  %v956_v13 = vmul.f32 %v948_v54, %v5101_v43  ;;  %v958_v15 = vmul.f32 %v950_v52, %v5123_v44  ;;  %v4051_v43 = vld [vmem:[%s5700_s1 + $0x344] ss:$56 sps:$4 sm:$0xff]  }
 0x185   : > { %v1079_v60 = vadd.f32 %v1078_v39, %v1074_v55  ;;  %v1075_v32 = vmul.f32 %v1067_v23, %v5103_v50  ;;  %v1077_v51 = vmul.f32 %v1069_v57, %v5125_v47  ;;  %v3279_v18 = vunpack.c.l.s4 %v4358_v17  ;;  %v4055_v55 = vld [vmem:[%s5700_s1 + $0x260] ss:$56 sps:$4 sm:$0xff]  }
 0x186   : > { %v961_v61 = vadd.f32 %v960_v58, %v957_v45  ;;  %v969_v0 = vadd.f32 %v968_v46, %v956_v13  ;;  %2615 = vmatpush2.bf16.msra.mxu0 %v4043_v36  ;;  %2734 = vmatpush2.bf16.msra.mxu1 %v4043_v36  ;;  %v3282_v38 = vshrl.u32 %v3281_v22, 7  ;;  %v4060_v58 = vld [vmem:[%s5700_s1 + $0x1f4] ss:$56 sps:$4 sm:$0xff]  }
 0x187   : > { %v1080_v2 = vadd.f32 %v1079_v60, %v1076_v56  ;;  %v1088_v3 = vadd.f32 %v1087_v59, %v1075_v32  ;;  %2616 = vmatprep.subr.bf16.mxu0 %v4048_v31  ;;  %2735 = vmatprep.subr.bf16.mxu1 %v4048_v31  ;;  %v3280_v49 = vunpack.c.0.s8 %v3279_v18  ;;  %v4066_v22 = vld [vmem:[%s5700_s1 + $0x114] ss:$56 sps:$4 sm:$0xff]  }
 0x188   : > { %v962_v44 = vrot.slane %v961_v61, 4  ;;  %v970_v50 = vadd.f32 %v969_v0, %v958_v15 }
 0x189   : > { %v1081_v4 = vrot.slane %v1080_v2, 4  ;;  %v1089_v47 = vadd.f32 %v1088_v3, %v1077_v51  ;;  %v5260_v32 = vsub.s32 %v3280_v49, %v3282_v38  ;;  %v4058_v3 = vld [vmem:[%s5700_s1 + $0x1f0] ss:$56 sps:$4 sm:$0xff]   ;;  %v4072_v49 = vld [vmem:[%s5700_s1 + $0x34] ss:$56 sps:$4 sm:$0xff]  }
 0x18a   : > { %v963_v5 = vadd.f32 %v962_v44, %v961_v61  ;;  %v971_v6 = vrot.slane %v970_v50, 4  ;;  %2617 = vmatpush2.bf16.msra.mxu0 %v4046_v1  ;;  %2736 = vmatpush2.bf16.msra.mxu1 %v4046_v1 }
 0x18b   : > { %v1082_v10 = vadd.f32 %v1081_v4, %v1080_v2  ;;  %v1090_v62 = vrot.slane %v1089_v47, 4  ;;  %3018 = vmatprep.subr.bf16.mxu0 %v4051_v43  ;;  %3137 = vmatprep.subr.bf16.mxu1 %v4051_v43 }
 0x18c   : > { %v964_v12 = vrot.slane %v963_v5, 2  ;;  %v972_v16 = vadd.f32 %v971_v6, %v970_v50 }
 0x18d   : > { %v1083_v19 = vrot.slane %v1082_v10, 2  ;;  %v1091_v14 = vadd.f32 %v1090_v62, %v1089_v47  ;;  %v5222_v39 = vpop.f32.mrf.mxu0  ;;  %v5224_v21 = vpop.f32.mrf.mxu1  ;;  %2619 = vmatmul.mubr.bf16.vlgmr.msra.gmra.mxu0 %v5033_v63  ;;  %2738 = vmatmul.mubr.bf16.vlgmr.msra.gmra.mxu1 %v5037_v35  ;;  %v4057_v63 = vld [vmem:[%s5700_s1 + $0x264] ss:$56 sps:$4 sm:$0xff]   ;;  %v3284_v62 = vrot.slane %v3276_v53, %v5260_v32 }
 0x18e   : > { %v965_v24 = vadd.f32 %v964_v12, %v963_v5  ;;  %v973_v26 = vrot.slane %v972_v16, 2  ;;  %3019 = vmatpush1.bf16.msra.mxu0 %v4049_v7  ;;  %3138 = vmatpush1.bf16.msra.mxu1 %v4049_v7  ;;  %v4063_v5 = vld [vmem:[%s5700_s1 + $0x184] ss:$56 sps:$4 sm:$0xff]  }
 0x18f   : > { %v1084_v40 = vadd.f32 %v1083_v19, %v1082_v10  ;;  %v1092_v28 = vrot.slane %v1091_v14, 2  ;;  %v5231_v33 = vpop.f32.mrf.mxu0  ;;  %v5233_v29 = vpop.f32.mrf.mxu1  ;;  %3020 = vmatprep.subr.bf16.mxu0 %v4054_v11  ;;  %3139 = vmatprep.subr.bf16.mxu1 %v4054_v11  ;;  %v4329_v7 = vld [vmem:[%s4438_s16 + $0x4] ss:$8 sps:$4 sm:$0xff]  }
 0x190   : > { %v966_v35 = vrot.slane %v965_v24, 1  ;;  %v974_v30 = vadd.f32 %v973_v26, %v972_v16  ;;  %2628 = vmatprep.mubr.bf16.mxu0 %v5051_v8  ;;  %2747 = vmatprep.mubr.bf16.mxu1 %v5055_v9  ;;  %v4330_v10 = vld [vmem:[%s4438_s16 + $0x24] ss:$8 sps:$4 sm:$0xff]  }
 0x191   : > { %v1085_v42 = vrot.slane %v1084_v40, 1  ;;  %v1093_v20 = vadd.f32 %v1092_v28, %v1091_v14  ;;  %v5240_v25 = vpop.f32.mrf.mxu0  ;;  %v5242_v45 = vpop.f32.mrf.mxu1  ;;  %v4064_v28 = vld [vmem:[%s5700_s1 + $0x110] ss:$56 sps:$4 sm:$0xff]  }
 0x192   : > { %v975_v54 = vrot.slane %v974_v30, 1  ;;  %v1343_v52 = vpack.c.bf16 %v5240_v25, %v5222_v39  ;;  %v1462_v36 = vpack.c.bf16 %v5242_v45, %v5224_v21  ;;  %3021 = vmatpush1.bf16.msra.mxu0 %v4052_v27  ;;  %3140 = vmatpush1.bf16.msra.mxu1 %v4052_v27  ;;  %v967_v56 = vadd.f32 %v966_v35, %v965_v24  ;;  %v4069_v35 = vld [vmem:[%s5700_s1 + $0xa4] ss:$56 sps:$4 sm:$0xff]  }
 0x193   : > { %v1086_v23 = vadd.f32 %v1085_v42, %v1084_v40  ;;  %v1094_v57 = vrot.slane %v1093_v20, 1  ;;  %v5251_v31 = vpop.f32.mrf.mxu0  ;;  %v5253_v46 = vpop.f32.mrf.mxu1  ;;  %3022 = vmatprep.subr.bf16.mxu0 %v4057_v63  ;;  %3141 = vmatprep.subr.bf16.mxu1 %v4057_v63 }
 0x194   : > { %v976_v13 = vadd.f32 %v975_v54, %v974_v30  ;;  %v3551_v15 = vmul.bf16 3216621497, %v1343_v52  ;;  %v3555_v59 = vmul.bf16 3216621497, %v1462_v36  ;;  %v1344_v60 = vpack.c.bf16 %v5251_v31, %v5231_v33  ;;  %v4067_v30 = vld [vmem:[%s5700_s1 + $0xa0] ss:$56 sps:$4 sm:$0xff]  }
 0x195   : > { %v1095_v51 = vadd.f32 %v1094_v57, %v1093_v20  ;;  %v1463_v61 = vpack.c.bf16 %v5253_v46, %v5233_v29  ;;  %v5264_v0 = vpop.f32.mrf.mxu0  ;;  %v5266_v1 = vpop.f32.mrf.mxu1  ;;  %2629 = vmatmul.mubr.bf16.gmra.mxu0 %v5088_v37  ;;  %2748 = vmatmul.mubr.bf16.gmra.mxu1 %v5092_v34  ;;  %v1096_v43 = vsel %vm663_vm0, %v967_v56, %v1086_v23  ;;  %v4070_v36 = vld [vmem:[%s5700_s1 + $0x30] ss:$56 sps:$4 sm:$0xff]   ;;  %v4075_v23 = vld [vmem:[%s5700_s1 + $0x6c4] ss:$56 sps:$4 sm:$0xff]  }
 0x196   : > { %4161 = vpow.bf16 %v3551_v15  ;;  %v3552_v2 = vmul.bf16 3216621497, %v1344_v60  ;;  %3023 = vmatpush1.bf16.msra.mxu0 %v4055_v55  ;;  %3142 = vmatpush1.bf16.msra.mxu1 %v4055_v55 }
 0x197   : > { %v1097_v44 = vsel %vm663_vm0, %v976_v13, %v1095_v51  ;;  %4163 = vpow.bf16 %v3555_v59  ;;  %v3556_v50 = vmul.bf16 3216621497, %v1463_v61  ;;  %v5275_v4 = vpop.f32.mrf.mxu0  ;;  %v5277_v47 = vpop.f32.mrf.mxu1  ;;  %3024 = vmatprep.subr.bf16.mxu0 %v4060_v58  ;;  %3143 = vmatprep.subr.bf16.mxu1 %v4060_v58  ;;  %v4073_v58 = vld [vmem:[%s5700_s1 + $0x6c0] ss:$56 sps:$4 sm:$0xff]   ;;  %v4078_v13 = vld [vmem:[%s5700_s1 + $0x654] ss:$56 sps:$4 sm:$0xff]  }
 0x198   : > { %v3277_v6 = vcombine.low %v1096_v43, %v1097_v44  ;;  %4165 = vpow.bf16 %v3552_v2  ;;  %3050 = vmatprep.mubr.bf16.mxu0 %v4329_v7  ;;  %3169 = vmatprep.mubr.bf16.mxu1 %v4330_v10  ;;  %v4076_v2 = vld [vmem:[%s5700_s1 + $0x650] ss:$56 sps:$4 sm:$0xff]   ;;  %v4081_v44 = vld [vmem:[%s5700_s1 + $0x5e4] ss:$56 sps:$4 sm:$0xff]  }
 0x199   : > { %4167 = vpow.bf16 %v3556_v50  ;;  %v5288_v11 = vpop.f32.mrf.mxu0  ;;  %v5290_v12 = vpop.f32.mrf.mxu1 }
 0x19a   : > { %v3291_v16 = vrot.slane %v3277_v6, %v5260_v32  ;;  %v1345_v17 = vpack.c.bf16 %v5288_v11, %v5264_v0  ;;  %v1464_v18 = vpack.c.bf16 %v5290_v12, %v5266_v1  ;;  %3025 = vmatpush1.bf16.msra.mxu0 %v4058_v3  ;;  %3144 = vmatpush1.bf16.msra.mxu1 %v4058_v3  ;;  %v4084_v6 = vld [vmem:[%s5700_s1 + $0x574] ss:$56 sps:$4 sm:$0xff]  }
 0x19b   : > { %v5300_v41 = vpop.f32.mrf.mxu0  ;;  %v5302_v53 = vpop.f32.mrf.mxu1  ;;  %3026 = vmatprep.subr.bf16.mxu0 %v4063_v5  ;;  %3145 = vmatprep.subr.bf16.mxu1 %v4063_v5  ;;  %v4079_v5 = vld [vmem:[%s5700_s1 + $0x5e0] ss:$56 sps:$4 sm:$0xff]  }
 0x19c   : > { %v3292_v19 = vcombine.low %v3284_v62, %v3291_v16  ;;  %v3553_v14 = vmul.bf16 3216621497, %v1345_v17  ;;  %v3557_v24 = vmul.bf16 3216621497, %v1464_v18  ;;  %v1346_v26 = vpack.c.bf16 %v5300_v41, %v5275_v4  ;;  %v4082_v16 = vld [vmem:[%s5700_s1 + $0x570] ss:$56 sps:$4 sm:$0xff]  }
 0x19d   : > { %v1465_v27 = vpack.c.bf16 %v5302_v53, %v5277_v47 }
 0x19e   : > { %4169 = vpow.bf16 %v3553_v14  ;;  %v3554_v40 = vmul.bf16 3216621497, %v1346_v26  ;;  %3027 = vmatpush1.bf16.msra.mxu0 %v4061_v48  ;;  %3146 = vmatpush1.bf16.msra.mxu1 %v4061_v48  ;;  %3343 = vst [vmem:[%s4891_s7] sm:$0xff] %v3292_v19  ;;  %v4087_v48 = vld [vmem:[%s5700_s1 + $0x504] ss:$56 sps:$4 sm:$0xff]  }
 0x19f   : > { %4171 = vpow.bf16 %v3557_v24  ;;  %v3558_v63 = vmul.bf16 3216621497, %v1465_v27  ;;  %3028 = vmatprep.subr.bf16.mxu0 %v4066_v22  ;;  %3147 = vmatprep.subr.bf16.mxu1 %v4066_v22 }
 0x1a0   : > { %4173 = vpow.bf16 %v3554_v40 }
 0x1a1   : > { %4175 = vpow.bf16 %v3558_v63 }
 0x1a2   : > { %3029 = vmatpush1.bf16.msra.mxu0 %v4064_v28  ;;  %3148 = vmatpush1.bf16.msra.mxu1 %v4064_v28 }
 0x1a3   : > { %3030 = vmatprep.subr.bf16.mxu0 %v4069_v35  ;;  %3149 = vmatprep.subr.bf16.mxu1 %v4069_v35  ;;  %v4085_v35 = vld [vmem:[%s5700_s1 + $0x500] ss:$56 sps:$4 sm:$0xff]  }
 0x1a4   : > { %v4162_v38 = vpop.eup %4161 }
 0x1a5   : > { %v4164_v42 = vpop.eup %4163  ;;  %v1363_v20 = vadd.bf16 1065369472, %v4162_v38 }
 0x1a6   : > { %v4166_v54 = vpop.eup %4165  ;;  %v1482_v52 = vadd.bf16 1065369472, %v4164_v42  ;;  %3031 = vmatpush1.bf16.msra.mxu0 %v4067_v30  ;;  %3150 = vmatpush1.bf16.msra.mxu1 %v4067_v30 }
 0x1a7   : > { %v4168_v55 = vpop.eup %4167  ;;  %4177 = vrcp.bf16 %v1363_v20  ;;  %v1364_v56 = vadd.bf16 1065369472, %v4166_v54  ;;  %3032 = vmatprep.subr.bf16.mxu0 %v4072_v49  ;;  %3151 = vmatprep.subr.bf16.mxu1 %v4072_v49 }
 0x1a8   : > { %4179 = vrcp.bf16 %v1482_v52  ;;  %v1483_v57 = vadd.bf16 1065369472, %v4168_v55 }
 0x1a9   : > { %4181 = vrcp.bf16 %v1364_v56 }
 0x1aa   : > { %4183 = vrcp.bf16 %v1483_v57  ;;  %3033 = vmatpush1.bf16.msra.mxu0 %v4070_v36  ;;  %3152 = vmatpush1.bf16.msra.mxu1 %v4070_v36 }
 0x1ab   : > { %3034 = vmatprep.subr.bf16.mxu0 %v4075_v23  ;;  %3153 = vmatprep.subr.bf16.mxu1 %v4075_v23 }
 0x1ac   : > { %v4170_v15 = vpop.eup %4169 }
 0x1ad   : > { %v4172_v59 = vpop.eup %4171  ;;  %v1365_v60 = vadd.bf16 1065369472, %v4170_v15 }
 0x1ae   : > { %v4174_v51 = vpop.eup %4173  ;;  %v1484_v61 = vadd.bf16 1065369472, %v4172_v59  ;;  %3035 = vmatpush2.bf16.msra.mxu0 %v4073_v58  ;;  %3154 = vmatpush2.bf16.msra.mxu1 %v4073_v58 }
 0x1af   : > { %v4176_v3 = vpop.eup %4175  ;;  %4185 = vrcp.bf16 %v1365_v60  ;;  %v1366_v43 = vadd.bf16 1065369472, %v4174_v51  ;;  %3036 = vmatprep.subr.bf16.mxu0 %v4078_v13  ;;  %3155 = vmatprep.subr.bf16.mxu1 %v4078_v13  ;;  %v4093_v13 = vld [vmem:[%s5700_s1 + $0x424] ss:$56 sps:$4 sm:$0xff]  }
 0x1b0   : > { %4187 = vrcp.bf16 %v1484_v61  ;;  %v1485_v50 = vadd.bf16 1065369472, %v4176_v3 }
 0x1b1   : > { %4189 = vrcp.bf16 %v1366_v43 }
 0x1b2   : > { %4191 = vrcp.bf16 %v1485_v50  ;;  %3037 = vmatpush2.bf16.msra.mxu0 %v4076_v2  ;;  %3156 = vmatpush2.bf16.msra.mxu1 %v4076_v2 }
 0x1b3   : > { %3038 = vmatprep.subr.bf16.mxu0 %v4081_v44  ;;  %3157 = vmatprep.subr.bf16.mxu1 %v4081_v44 }
 0x1b5   : > { %v4178_v7 = vpop.eup %4177 }
 0x1b6   : > { %v4180_v10 = vpop.eup %4179  ;;  %v1368_v62 = vmul.bf16 1065369472, %v4178_v7  ;;  %3039 = vmatpush2.bf16.msra.mxu0 %v4079_v5  ;;  %3158 = vmatpush2.bf16.msra.mxu1 %v4079_v5 }
 0x1b7   : > { %v4182_v17 = vpop.eup %4181  ;;  %v1487_v18 = vmul.bf16 1065369472, %v4180_v10  ;;  %3040 = vmatprep.subr.bf16.mxu0 %v4084_v6  ;;  %3159 = vmatprep.subr.bf16.mxu1 %v4084_v6 }
 0x1b8   : > { %v4184_v22 = vpop.eup %4183  ;;  %v1375_v19 = vunpack.c.l.bf16 %v1368_v62  ;;  %v1377_v14 = vunpack.c.h.bf16 %v1368_v62  ;;  %v1370_v24 = vmul.bf16 1065369472, %v4182_v17 }
 0x1b9   : > { %v1494_v26 = vunpack.c.l.bf16 %v1487_v18  ;;  %v1496_v27 = vunpack.c.h.bf16 %v1487_v18  ;;  %v1489_v40 = vmul.bf16 1065369472, %v4184_v22 }
 0x1ba   : > { %v1383_v28 = vmul.f32 %v1375_v19, %v5222_v39  ;;  %v1385_v63 = vmul.f32 %v1377_v14, %v5240_v25  ;;  %3041 = vmatpush2.bf16.msra.mxu0 %v4082_v16  ;;  %3160 = vmatpush2.bf16.msra.mxu1 %v4082_v16  ;;  %v1376_v38 = vunpack.c.l.bf16 %v1370_v24  ;;  %v1378_v42 = vunpack.c.h.bf16 %v1370_v24  ;;  %v4090_v39 = vld [vmem:[%s5700_s1 + $0x494] ss:$56 sps:$4 sm:$0xff]   ;;  %v4094_v14 = vld [vmem:[%s5700_s1 + $0x3b0] ss:$56 sps:$4 sm:$0xff]  }
 0x1bb   : > { %v1502_v30 = vmul.f32 %v1494_v26, %v5224_v21  ;;  %v1504_v49 = vmul.f32 %v1496_v27, %v5242_v45  ;;  %3042 = vmatprep.subr.bf16.mxu0 %v4087_v48  ;;  %3161 = vmatprep.subr.bf16.mxu1 %v4087_v48  ;;  %v1495_v25 = vunpack.c.l.bf16 %v1489_v40  ;;  %v1497_v36 = vunpack.c.h.bf16 %v1489_v40  ;;  %v4088_v21 = vld [vmem:[%s5700_s1 + $0x490] ss:$56 sps:$4 sm:$0xff]  }
 0x1bc   : > { %v1391_v20 = vadd.f32 %v1385_v63, %v1383_v28  ;;  %v1384_v23 = vmul.f32 %v1376_v38, %v5231_v33  ;;  %v1386_v57 = vmul.f32 %v1378_v42, %v5251_v31 }
 0x1bd   : > { %v4186_v54 = vpop.eup %4185  ;;  %v1510_v52 = vadd.f32 %v1504_v49, %v1502_v30  ;;  %v1503_v59 = vmul.f32 %v1495_v25, %v5233_v29  ;;  %v1505_v2 = vmul.f32 %v1497_v36, %v5253_v46  ;;  %v4091_v29 = vld [vmem:[%s5700_s1 + $0x420] ss:$56 sps:$4 sm:$0xff]  }
 0x1be   : > { %v4188_v55 = vpop.eup %4187  ;;  %v1372_v56 = vmul.bf16 1065369472, %v4186_v54  ;;  %3043 = vmatpush2.bf16.msra.mxu0 %v4085_v35  ;;  %3162 = vmatpush2.bf16.msra.mxu1 %v4085_v35  ;;  %v4332_v25 = vld [vmem:[%s4438_s16 + $0x20] ss:$8 sps:$4 sm:$0xff]  }
 0x1bf   : > { %v4190_v45 = vpop.eup %4189  ;;  %v1491_v58 = vmul.bf16 1065369472, %v4188_v55  ;;  %3044 = vmatprep.subr.bf16.mxu0 %v4090_v39  ;;  %3163 = vmatprep.subr.bf16.mxu1 %v4090_v39  ;;  %v1519_v18 = vadd.f32 %v1505_v2, %v1503_v59 }
 0x1c0   : > { %v4192_v15 = vpop.eup %4191  ;;  %v1379_v60 = vunpack.c.l.bf16 %v1372_v56  ;;  %v1381_v51 = vunpack.c.h.bf16 %v1372_v56  ;;  %v1374_v61 = vmul.bf16 1065369472, %v4190_v45 }
 0x1c1   : > { %v1498_v3 = vunpack.c.l.bf16 %v1491_v58  ;;  %v1500_v43 = vunpack.c.h.bf16 %v1491_v58  ;;  %v1493_v33 = vmul.bf16 1065369472, %v4192_v15 }
 0x1c2   : > { %v1387_v31 = vmul.f32 %v1379_v60, %v5264_v0  ;;  %v1389_v44 = vmul.f32 %v1381_v51, %v5288_v11  ;;  %v1380_v50 = vunpack.c.l.bf16 %v1374_v61  ;;  %v1382_v5 = vunpack.c.h.bf16 %v1374_v61  ;;  %3045 = vmatpush2.bf16.msra.mxu0 %v4088_v21  ;;  %3164 = vmatpush2.bf16.msra.mxu1 %v4088_v21  ;;  %v4096_v0 = vld [vmem:[%s5700_s1 + $0x3b4] ss:$56 sps:$4 sm:$0xff]  }
 0x1c3   : > { %v1506_v6 = vmul.f32 %v1498_v3, %v5266_v1  ;;  %v1508_v7 = vmul.f32 %v1500_v43, %v5290_v12  ;;  %v1499_v46 = vunpack.c.l.bf16 %v1493_v33  ;;  %v1501_v10 = vunpack.c.h.bf16 %v1493_v33  ;;  %3046 = vmatprep.subr.bf16.mxu0 %v4093_v13  ;;  %3165 = vmatprep.subr.bf16.mxu1 %v4093_v13 }
 0x1c4   : > { %v1400_v11 = vadd.f32 %v1386_v57, %v1384_v23  ;;  %v1392_v62 = vadd.f32 %v1391_v20, %v1387_v31  ;;  %v1388_v16 = vmul.f32 %v1380_v50, %v5275_v4  ;;  %v1390_v17 = vmul.f32 %v1382_v5, %v5300_v41  ;;  %v4331_v20 = vld [vmem:[%s4438_s16] ss:$8 sps:$4 sm:$0xff]  }
 0x1c5   : > { %v1511_v48 = vadd.f32 %v1510_v52, %v1506_v6  ;;  %v1507_v1 = vmul.f32 %v1499_v46, %v5277_v47  ;;  %v1509_v12 = vmul.f32 %v1501_v10, %v5302_v53 }
 0x1c6   : > { %v1393_v22 = vadd.f32 %v1392_v62, %v1389_v44  ;;  %v1401_v19 = vadd.f32 %v1400_v11, %v1388_v16  ;;  %3047 = vmatpush2.bf16.msra.mxu0 %v4091_v29  ;;  %3166 = vmatpush2.bf16.msra.mxu1 %v4091_v29 }
 0x1c7   : > { %v1512_v24 = vadd.f32 %v1511_v48, %v1508_v7  ;;  %v1520_v26 = vadd.f32 %v1519_v18, %v1507_v1  ;;  %3048 = vmatprep.subr.bf16.mxu0 %v4096_v0  ;;  %3167 = vmatprep.subr.bf16.mxu1 %v4096_v0 }
 0x1c8   : > { %v1394_v4 = vrot.slane %v1393_v22, 4  ;;  %v1402_v41 = vadd.f32 %v1401_v19, %v1390_v17 }
 0x1c9   : > { %v1513_v27 = vrot.slane %v1512_v24, 4  ;;  %v1521_v47 = vadd.f32 %v1520_v26, %v1509_v12 }
 0x1ca   : > { %v1395_v40 = vadd.f32 %v1394_v4, %v1393_v22  ;;  %v1403_v53 = vrot.slane %v1402_v41, 4  ;;  %3049 = vmatpush2.bf16.msra.mxu0 %v4094_v14  ;;  %3168 = vmatpush2.bf16.msra.mxu1 %v4094_v14 }
 0x1cb   : > { %v1514_v28 = vadd.f32 %v1513_v27, %v1512_v24  ;;  %v1522_v63 = vrot.slane %v1521_v47, 4 }
 0x1cc   : > { %v1396_v35 = vrot.slane %v1395_v40, 2  ;;  %v1404_v30 = vadd.f32 %v1403_v53, %v1402_v41 }
 0x1cd   : > { %v1515_v49 = vrot.slane %v1514_v28, 2  ;;  %v1523_v38 = vadd.f32 %v1522_v63, %v1521_v47  ;;  %v5391_v42 = vpop.f32.mrf.mxu0  ;;  %v5393_v39 = vpop.f32.mrf.mxu1  ;;  %3051 = vmatmul.mubr.bf16.vlgmr.msra.gmra.mxu0 %v4331_v20  ;;  %3170 = vmatmul.mubr.bf16.vlgmr.msra.gmra.mxu1 %v4332_v25 }
 0x1ce   : > { %v1397_v54 = vadd.f32 %v1396_v35, %v1395_v40  ;;  %v1405_v52 = vrot.slane %v1404_v30, 2  ;;  %3060 = vmatprep.mubr.bf16.mxu0 %v5051_v8  ;;  %3179 = vmatprep.mubr.bf16.mxu1 %v5055_v9 }
 0x1cf   : > { %v1516_v36 = vadd.f32 %v1515_v49, %v1514_v28  ;;  %v1524_v55 = vrot.slane %v1523_v38, 2  ;;  %v5399_v56 = vpop.f32.mrf.mxu0  ;;  %v5401_v21 = vpop.f32.mrf.mxu1 }
 0x1d0   : > { %v1398_v45 = vrot.slane %v1397_v54, 1  ;;  %v1406_v23 = vadd.f32 %v1405_v52, %v1404_v30 }
 0x1d1   : > { %v1517_v57 = vrot.slane %v1516_v36, 1  ;;  %v1525_v58 = vadd.f32 %v1524_v55, %v1523_v38  ;;  %v5403_v13 = vpop.f32.mrf.mxu0  ;;  %v5405_v15 = vpop.f32.mrf.mxu1 }
 0x1d2   : > { %v1399_v59 = vadd.f32 %v1398_v45, %v1397_v54  ;;  %v1407_v60 = vrot.slane %v1406_v23, 1  ;;  %v1775_v8 = vpack.c.bf16 %v5403_v13, %v5391_v42  ;;  %v1894_v9 = vpack.c.bf16 %v5405_v15, %v5393_v39 }
 0x1d3   : > { %v1518_v51 = vadd.f32 %v1517_v57, %v1516_v36  ;;  %v1526_v61 = vrot.slane %v1525_v58, 1  ;;  %v5411_v2 = vpop.f32.mrf.mxu0  ;;  %v5413_v3 = vpop.f32.mrf.mxu1 }
 0x1d4   : > { %v1408_v43 = vadd.f32 %v1407_v60, %v1406_v23  ;;  %v3591_v33 = vmul.bf16 3216621497, %v1775_v8  ;;  %v3595_v31 = vmul.bf16 3216621497, %v1894_v9  ;;  %v1776_v44 = vpack.c.bf16 %v5411_v2, %v5399_v56 }
 0x1d5   : > { %v5418_v50 = vsel %vm663_vm0, %v1399_v59, %v1518_v51  ;;  %v1527_v5 = vadd.f32 %v1526_v61, %v1525_v58  ;;  %v1895_v29 = vpack.c.bf16 %v5413_v3, %v5401_v21  ;;  %v5422_v6 = vpop.f32.mrf.mxu0  ;;  %v5424_v7 = vpop.f32.mrf.mxu1  ;;  %3061 = vmatmul.mubr.bf16.gmra.mxu0 %v5088_v37  ;;  %3180 = vmatmul.mubr.bf16.gmra.mxu1 %v5092_v34 }
 0x1d6   : > { %4193 = vpow.bf16 %v3591_v33  ;;  %v3592_v46 = vmul.bf16 3216621497, %v1776_v44 }
 0x1d7   : > { %v5429_v10 = vsel %vm663_vm0, %v1408_v43, %v1527_v5  ;;  %4195 = vpow.bf16 %v3595_v31  ;;  %v3596_v0 = vmul.bf16 3216621497, %v1895_v29  ;;  %v5431_v11 = vpop.f32.mrf.mxu0  ;;  %v5433_v62 = vpop.f32.mrf.mxu1 }
 0x1d8   : > { %v3293_v16 = vcombine.low %v5418_v50, %v5429_v10  ;;  %4197 = vpow.bf16 %v3592_v46 }
 0x1d9   : > { %4199 = vpow.bf16 %v3596_v0  ;;  %v5437_v17 = vpop.f32.mrf.mxu0  ;;  %v5439_v37 = vpop.f32.mrf.mxu1 }
 0x1da   : > { %v1777_v34 = vpack.c.bf16 %v5437_v17, %v5422_v6  ;;  %v1896_v18 = vpack.c.bf16 %v5439_v37, %v5424_v7 }
 0x1db   : > { %v5445_v48 = vpop.f32.mrf.mxu0  ;;  %v5447_v1 = vpop.f32.mrf.mxu1 }
 0x1dc   : > { %v3593_v12 = vmul.bf16 3216621497, %v1777_v34  ;;  %v3597_v22 = vmul.bf16 3216621497, %v1896_v18  ;;  %v1778_v19 = vpack.c.bf16 %v5445_v48, %v5431_v11  ;;  %v1897_v14 = vpack.c.bf16 %v5447_v1, %v5433_v62 }
 0x1de   : > { %4201 = vpow.bf16 %v3593_v12  ;;  %v3594_v24 = vmul.bf16 3216621497, %v1778_v19  ;;  %v3598_v26 = vmul.bf16 3216621497, %v1897_v14 }
 0x1df   : > { %4203 = vpow.bf16 %v3597_v22 }
 0x1e0   : > { %4205 = vpow.bf16 %v3594_v24 }
 0x1e1   : > { %4207 = vpow.bf16 %v3598_v26 }
 0x1e4   : > { %v4194_v4 = vpop.eup %4193 }
 0x1e5   : > { %v4196_v41 = vpop.eup %4195  ;;  %v1795_v27 = vadd.bf16 1065369472, %v4194_v4 }
 0x1e6   : > { %v4198_v47 = vpop.eup %4197  ;;  %v1914_v40 = vadd.bf16 1065369472, %v4196_v41 }
 0x1e7   : > { %v4200_v53 = vpop.eup %4199  ;;  %4209 = vrcp.bf16 %v1795_v27  ;;  %v1796_v28 = vadd.bf16 1065369472, %v4198_v47 }
 0x1e8   : > { %4211 = vrcp.bf16 %v1914_v40  ;;  %v1915_v63 = vadd.bf16 1065369472, %v4200_v53 }
 0x1e9   : > { %4213 = vrcp.bf16 %v1796_v28 }
 0x1ea   : > { %4215 = vrcp.bf16 %v1915_v63 }
 0x1ec   : > { %v4202_v35 = vpop.eup %4201 }
 0x1ed   : > { %v4204_v30 = vpop.eup %4203  ;;  %v1797_v49 = vadd.bf16 1065369472, %v4202_v35 }
 0x1ee   : > { %v4206_v38 = vpop.eup %4205  ;;  %v1916_v20 = vadd.bf16 1065369472, %v4204_v30 }
 0x1ef   : > { %v4208_v25 = vpop.eup %4207  ;;  %4217 = vrcp.bf16 %v1797_v49  ;;  %v1798_v54 = vadd.bf16 1065369472, %v4206_v38 }
 0x1f0   : > { %4219 = vrcp.bf16 %v1916_v20  ;;  %v1917_v52 = vadd.bf16 1065369472, %v4208_v25 }
 0x1f1   : > { %4221 = vrcp.bf16 %v1798_v54 }
 0x1f2   : > { %4223 = vrcp.bf16 %v1917_v52 }
 0x1f5   : > { %v4210_v36 = vpop.eup %4209 }
 0x1f6   : > { %v4212_v55 = vpop.eup %4211  ;;  %v1800_v45 = vmul.bf16 1065369472, %v4210_v36 }
 0x1f7   : > { %v4214_v23 = vpop.eup %4213  ;;  %v1919_v57 = vmul.bf16 1065369472, %v4212_v55 }
 0x1f8   : > { %v4216_v58 = vpop.eup %4215  ;;  %v1807_v59 = vunpack.c.l.bf16 %v1800_v45  ;;  %v1809_v60 = vunpack.c.h.bf16 %v1800_v45  ;;  %v1802_v8 = vmul.bf16 1065369472, %v4214_v23 }
 0x1f9   : > { %v1926_v9 = vunpack.c.l.bf16 %v1919_v57  ;;  %v1928_v51 = vunpack.c.h.bf16 %v1919_v57  ;;  %v1921_v61 = vmul.bf16 1065369472, %v4216_v58 }
 0x1fa   : > { %v1815_v43 = vmul.f32 %v1807_v59, %v5391_v42  ;;  %v1817_v33 = vmul.f32 %v1809_v60, %v5403_v13  ;;  %v1808_v5 = vunpack.c.l.bf16 %v1802_v8  ;;  %v1810_v29 = vunpack.c.h.bf16 %v1802_v8 }
 0x1fb   : > { %v1934_v31 = vmul.f32 %v1926_v9, %v5393_v39  ;;  %v1936_v44 = vmul.f32 %v1928_v51, %v5405_v15  ;;  %v1927_v46 = vunpack.c.l.bf16 %v1921_v61  ;;  %v1929_v34 = vunpack.c.h.bf16 %v1921_v61 }
 0x1fc   : > { %v1823_v12 = vadd.f32 %v1817_v33, %v1815_v43  ;;  %v1816_v24 = vmul.f32 %v1808_v5, %v5399_v56  ;;  %v1818_v42 = vmul.f32 %v1810_v29, %v5411_v2 }
 0x1fd   : > { %v4218_v0 = vpop.eup %4217  ;;  %v1942_v14 = vadd.f32 %v1936_v44, %v1934_v31  ;;  %v1935_v39 = vmul.f32 %v1927_v46, %v5401_v21  ;;  %v1937_v27 = vmul.f32 %v1929_v34, %v5413_v3 }
 0x1fe   : > { %v4220_v18 = vpop.eup %4219  ;;  %v1804_v22 = vmul.bf16 1065369472, %v4218_v0  ;;  %v1832_v38 = vadd.f32 %v1818_v42, %v1816_v24 }
 0x1ff   : > { %v4222_v19 = vpop.eup %4221  ;;  %v1923_v26 = vmul.bf16 1065369472, %v4220_v18  ;;  %v1951_v54 = vadd.f32 %v1937_v27, %v1935_v39 }
 0x200   : > { %v4224_v13 = vpop.eup %4223  ;;  %v1811_v4 = vunpack.c.l.bf16 %v1804_v22  ;;  %v1813_v15 = vunpack.c.h.bf16 %v1804_v22  ;;  %v1806_v41 = vmul.bf16 1065369472, %v4222_v19 }
 0x201   : > { %v1930_v47 = vunpack.c.l.bf16 %v1923_v26  ;;  %v1932_v40 = vunpack.c.h.bf16 %v1923_v26  ;;  %v1925_v53 = vmul.bf16 1065369472, %v4224_v13 }
 0x202   : > { %v1819_v28 = vmul.f32 %v1811_v4, %v5422_v6  ;;  %v1821_v63 = vmul.f32 %v1813_v15, %v5437_v17  ;;  %v1812_v35 = vunpack.c.l.bf16 %v1806_v41  ;;  %v1814_v56 = vunpack.c.h.bf16 %v1806_v41 }
 0x203   : > { %v1938_v2 = vmul.f32 %v1930_v47, %v5424_v7  ;;  %v1940_v30 = vmul.f32 %v1932_v40, %v5439_v37  ;;  %v1931_v49 = vunpack.c.l.bf16 %v1925_v53  ;;  %v1933_v21 = vunpack.c.h.bf16 %v1925_v53 }
 0x204   : > { %v1824_v20 = vadd.f32 %v1823_v12, %v1819_v28  ;;  %v1820_v25 = vmul.f32 %v1812_v35, %v5431_v11  ;;  %v1822_v3 = vmul.f32 %v1814_v56, %v5445_v48 }
 0x205   : > { %v1943_v52 = vadd.f32 %v1942_v14, %v1938_v2  ;;  %v1939_v6 = vmul.f32 %v1931_v49, %v5433_v62  ;;  %v1941_v17 = vmul.f32 %v1933_v21, %v5447_v1 }
 0x206   : > { %v1825_v36 = vadd.f32 %v1824_v20, %v1821_v63  ;;  %v1833_v55 = vadd.f32 %v1832_v38, %v1820_v25 }
 0x207   : > { %v1944_v45 = vadd.f32 %v1943_v52, %v1940_v30  ;;  %v1952_v7 = vadd.f32 %v1951_v54, %v1939_v6 }
 0x208   : > { %v1826_v23 = vrot.slane %v1825_v36, 4  ;;  %v1834_v37 = vadd.f32 %v1833_v55, %v1822_v3  ;;  %v3301_v3 = vrot.slane %v3293_v16, %v5260_v32 }
 0x209   : > { %v1945_v57 = vrot.slane %v1944_v45, 4  ;;  %v1953_v58 = vadd.f32 %v1952_v7, %v1941_v17 }
 0x20a   : > { %v1827_v59 = vadd.f32 %v1826_v23, %v1825_v36  ;;  %v1835_v60 = vrot.slane %v1834_v37, 4 }
 0x20b   : > { %v1946_v8 = vadd.f32 %v1945_v57, %v1944_v45  ;;  %v1954_v11 = vrot.slane %v1953_v58, 4 }
 0x20c   : > { %v1828_v9 = vrot.slane %v1827_v59, 2  ;;  %v1836_v48 = vadd.f32 %v1835_v60, %v1834_v37 }
 0x20d   : > { %v1947_v51 = vrot.slane %v1946_v8, 2  ;;  %v1955_v61 = vadd.f32 %v1954_v11, %v1953_v58  ;;  %v5469_v43 = vpop.f32.mrf.mxu0  ;;  %v5471_v62 = vpop.f32.mrf.mxu1 }
 0x20e   : > { %v1829_v1 = vadd.f32 %v1828_v9, %v1827_v59  ;;  %v1837_v33 = vrot.slane %v1836_v48, 2 }
 0x20f   : > { %v1948_v31 = vadd.f32 %v1947_v51, %v1946_v8  ;;  %v1956_v44 = vrot.slane %v1955_v61, 2  ;;  %v5473_v5 = vpop.f32.mrf.mxu0  ;;  %v5475_v29 = vpop.f32.mrf.mxu1 }
 0x210   : > { %v1830_v46 = vrot.slane %v1829_v1, 1  ;;  %v1838_v0 = vadd.f32 %v1837_v33, %v1836_v48 }
 0x211   : > { %v1949_v34 = vrot.slane %v1948_v31, 1  ;;  %v1957_v18 = vadd.f32 %v1956_v44, %v1955_v61  ;;  %v5477_v12 = vpop.f32.mrf.mxu0  ;;  %v5479_v22 = vpop.f32.mrf.mxu1 }
 0x212   : > { %v1839_v19 = vrot.slane %v1838_v0, 1  ;;  %v2207_v14 = vpack.c.bf16 %v5477_v12, %v5469_v43  ;;  %v2326_v24 = vpack.c.bf16 %v5479_v22, %v5471_v62  ;;  %v1831_v42 = vadd.f32 %v1830_v46, %v1829_v1 }
 0x213   : > { %v1950_v26 = vadd.f32 %v1949_v34, %v1948_v31  ;;  %v1958_v13 = vrot.slane %v1957_v18, 1  ;;  %v5485_v39 = vpop.f32.mrf.mxu0  ;;  %v5487_v4 = vpop.f32.mrf.mxu1 }
 0x214   : > { %v1840_v15 = vadd.f32 %v1839_v19, %v1838_v0  ;;  %v3631_v41 = vmul.bf16 3216621497, %v2207_v14  ;;  %v3635_v27 = vmul.bf16 3216621497, %v2326_v24  ;;  %v2208_v47 = vpack.c.bf16 %v5485_v39, %v5473_v5 }
 0x215   : > { %v1959_v40 = vadd.f32 %v1958_v13, %v1957_v18  ;;  %v2327_v53 = vpack.c.bf16 %v5487_v4, %v5475_v29  ;;  %v5493_v28 = vpop.f32.mrf.mxu0  ;;  %v5495_v63 = vpop.f32.mrf.mxu1  ;;  %v1960_v56 = vsel %vm663_vm0, %v1831_v42, %v1950_v26 }
 0x216   : > { %4225 = vpow.bf16 %v3631_v41  ;;  %v3632_v35 = vmul.bf16 3216621497, %v2208_v47 }
 0x217   : > { %v1961_v2 = vsel %vm663_vm0, %v1840_v15, %v1959_v40  ;;  %4227 = vpow.bf16 %v3635_v27  ;;  %v3636_v30 = vmul.bf16 3216621497, %v2327_v53  ;;  %v5499_v49 = vpop.f32.mrf.mxu0  ;;  %v5501_v21 = vpop.f32.mrf.mxu1 }
 0x218   : > { %v3294_v38 = vcombine.low %v1960_v56, %v1961_v2  ;;  %4229 = vpow.bf16 %v3632_v35 }
 0x219   : > { %4231 = vpow.bf16 %v3636_v30  ;;  %v5503_v20 = vpop.f32.mrf.mxu0  ;;  %v5505_v25 = vpop.f32.mrf.mxu1 }
 0x21a   : > { %v3308_v54 = vrot.slane %v3294_v38, %v5260_v32  ;;  %v2209_v52 = vpack.c.bf16 %v5503_v20, %v5493_v28  ;;  %v2328_v6 = vpack.c.bf16 %v5505_v25, %v5495_v63 }
 0x21b   : > { %v5516_v17 = vpop.f32.mrf.mxu0  ;;  %v5518_v36 = vpop.f32.mrf.mxu1 }
 0x21c   : > { %v3309_v55 = vcombine.low %v3301_v3, %v3308_v54  ;;  %v3633_v45 = vmul.bf16 3216621497, %v2209_v52  ;;  %v3637_v7 = vmul.bf16 3216621497, %v2328_v6  ;;  %v2210_v50 = vpack.c.bf16 %v5516_v17, %v5499_v49 }
 0x21d   : > { %v2329_v10 = vpack.c.bf16 %v5518_v36, %v5501_v21 }
 0x21e   : > { %4233 = vpow.bf16 %v3633_v45  ;;  %v3634_v16 = vmul.bf16 3216621497, %v2210_v50  ;;  %3344 = vst [vmem:[%s4891_s7 + $0x8] sm:$0xff] %v3309_v55 }
 0x21f   : > { %4235 = vpow.bf16 %v3637_v7  ;;  %v3638_v23 = vmul.bf16 3216621497, %v2329_v10 }
 0x220   : > { %4237 = vpow.bf16 %v3634_v16 }
 0x221   : > { %4239 = vpow.bf16 %v3638_v23 }
 0x224   : > { %v4226_v37 = vpop.eup %4225 }
 0x225   : > { %v4228_v57 = vpop.eup %4227  ;;  %v2227_v58 = vadd.bf16 1065369472, %v4226_v37 }
 0x226   : > { %v4230_v59 = vpop.eup %4229  ;;  %v2346_v60 = vadd.bf16 1065369472, %v4228_v57 }
 0x227   : > { %v4232_v8 = vpop.eup %4231  ;;  %4241 = vrcp.bf16 %v2227_v58  ;;  %v2228_v11 = vadd.bf16 1065369472, %v4230_v59 }
 0x228   : > { %4243 = vrcp.bf16 %v2346_v60  ;;  %v2347_v9 = vadd.bf16 1065369472, %v4232_v8 }
 0x229   : > { %4245 = vrcp.bf16 %v2228_v11 }
 0x22a   : > { %4247 = vrcp.bf16 %v2347_v9 }
 0x22c   : > { %v4234_v48 = vpop.eup %4233 }
 0x22d   : > { %v4236_v51 = vpop.eup %4235  ;;  %v2229_v61 = vadd.bf16 1065369472, %v4234_v48 }
 0x22e   : > { %v4238_v1 = vpop.eup %4237  ;;  %v2348_v33 = vadd.bf16 1065369472, %v4236_v51 }
 0x22f   : > { %v4240_v31 = vpop.eup %4239  ;;  %4249 = vrcp.bf16 %v2229_v61  ;;  %v2230_v44 = vadd.bf16 1065369472, %v4238_v1 }
 0x230   : > { %4251 = vrcp.bf16 %v2348_v33  ;;  %v2349_v46 = vadd.bf16 1065369472, %v4240_v31 }
 0x231   : > { %4253 = vrcp.bf16 %v2230_v44 }
 0x232   : > { %4255 = vrcp.bf16 %v2349_v46 }
 0x235   : > { %v4242_v0 = vpop.eup %4241 }
 0x236   : > { %v4244_v34 = vpop.eup %4243  ;;  %v2232_v18 = vmul.bf16 1065369472, %v4242_v0 }
 0x237   : > { %v4246_v19 = vpop.eup %4245  ;;  %v2351_v14 = vmul.bf16 1065369472, %v4244_v34 }
 0x238   : > { %v4248_v24 = vpop.eup %4247  ;;  %v2239_v42 = vunpack.c.l.bf16 %v2232_v18  ;;  %v2241_v26 = vunpack.c.h.bf16 %v2232_v18  ;;  %v2234_v13 = vmul.bf16 1065369472, %v4246_v19 }
 0x239   : > { %v2358_v15 = vunpack.c.l.bf16 %v2351_v14  ;;  %v2360_v41 = vunpack.c.h.bf16 %v2351_v14  ;;  %v2353_v27 = vmul.bf16 1065369472, %v4248_v24 }
 0x23a   : > { %v2247_v47 = vmul.f32 %v2239_v42, %v5469_v43  ;;  %v2249_v40 = vmul.f32 %v2241_v26, %v5477_v12  ;;  %v2240_v56 = vunpack.c.l.bf16 %v2234_v13  ;;  %v2242_v2 = vunpack.c.h.bf16 %v2234_v13 }
 0x23b   : > { %v2366_v53 = vmul.f32 %v2358_v15, %v5471_v62  ;;  %v2368_v35 = vmul.f32 %v2360_v41, %v5479_v22  ;;  %v2359_v38 = vunpack.c.l.bf16 %v2353_v27  ;;  %v2361_v52 = vunpack.c.h.bf16 %v2353_v27 }
 0x23c   : > { %v2255_v30 = vadd.f32 %v2249_v40, %v2247_v47  ;;  %v2248_v7 = vmul.f32 %v2240_v56, %v5473_v5  ;;  %v2250_v43 = vmul.f32 %v2242_v2, %v5485_v39 }
 0x23d   : > { %v4250_v3 = vpop.eup %4249  ;;  %v2374_v54 = vadd.f32 %v2368_v35, %v2366_v53  ;;  %v2367_v62 = vmul.f32 %v2359_v38, %v5475_v29  ;;  %v2369_v23 = vmul.f32 %v2361_v52, %v5487_v4 }
 0x23e   : > { %v4252_v6 = vpop.eup %4251  ;;  %v2236_v55 = vmul.bf16 1065369472, %v4250_v3  ;;  %v2264_v48 = vadd.f32 %v2250_v43, %v2248_v7 }
 0x23f   : > { %v4254_v45 = vpop.eup %4253  ;;  %v2355_v50 = vmul.bf16 1065369472, %v4252_v6  ;;  %v2383_v1 = vadd.f32 %v2369_v23, %v2367_v62 }
 0x240   : > { %v4256_v12 = vpop.eup %4255  ;;  %v2243_v10 = vunpack.c.l.bf16 %v2236_v55  ;;  %v2245_v22 = vunpack.c.h.bf16 %v2236_v55  ;;  %v2238_v16 = vmul.bf16 1065369472, %v4254_v45 }
 0x241   : > { %v2362_v37 = vunpack.c.l.bf16 %v2355_v50  ;;  %v2364_v57 = vunpack.c.h.bf16 %v2355_v50  ;;  %v2357_v58 = vmul.bf16 1065369472, %v4256_v12 }
 0x242   : > { %v2251_v59 = vmul.f32 %v2243_v10, %v5493_v28  ;;  %v2253_v60 = vmul.f32 %v2245_v22, %v5503_v20  ;;  %v2244_v8 = vunpack.c.l.bf16 %v2238_v16  ;;  %v2246_v5 = vunpack.c.h.bf16 %v2238_v16 }
 0x243   : > { %v2370_v39 = vmul.f32 %v2362_v37, %v5495_v63  ;;  %v2372_v11 = vmul.f32 %v2364_v57, %v5505_v25  ;;  %v2363_v9 = vunpack.c.l.bf16 %v2357_v58  ;;  %v2365_v29 = vunpack.c.h.bf16 %v2357_v58 }
 0x244   : > { %v2256_v51 = vadd.f32 %v2255_v30, %v2251_v59  ;;  %v2252_v61 = vmul.f32 %v2244_v8, %v5499_v49  ;;  %v2254_v4 = vmul.f32 %v2246_v5, %v5516_v17 }
 0x245   : > { %v2375_v33 = vadd.f32 %v2374_v54, %v2370_v39  ;;  %v2371_v28 = vmul.f32 %v2363_v9, %v5501_v21  ;;  %v2373_v20 = vmul.f32 %v2365_v29, %v5518_v36 }
 0x246   : > { %v2257_v31 = vadd.f32 %v2256_v51, %v2253_v60  ;;  %v2265_v44 = vadd.f32 %v2264_v48, %v2252_v61 }
 0x247   : > { %v2376_v46 = vadd.f32 %v2375_v33, %v2372_v11  ;;  %v2384_v63 = vadd.f32 %v2383_v1, %v2371_v28 }
 0x248   : > { %v2258_v0 = vrot.slane %v2257_v31, 4  ;;  %v2266_v25 = vadd.f32 %v2265_v44, %v2254_v4 }
 0x249   : > { %v2377_v34 = vrot.slane %v2376_v46, 4  ;;  %v2385_v18 = vadd.f32 %v2384_v63, %v2373_v20 }
 0x24a   : > { %v2259_v19 = vadd.f32 %v2258_v0, %v2257_v31  ;;  %v2267_v14 = vrot.slane %v2266_v25, 4 }
 0x24b   : > { %v2378_v24 = vadd.f32 %v2377_v34, %v2376_v46  ;;  %v2386_v49 = vrot.slane %v2385_v18, 4 }
 0x24c   : > { %v2260_v42 = vrot.slane %v2259_v19, 2  ;;  %v2268_v17 = vadd.f32 %v2267_v14, %v2266_v25 }
 0x24d   : > { %v2379_v26 = vrot.slane %v2378_v24, 2  ;;  %v2387_v13 = vadd.f32 %v2386_v49, %v2385_v18  ;;  %v5541_v15 = vpop.f32.mrf.mxu0  ;;  %v5543_v21 = vpop.f32.mrf.mxu1 }
 0x24e   : > { %v2261_v36 = vadd.f32 %v2260_v42, %v2259_v19  ;;  %v2269_v41 = vrot.slane %v2268_v17, 2 }
 0x24f   : > { %v2380_v27 = vadd.f32 %v2379_v26, %v2378_v24  ;;  %v2388_v47 = vrot.slane %v2387_v13, 2  ;;  %v5545_v40 = vpop.f32.mrf.mxu0  ;;  %v5547_v53 = vpop.f32.mrf.mxu1 }
 0x250   : > { %v2262_v35 = vrot.slane %v2261_v36, 1  ;;  %v2270_v56 = vadd.f32 %v2269_v41, %v2268_v17 }
 0x251   : > { %v2381_v2 = vrot.slane %v2380_v27, 1  ;;  %v2389_v30 = vadd.f32 %v2388_v47, %v2387_v13  ;;  %v5549_v38 = vpop.f32.mrf.mxu0  ;;  %v5551_v3 = vpop.f32.mrf.mxu1 }
 0x252   : > { %v2263_v54 = vadd.f32 %v2262_v35, %v2261_v36  ;;  %v2271_v52 = vrot.slane %v2270_v56, 1  ;;  %v2639_v6 = vpack.c.bf16 %v5549_v38, %v5541_v15  ;;  %v2758_v55 = vpack.c.bf16 %v5551_v3, %v5543_v21 }
 0x253   : > { %v2382_v45 = vadd.f32 %v2381_v2, %v2380_v27  ;;  %v2390_v7 = vrot.slane %v2389_v30, 1  ;;  %v5557_v43 = vpop.f32.mrf.mxu0  ;;  %v5559_v50 = vpop.f32.mrf.mxu1 }
 0x254   : > { %v2272_v12 = vadd.f32 %v2271_v52, %v2270_v56  ;;  %v3671_v62 = vmul.bf16 3216621497, %v2639_v6  ;;  %v3675_v10 = vmul.bf16 3216621497, %v2758_v55  ;;  %v2640_v22 = vpack.c.bf16 %v5557_v43, %v5545_v40 }
 0x255   : > { %v5564_v16 = vsel %vm663_vm0, %v2263_v54, %v2382_v45  ;;  %v2391_v23 = vadd.f32 %v2390_v7, %v2389_v30  ;;  %v2759_v37 = vpack.c.bf16 %v5559_v50, %v5547_v53  ;;  %v5568_v57 = vpop.f32.mrf.mxu0  ;;  %v5570_v58 = vpop.f32.mrf.mxu1 }
 0x256   : > { %4257 = vpow.bf16 %v3671_v62  ;;  %v3672_v59 = vmul.bf16 3216621497, %v2640_v22 }
 0x257   : > { %v5573_v60 = vsel %vm663_vm0, %v2272_v12, %v2391_v23  ;;  %4259 = vpow.bf16 %v3675_v10  ;;  %v3676_v8 = vmul.bf16 3216621497, %v2759_v37  ;;  %v5575_v5 = vpop.f32.mrf.mxu0  ;;  %v5577_v39 = vpop.f32.mrf.mxu1 }
 0x258   : > { %v3310_v11 = vcombine.low %v5564_v16, %v5573_v60  ;;  %4261 = vpow.bf16 %v3672_v59 }
 0x259   : > { %4263 = vpow.bf16 %v3676_v8  ;;  %v5581_v9 = vpop.f32.mrf.mxu0  ;;  %v5583_v29 = vpop.f32.mrf.mxu1 }
 0x25a   : > { %v2641_v48 = vpack.c.bf16 %v5581_v9, %v5568_v57  ;;  %v2760_v51 = vpack.c.bf16 %v5583_v29, %v5570_v58 }
 0x25b   : > { %v5589_v61 = vpop.f32.mrf.mxu0  ;;  %v5591_v4 = vpop.f32.mrf.mxu1 }
 0x25c   : > { %v3673_v1 = vmul.bf16 3216621497, %v2641_v48  ;;  %v3677_v33 = vmul.bf16 3216621497, %v2760_v51  ;;  %v2642_v28 = vpack.c.bf16 %v5589_v61, %v5575_v5  ;;  %v2761_v20 = vpack.c.bf16 %v5591_v4, %v5577_v39 }
 0x25e   : > { %4265 = vpow.bf16 %v3673_v1  ;;  %v3674_v31 = vmul.bf16 3216621497, %v2642_v28  ;;  %v3678_v44 = vmul.bf16 3216621497, %v2761_v20 }
 0x25f   : > { %4267 = vpow.bf16 %v3677_v33 }
 0x260   : > { %4269 = vpow.bf16 %v3674_v31 }
 0x261   : > { %4271 = vpow.bf16 %v3678_v44 }
 0x264   : > { %v4258_v46 = vpop.eup %4257 }
 0x265   : > { %v4260_v63 = vpop.eup %4259  ;;  %v2659_v0 = vadd.bf16 1065369472, %v4258_v46 }
 0x266   : > { %v4262_v25 = vpop.eup %4261  ;;  %v2778_v34 = vadd.bf16 1065369472, %v4260_v63 }
 0x267   : > { %v4264_v18 = vpop.eup %4263  ;;  %4273 = vrcp.bf16 %v2659_v0  ;;  %v2660_v19 = vadd.bf16 1065369472, %v4262_v25 }
 0x268   : > { %4275 = vrcp.bf16 %v2778_v34  ;;  %v2779_v14 = vadd.bf16 1065369472, %v4264_v18 }
 0x269   : > { %4277 = vrcp.bf16 %v2660_v19 }
 0x26a   : > { %4279 = vrcp.bf16 %v2779_v14 }
 0x26c   : > { %v4266_v24 = vpop.eup %4265 }
 0x26d   : > { %v4268_v49 = vpop.eup %4267  ;;  %v2661_v42 = vadd.bf16 1065369472, %v4266_v24 }
 0x26e   : > { %v4270_v17 = vpop.eup %4269  ;;  %v2780_v26 = vadd.bf16 1065369472, %v4268_v49 }
 0x26f   : > { %v4272_v13 = vpop.eup %4271  ;;  %4281 = vrcp.bf16 %v2661_v42  ;;  %v2662_v36 = vadd.bf16 1065369472, %v4270_v17 }
 0x270   : > { %4283 = vrcp.bf16 %v2780_v26  ;;  %v2781_v41 = vadd.bf16 1065369472, %v4272_v13 }
 0x271   : > { %4285 = vrcp.bf16 %v2662_v36 }
 0x272   : > { %4287 = vrcp.bf16 %v2781_v41 }
 0x275   : > { %v4274_v27 = vpop.eup %4273 }
 0x276   : > { %v4276_v47 = vpop.eup %4275  ;;  %v2664_v35 = vmul.bf16 1065369472, %v4274_v27 }
 0x277   : > { %v4278_v56 = vpop.eup %4277  ;;  %v2783_v2 = vmul.bf16 1065369472, %v4276_v47 }
 0x278   : > { %v4280_v30 = vpop.eup %4279  ;;  %v2671_v54 = vunpack.c.l.bf16 %v2664_v35  ;;  %v2673_v52 = vunpack.c.h.bf16 %v2664_v35  ;;  %v2666_v6 = vmul.bf16 1065369472, %v4278_v56 }
 0x279   : > { %v2790_v55 = vunpack.c.l.bf16 %v2783_v2  ;;  %v2792_v45 = vunpack.c.h.bf16 %v2783_v2  ;;  %v2785_v7 = vmul.bf16 1065369472, %v4280_v30 }
 0x27a   : > { %v2679_v12 = vmul.f32 %v2671_v54, %v5541_v15  ;;  %v2681_v62 = vmul.f32 %v2673_v52, %v5549_v38  ;;  %v2672_v23 = vunpack.c.l.bf16 %v2666_v6  ;;  %v2674_v37 = vunpack.c.h.bf16 %v2666_v6 }
 0x27b   : > { %v2798_v10 = vmul.f32 %v2790_v55, %v5543_v21  ;;  %v2800_v22 = vmul.f32 %v2792_v45, %v5551_v3  ;;  %v2791_v59 = vunpack.c.l.bf16 %v2785_v7  ;;  %v2793_v48 = vunpack.c.h.bf16 %v2785_v7 }
 0x27c   : > { %v2687_v1 = vadd.f32 %v2681_v62, %v2679_v12  ;;  %v2680_v31 = vmul.f32 %v2672_v23, %v5545_v40  ;;  %v2682_v15 = vmul.f32 %v2674_v37, %v5557_v43 }
 0x27d   : > { %v4282_v8 = vpop.eup %4281  ;;  %v2806_v20 = vadd.f32 %v2800_v22, %v2798_v10  ;;  %v2799_v21 = vmul.f32 %v2791_v59, %v5547_v53  ;;  %v2801_v0 = vmul.f32 %v2793_v48, %v5559_v50 }
 0x27e   : > { %v4284_v51 = vpop.eup %4283  ;;  %v2668_v33 = vmul.bf16 1065369472, %v4282_v8  ;;  %v2696_v17 = vadd.f32 %v2682_v15, %v2680_v31 }
 0x27f   : > { %v4286_v28 = vpop.eup %4285  ;;  %v2787_v44 = vmul.bf16 1065369472, %v4284_v51  ;;  %v2815_v36 = vadd.f32 %v2801_v0, %v2799_v21 }
 0x280   : > { %v4288_v38 = vpop.eup %4287  ;;  %v2675_v46 = vunpack.c.l.bf16 %v2668_v33  ;;  %v2677_v3 = vunpack.c.h.bf16 %v2668_v33  ;;  %v2670_v63 = vmul.bf16 1065369472, %v4286_v28 }
 0x281   : > { %v2794_v25 = vunpack.c.l.bf16 %v2787_v44  ;;  %v2796_v34 = vunpack.c.h.bf16 %v2787_v44  ;;  %v2789_v18 = vmul.bf16 1065369472, %v4288_v38 }
 0x282   : > { %v2683_v19 = vmul.f32 %v2675_v46, %v5568_v57  ;;  %v2685_v14 = vmul.f32 %v2677_v3, %v5581_v9  ;;  %v2676_v24 = vunpack.c.l.bf16 %v2670_v63  ;;  %v2678_v40 = vunpack.c.h.bf16 %v2670_v63 }
 0x283   : > { %v2802_v43 = vmul.f32 %v2794_v25, %v5570_v58  ;;  %v2804_v49 = vmul.f32 %v2796_v34, %v5583_v29  ;;  %v2795_v42 = vunpack.c.l.bf16 %v2789_v18  ;;  %v2797_v53 = vunpack.c.h.bf16 %v2789_v18 }
 0x284   : > { %v2688_v26 = vadd.f32 %v2687_v1, %v2683_v19  ;;  %v2684_v13 = vmul.f32 %v2676_v24, %v5575_v5  ;;  %v2686_v50 = vmul.f32 %v2678_v40, %v5589_v61 }
 0x285   : > { %v2807_v41 = vadd.f32 %v2806_v20, %v2802_v43  ;;  %v2803_v57 = vmul.f32 %v2795_v42, %v5577_v39  ;;  %v2805_v9 = vmul.f32 %v2797_v53, %v5591_v4 }
 0x286   : > { %v2689_v27 = vadd.f32 %v2688_v26, %v2685_v14  ;;  %v2697_v47 = vadd.f32 %v2696_v17, %v2684_v13 }
 0x287   : > { %v2808_v35 = vadd.f32 %v2807_v41, %v2804_v49  ;;  %v2816_v58 = vadd.f32 %v2815_v36, %v2803_v57 }
 0x288   : > { %v2690_v56 = vrot.slane %v2689_v27, 4  ;;  %v2698_v29 = vadd.f32 %v2697_v47, %v2686_v50  ;;  %v3318_v50 = vrot.slane %v3310_v11, %v5260_v32 }
 0x289   : > { %v2809_v2 = vrot.slane %v2808_v35, 4  ;;  %v2817_v30 = vadd.f32 %v2816_v58, %v2805_v9 }
 0x28a   : > { %v2691_v54 = vadd.f32 %v2690_v56, %v2689_v27  ;;  %v2699_v52 = vrot.slane %v2698_v29, 4 }
 0x28b   : > { %v2810_v6 = vadd.f32 %v2809_v2, %v2808_v35  ;;  %v2818_v5 = vrot.slane %v2817_v30, 4 }
 0x28c   : > { %v2692_v55 = vrot.slane %v2691_v54, 2  ;;  %v2700_v61 = vadd.f32 %v2699_v52, %v2698_v29 }
 0x28d   : > { %v2811_v45 = vrot.slane %v2810_v6, 2  ;;  %v2819_v7 = vadd.f32 %v2818_v5, %v2817_v30  ;;  %v5613_v12 = vpop.f32.mrf.mxu0  ;;  %v5615_v39 = vpop.f32.mrf.mxu1 }
 0x28e   : > { %v2693_v4 = vadd.f32 %v2692_v55, %v2691_v54  ;;  %v2701_v62 = vrot.slane %v2700_v61, 2 }
 0x28f   : > { %v2812_v10 = vadd.f32 %v2811_v45, %v2810_v6  ;;  %v2820_v22 = vrot.slane %v2819_v7, 2  ;;  %v5617_v23 = vpop.f32.mrf.mxu0  ;;  %v5619_v37 = vpop.f32.mrf.mxu1 }
 0x290   : > { %v2694_v59 = vrot.slane %v2693_v4, 1  ;;  %v2702_v8 = vadd.f32 %v2701_v62, %v2700_v61 }
 0x291   : > { %v2813_v48 = vrot.slane %v2812_v10, 1  ;;  %v2821_v51 = vadd.f32 %v2820_v22, %v2819_v7  ;;  %v5621_v1 = vpop.f32.mrf.mxu0  ;;  %v5623_v33 = vpop.f32.mrf.mxu1 }
 0x292   : > { %v2703_v28 = vrot.slane %v2702_v8, 1  ;;  %v3071_v20 = vpack.c.bf16 %v5621_v1, %v5613_v12  ;;  %v3190_v31 = vpack.c.bf16 %v5623_v33, %v5615_v39  ;;  %v2695_v15 = vadd.f32 %v2694_v59, %v2693_v4 }
 0x293   : > { %v2814_v44 = vadd.f32 %v2813_v48, %v2812_v10  ;;  %v2822_v38 = vrot.slane %v2821_v51, 1  ;;  %v5629_v21 = vpop.f32.mrf.mxu0  ;;  %v5631_v46 = vpop.f32.mrf.mxu1 }
 0x294   : > { %v2704_v3 = vadd.f32 %v2703_v28, %v2702_v8  ;;  %v3711_v63 = vmul.bf16 3216621497, %v3071_v20  ;;  %v3715_v0 = vmul.bf16 3216621497, %v3190_v31  ;;  %v3072_v25 = vpack.c.bf16 %v5629_v21, %v5617_v23 }
 0x295   : > { %v2823_v34 = vadd.f32 %v2822_v38, %v2821_v51  ;;  %v3191_v18 = vpack.c.bf16 %v5631_v46, %v5619_v37  ;;  %v5637_v19 = vpop.f32.mrf.mxu0  ;;  %v5639_v14 = vpop.f32.mrf.mxu1  ;;  %v2824_v40 = vsel %vm663_vm0, %v2695_v15, %v2814_v44 }
 0x296   : > { %4289 = vpow.bf16 %v3711_v63  ;;  %v3712_v24 = vmul.bf16 3216621497, %v3072_v25 }
 0x297   : > { %v2825_v43 = vsel %vm663_vm0, %v2704_v3, %v2823_v34  ;;  %4291 = vpow.bf16 %v3715_v0  ;;  %v3716_v49 = vmul.bf16 3216621497, %v3191_v18  ;;  %v5643_v42 = vpop.f32.mrf.mxu0  ;;  %v5645_v53 = vpop.f32.mrf.mxu1 }
 0x298   : > { %v3311_v17 = vcombine.low %v2824_v40, %v2825_v43  ;;  %4293 = vpow.bf16 %v3712_v24 }
 0x299   : > { %4295 = vpow.bf16 %v3716_v49  ;;  %v5647_v26 = vpop.f32.mrf.mxu0  ;;  %v5649_v13 = vpop.f32.mrf.mxu1 }
 0x29a   : > { %v3325_v36 = vrot.slane %v3311_v17, %v5260_v32  ;;  %v3073_v41 = vpack.c.bf16 %v5647_v26, %v5637_v19  ;;  %v3192_v57 = vpack.c.bf16 %v5649_v13, %v5639_v14 }
 0x29b   : > { %v5660_v9 = vpop.f32.mrf.mxu0  ;;  %v5662_v27 = vpop.f32.mrf.mxu1 }
 0x29c   : > { %v3326_v47 = vcombine.low %v3318_v50, %v3325_v36  ;;  %v3713_v35 = vmul.bf16 3216621497, %v3073_v41  ;;  %v3717_v58 = vmul.bf16 3216621497, %v3192_v57  ;;  %v3074_v16 = vpack.c.bf16 %v5660_v9, %v5643_v42 }
 0x29d   : > { %v3193_v60 = vpack.c.bf16 %v5662_v27, %v5645_v53 }
 0x29e   : > { %4297 = vpow.bf16 %v3713_v35  ;;  %v3714_v11 = vmul.bf16 3216621497, %v3074_v16  ;;  %3345 = vst [vmem:[%s4891_s7 + $0x10] sm:$0xff] %v3326_v47 }
 0x29f   : > { %4299 = vpow.bf16 %v3717_v58  ;;  %v3718_v56 = vmul.bf16 3216621497, %v3193_v60 }
 0x2a0   : > { %4301 = vpow.bf16 %v3714_v11 }
 0x2a1   : > { %4303 = vpow.bf16 %v3718_v56 }
 0x2a4   : > { %v4290_v29 = vpop.eup %4289 }
 0x2a5   : > { %v4292_v2 = vpop.eup %4291  ;;  %v3091_v30 = vadd.bf16 1065369472, %v4290_v29 }
 0x2a6   : > { %v4294_v54 = vpop.eup %4293  ;;  %v3210_v52 = vadd.bf16 1065369472, %v4292_v2 }
 0x2a7   : > { %v4296_v6 = vpop.eup %4295  ;;  %4305 = vrcp.bf16 %v3091_v30  ;;  %v3092_v5 = vadd.bf16 1065369472, %v4294_v54 }
 0x2a8   : > { %4307 = vrcp.bf16 %v3210_v52  ;;  %v3211_v55 = vadd.bf16 1065369472, %v4296_v6 }
 0x2a9   : > { %4309 = vrcp.bf16 %v3092_v5 }
 0x2aa   : > { %4311 = vrcp.bf16 %v3211_v55 }
 0x2ac   : > { %v4298_v61 = vpop.eup %4297 }
 0x2ad   : > { %v4300_v45 = vpop.eup %4299  ;;  %v3093_v7 = vadd.bf16 1065369472, %v4298_v61 }
 0x2ae   : > { %v4302_v4 = vpop.eup %4301  ;;  %v3212_v62 = vadd.bf16 1065369472, %v4300_v45 }
 0x2af   : > { %v4304_v10 = vpop.eup %4303  ;;  %4313 = vrcp.bf16 %v3093_v7  ;;  %v3094_v22 = vadd.bf16 1065369472, %v4302_v4 }
 0x2b0   : > { %4315 = vrcp.bf16 %v3212_v62  ;;  %v3213_v59 = vadd.bf16 1065369472, %v4304_v10 }
 0x2b1   : > { %4317 = vrcp.bf16 %v3094_v22 }
 0x2b2   : > { %4319 = vrcp.bf16 %v3213_v59 }
 0x2b5   : > { %v4306_v8 = vpop.eup %4305 }
 0x2b6   : > { %v4308_v48 = vpop.eup %4307  ;;  %v3096_v51 = vmul.bf16 1065369472, %v4306_v8 }
 0x2b7   : > { %v4310_v28 = vpop.eup %4309  ;;  %v3215_v20 = vmul.bf16 1065369472, %v4308_v48 }
 0x2b8   : > { %v4312_v31 = vpop.eup %4311  ;;  %v3098_v15 = vmul.bf16 1065369472, %v4310_v28  ;;  %v3103_v38 = vunpack.c.l.bf16 %v3096_v51  ;;  %v3105_v3 = vunpack.c.h.bf16 %v3096_v51 }
 0x2b9   : > { %v3217_v44 = vmul.bf16 1065369472, %v4312_v31  ;;  %v3222_v63 = vunpack.c.l.bf16 %v3215_v20  ;;  %v3224_v0 = vunpack.c.h.bf16 %v3215_v20 }
 0x2ba   : > { %v3104_v25 = vunpack.c.l.bf16 %v3098_v15  ;;  %v3106_v34 = vunpack.c.h.bf16 %v3098_v15  ;;  %v3111_v49 = vmul.f32 %v3103_v38, %v5613_v12  ;;  %v3113_v17 = vmul.f32 %v3105_v3, %v5621_v1 }
 0x2bb   : > { %v3223_v18 = vunpack.c.l.bf16 %v3217_v44  ;;  %v3225_v40 = vunpack.c.h.bf16 %v3217_v44  ;;  %v3230_v50 = vmul.f32 %v3222_v63, %v5615_v39  ;;  %v3232_v57 = vmul.f32 %v3224_v0, %v5623_v33 }
 0x2bc   : > { %v3112_v47 = vmul.f32 %v3104_v25, %v5617_v23  ;;  %v3114_v35 = vmul.f32 %v3106_v34, %v5629_v21  ;;  %v3119_v30 = vadd.f32 %v3113_v17, %v3111_v49 }
 0x2bd   : > { %v4314_v24 = vpop.eup %4313  ;;  %v3231_v60 = vmul.f32 %v3223_v18, %v5619_v37  ;;  %v3233_v12 = vmul.f32 %v3225_v40, %v5631_v46  ;;  %v3238_v23 = vadd.f32 %v3232_v57, %v3230_v50 }
 0x2be   : > { %v4316_v43 = vpop.eup %4315  ;;  %v3100_v36 = vmul.bf16 1065369472, %v4314_v24  ;;  %v3128_v55 = vadd.f32 %v3114_v35, %v3112_v47  ;;  %v3261_v47 = vld [vmem:[%s4891_s7 + $0x18] sm:$0xf] }
 0x2bf   : > { %v4318_v41 = vpop.eup %4317  ;;  %v3219_v58 = vmul.bf16 1065369472, %v4316_v43  ;;  %v3247_v46 = vadd.f32 %v3233_v12, %v3231_v60 }
 0x2c0   : > { %v4320_v16 = vpop.eup %4319  ;;  %v3107_v11 = vunpack.c.l.bf16 %v3100_v36  ;;  %v3109_v56 = vunpack.c.h.bf16 %v3100_v36  ;;  %v3102_v29 = vmul.bf16 1065369472, %v4318_v41 }
 0x2c1   : > { %v3226_v1 = vunpack.c.l.bf16 %v3219_v58  ;;  %v3228_v2 = vunpack.c.h.bf16 %v3219_v58  ;;  %v3221_v39 = vmul.bf16 1065369472, %v4320_v16 }
 0x2c2   : > { %v3115_v54 = vmul.f32 %v3107_v11, %v5637_v19  ;;  %v3108_v33 = vunpack.c.l.bf16 %v3102_v29  ;;  %v3110_v52 = vunpack.c.h.bf16 %v3102_v29  ;;  %v3117_v37 = vmul.f32 %v3109_v56, %v5647_v26 }
 0x2c3   : > { %v3234_v21 = vmul.f32 %v3226_v1, %v5639_v14  ;;  %v3227_v6 = vunpack.c.l.bf16 %v3221_v39  ;;  %v3229_v5 = vunpack.c.h.bf16 %v3221_v39  ;;  %v3236_v7 = vmul.f32 %v3228_v2, %v5649_v13 }
 0x2c4   : > { %v3120_v61 = vadd.f32 %v3119_v30, %v3115_v54  ;;  %v3116_v45 = vmul.f32 %v3108_v33, %v5643_v42  ;;  %v3118_v10 = vmul.f32 %v3110_v52, %v5660_v9 }
 0x2c5   : > { %v3239_v4 = vadd.f32 %v3238_v23, %v3234_v21  ;;  %v3235_v62 = vmul.f32 %v3227_v6, %v5645_v53  ;;  %v3237_v14 = vmul.f32 %v3229_v5, %v5662_v27 }
 0x2c6   : > { %v3121_v19 = vadd.f32 %v3120_v61, %v3117_v37  ;;  %v3129_v22 = vadd.f32 %v3128_v55, %v3116_v45 }
 0x2c7   : > { %v3240_v59 = vadd.f32 %v3239_v4, %v3236_v7  ;;  %v3248_v8 = vadd.f32 %v3247_v46, %v3235_v62 }
 0x2c8   : > { %v3122_v48 = vrot.slane %v3121_v19, 4  ;;  %v3130_v51 = vadd.f32 %v3129_v22, %v3118_v10 }
 0x2c9   : > { %v3241_v26 = vrot.slane %v3240_v59, 4  ;;  %v3249_v28 = vadd.f32 %v3248_v8, %v3237_v14 }
 0x2ca   : > { %v3123_v20 = vadd.f32 %v3122_v48, %v3121_v19  ;;  %v3131_v42 = vrot.slane %v3130_v51, 4 }
 0x2cb   : > { %v3242_v31 = vadd.f32 %v3241_v26, %v3240_v59  ;;  %v3250_v15 = vrot.slane %v3249_v28, 4 }
 0x2cc   : > { %v3124_v13 = vrot.slane %v3123_v20, 2  ;;  %v3132_v44 = vadd.f32 %v3131_v42, %v3130_v51 }
 0x2cd   : > { %v3243_v38 = vrot.slane %v3242_v31, 2  ;;  %v3251_v53 = vadd.f32 %v3250_v15, %v3249_v28 }
 0x2ce   : > { %v3125_v3 = vadd.f32 %v3124_v13, %v3123_v20  ;;  %v3133_v63 = vrot.slane %v3132_v44, 2 }
 0x2cf   : > { %v3244_v9 = vadd.f32 %v3243_v38, %v3242_v31  ;;  %v3252_v0 = vrot.slane %v3251_v53, 2 }
 0x2d0   : > { %v3126_v25 = vrot.slane %v3125_v3, 1  ;;  %v3134_v27 = vadd.f32 %v3133_v63, %v3132_v44 }
 0x2d1   : > { %v3245_v34 = vrot.slane %v3244_v9, 1  ;;  %v3253_v18 = vadd.f32 %v3252_v0, %v3251_v53 }
 0x2d2   : > { %v3135_v24 = vrot.slane %v3134_v27, 1  ;;  %v3127_v40 = vadd.f32 %v3126_v25, %v3125_v3 }
 0x2d3   : > { %v3246_v43 = vadd.f32 %v3245_v34, %v3244_v9  ;;  %v3254_v49 = vrot.slane %v3253_v18, 1 }
 0x2d4   : > { %v3136_v17 = vadd.f32 %v3135_v24, %v3134_v27 }
 0x2d5   : > { %v3255_v50 = vadd.f32 %v3254_v49, %v3253_v18  ;;  %v3256_v36 = vsel %vm663_vm0, %v3127_v40, %v3246_v43 }
 0x2d7   : > { %v3257_v41 = vsel %vm663_vm0, %v3136_v17, %v3255_v50 }
 0x2d8   : > { %v3327_v57 = vcombine.low %v3256_v36, %v3257_v41 }
 0x2da   : > { %v3334_v35 = vrot.slane %v3327_v57, %v5260_v32 }
 0x2dc   : > { %v3342_v58 = vadd.f32 %v3334_v35, %v3261_v47 }
 0x2de   : > { %3346 = vst [vmem:[%s4891_s7 + $0x18] sm:$0xf] %v3342_v58 }
 0x2df PF: > { %s12_s11 = sadd.s32 1, %s4355_s11   ;;  %s5702_s9 = smov %s4351_s10 }
 0x2e0   : > { %p9_p5 = scmp.ge.s32.totalorder %s12_s11, 4   ;;  %s5703_s10 = smov %s5705_s12 }
 0x2e2   :  { %11 = sbr.rel (!%p9_p5) target bundleno = 2 (0x2), region = 63 }

</bundles_post_ra>
